<compile_context>
chip_gen: v5e
topology: v5e:2x2
jax: 0.10.0
libtpu: 0.0.40
codegen_flags: <defaults>
</compile_context>

<pallas_src>
import functools

import jax
import jax.numpy as jnp
from jax import lax
from jax.experimental import pallas as pl
from jax.experimental.pallas import tpu as pltpu


def _round_up(x, m):
    return (x + m - 1) // m * m


def _invariant_spec(shape):
    """BlockSpec for a grid-invariant input; single-buffered when supported."""
    idx = lambda i: (0,) * len(shape)
    try:
        return pl.BlockSpec(shape, idx, pipeline_mode=pl.Buffered(1))
    except (TypeError, AttributeError, ValueError):
        return pl.BlockSpec(shape, idx)


def _estimate_vmem_bytes(Tc, Bp, Dp, Hp):
    """Rough per-layer VMEM need of the kernel's blocks (bf16 x/out/weights)."""
    bf, f32 = 2, 4
    x_blk = 2 * Tc * Bp * Dp * bf          # double-buffered input chunk
    out_blk = 2 * Tc * Bp * Hp * bf        # double-buffered output chunk
    gin = Tc * Bp * 4 * Hp * f32           # f32 input-projection scratch
    wts = (Dp + Hp) * 4 * Hp * bf + 4 * Hp * f32   # Wih + Whh + bias (1 buffer)
    hc = 2 * 2 * Bp * Hp * f32             # resident h/c blocks
    return x_blk + out_blk + gin + wts + hc


# ----------------------------- Pallas kernel --------------------------------
def _lstm_layer_kernel(x_ref, wih_ref, whh_ref, b_ref,      # inputs
                       out_ref, h_ref, c_ref,               # outputs
                       gin_ref,                             # VMEM scratch
                       *, unroll, valid_len):
    """One LSTM layer over one time-chunk.

    x_ref  : (Tc*Bp, Dp)   bf16, time-major, batch folded into rows
    wih_ref: (Dp, 4*Hp)    bf16, pre-transposed, gate-blocked [i|f|g|o]
    whh_ref: (Hp, 4*Hp)    bf16
    b_ref  : (1, 4*Hp)     f32, b_ih + b_hh, gate-blocked
    out_ref: (Tc, Bp, Hp)  bf16 per-timestep hidden states of this chunk
    h_ref  : (Bp, Hp)      f32 running hidden state (resident across grid)
    c_ref  : (Bp, Hp)      f32 running cell state   (resident across grid)
    gin_ref: (Tc*Bp, 4*Hp) f32 scratch for the precomputed input projection
    valid_len: total valid timesteps (None when no tail masking is needed)
    """
    Tc, Bp, Hp = out_ref.shape

    @pl.when(pl.program_id(0) == 0)
    def _init():
        h_ref[...] = jnp.zeros_like(h_ref)
        c_ref[...] = jnp.zeros_like(c_ref)

    # (1) Input projection for the whole chunk: one big bf16 MXU matmul,
    #     f32 accumulation, bias folded once.
    gin_ref[...] = (
        jnp.dot(x_ref[...], wih_ref[...], preferred_element_type=jnp.float32)
        + b_ref[...])

    t0 = pl.program_id(0) * Tc   # global time offset of this chunk

    # (2) Serial recurrence: one (Bp,Hp)x(Hp,4Hp) bf16 matmul + gates per step.
    def step(t, carry):
        h, c = carry
        row = pl.multiple_of(t * Bp, Bp)                      # sublane-aligned
        g = gin_ref[pl.ds(row, Bp), :] + jnp.dot(
            h.astype(whh_ref.dtype), whh_ref[...],
            preferred_element_type=jnp.float32)
        i_g = jax.nn.sigmoid(g[:, 0 * Hp:1 * Hp])
        f_g = jax.nn.sigmoid(g[:, 1 * Hp:2 * Hp])
        g_g = jnp.tanh(g[:, 2 * Hp:3 * Hp])
        o_g = jax.nn.sigmoid(g[:, 3 * Hp:4 * Hp])
        c_new = f_g * c + i_g * g_g
        h_new = o_g * jnp.tanh(c_new)
        if valid_len is not None:                             # tail masking
            keep = (t0 + t) < valid_len
            h_new = jnp.where(keep, h_new, h)
            c_new = jnp.where(keep, c_new, c)
        out_ref[t] = h_new.astype(out_ref.dtype)              # direct store
        return h_new, c_new

    h_fin, c_fin = lax.fori_loop(0, Tc, step, (h_ref[...], c_ref[...]),
                                 unroll=unroll)
    h_ref[...] = h_fin
    c_ref[...] = c_fin


def _lstm_layer(x2d, wih_p, whh_p, b_p, *, T, Tp, Tc, Bp, Hp, vmem_limit):
    """Run one LSTM layer with a serial grid over time chunks."""
    Dp = x2d.shape[1]
    n_chunks = Tp // Tc
    if Tc % 8 == 0:
        unroll = 8
    elif Tc % 4 == 0:
        unroll = 4
    elif Tc % 2 == 0:
        unroll = 2
    else:
        unroll = 1
    valid_len = None if Tp == T else T
    kernel = functools.partial(_lstm_layer_kernel, unroll=unroll,
                               valid_len=valid_len)

    out, h, c = pl.pallas_call(
        kernel,
        out_shape=(
            jax.ShapeDtypeStruct((Tp, Bp, Hp), jnp.bfloat16),   # hidden states
            jax.ShapeDtypeStruct((Bp, Hp), jnp.float32),        # final h
            jax.ShapeDtypeStruct((Bp, Hp), jnp.float32),        # final c
        ),
        grid_spec=pltpu.PrefetchScalarGridSpec(
            num_scalar_prefetch=0,
            grid=(n_chunks,),
            in_specs=[
                pl.BlockSpec((Tc * Bp, Dp), lambda i: (i, 0)),   # x chunk
                _invariant_spec((Dp, 4 * Hp)),                   # Wih
                _invariant_spec((Hp, 4 * Hp)),                   # Whh
                _invariant_spec((1, 4 * Hp)),                    # bias
            ],
            out_specs=(
                pl.BlockSpec((Tc, Bp, Hp), lambda i: (i, 0, 0)), # out chunk
                pl.BlockSpec((Bp, Hp), lambda i: (0, 0)),        # h (resident)
                pl.BlockSpec((Bp, Hp), lambda i: (0, 0)),        # c (resident)
            ),
            scratch_shapes=[pltpu.VMEM((Tc * Bp, 4 * Hp), jnp.float32)],
        ),
        compiler_params=pltpu.CompilerParams(
            dimension_semantics=("arbitrary",),      # serial recurrence in time
            vmem_limit_bytes=vmem_limit),
    )(x2d, wih_p, whh_p, b_p)
    return out, h, c


# ------------------------------ wrapper --------------------------------------
def _pack_lstm_weights(p, d_in, Dp, H, Hp):
    """PyTorch (4H,D)/(4H,H)/(4H,) -> pre-transposed, gate-blocked, padded, bf16."""
    wih_t = p["w_ih"].T.reshape(d_in, 4, H)
    wih_p = jnp.pad(wih_t, ((0, Dp - d_in), (0, 0), (0, Hp - H)))
    wih_p = wih_p.reshape(Dp, 4 * Hp).astype(jnp.bfloat16)
    whh_t = p["w_hh"].T.reshape(H, 4, H)
    whh_p = jnp.pad(whh_t, ((0, Hp - H), (0, 0), (0, Hp - H)))
    whh_p = whh_p.reshape(Hp, 4 * Hp).astype(jnp.bfloat16)
    b = (p["b_ih"] + p["b_hh"]).astype(jnp.float32).reshape(4, H)
    b_p = jnp.pad(b, ((0, 0), (0, Hp - H))).reshape(1, 4 * Hp)
    return wih_p, whh_p, b_p


def encoder_forward(params_list, inputs, *, time_chunk=128):
    """Forward of Encoder: inputs (B,T,D) -> (outputs (B,T,H), hidden, cell)."""
    B, T, D = inputs.shape
    H = params_list[0]["w_hh"].shape[1]
    in_dtype = inputs.dtype

    Bp = _round_up(B, 8)        # sublane alignment
    Hp = _round_up(H, 128)      # lane alignment (gate slices + output width)

    # Chunk selection: pad T up to a multiple of Tc (no Tc=1 cliff); shrink Tc
    # if the estimated VMEM footprint is too large for the per-chip budget.
    Dp_max = max(D, Hp)
    Tc = max(1, min(T, time_chunk))
    budget = 40 << 20
    while Tc > 8 and _estimate_vmem_bytes(Tc, Bp, Dp_max, Hp) > budget:
        Tc = max(8, Tc // 2)
    Tp = _round_up(T, Tc)
    need = _estimate_vmem_bytes(Tc, Bp, Dp_max, Hp)
    vmem_limit = int(max(min(1.5 * need + (8 << 20), 100 << 20), 16 << 20))

    # TODO(synk): training-mode dropout (nn.Dropout + inter-layer LSTM dropout)
    # is stochastic; inference-mode identity is implemented here.
    x = jnp.transpose(inputs, (1, 0, 2)).astype(jnp.bfloat16)   # (T, B, D)
    x = jnp.pad(x, ((0, Tp - T), (0, Bp - B), (0, 0)))          # (Tp, Bp, D)

    hs, cs = [], []
    for p in params_list:
        d_in = p["w_ih"].shape[1]
        Dp = x.shape[-1]                        # D for layer 0, Hp afterwards
        wih_p, whh_p, b_p = _pack_lstm_weights(p, d_in, Dp, H, Hp)
        out, h, c = _lstm_layer(x.reshape(Tp * Bp, Dp), wih_p, whh_p, b_p,
                                T=T, Tp=Tp, Tc=Tc, Bp=Bp, Hp=Hp,
                                vmem_limit=vmem_limit)
        hs.append(h[:B, :H])
        cs.append(c[:B, :H])
        x = out                                 # (Tp, Bp, Hp) bf16 -> next layer

    outputs = jnp.transpose(x[:T, :B, :H], (1, 0, 2)).astype(in_dtype)  # (B,T,H)
    hidden = jnp.stack(hs, axis=0).astype(in_dtype)     # (n_layers, B, H)
    cell = jnp.stack(cs, axis=0).astype(in_dtype)       # (n_layers, B, H)
    return outputs, hidden, cell


# ---------------- pure-JAX reference (matching bf16 matmul precision) --------
def reference_forward(params_list, inputs):
    B, T, D = inputs.shape
    H = params_list[0]["w_hh"].shape[1]
    bf16 = jnp.bfloat16
    x = jnp.transpose(inputs, (1, 0, 2))                  # (T, B, D)
    hs, cs = [], []
    for p in params_list:
        w_ih = p["w_ih"].astype(bf16)
        w_hh = p["w_hh"].astype(bf16)
        b = (p["b_ih"] + p["b_hh"]).astype(jnp.float32)

        def cell(carry, x_t, w_ih=w_ih, w_hh=w_hh, b=b):
            h, c = carry
            g = (jnp.dot(x_t.astype(bf16), w_ih.T,
                         preferred_element_type=jnp.float32)
                 + jnp.dot(h.astype(bf16), w_hh.T,
                           preferred_element_type=jnp.float32)
                 + b)
            i = jax.nn.sigmoid(g[:, :H])
            f = jax.nn.sigmoid(g[:, H:2 * H])
            gg = jnp.tanh(g[:, 2 * H:3 * H])
            o = jax.nn.sigmoid(g[:, 3 * H:])
            c_new = f * c + i * gg
            h_new = o * jnp.tanh(c_new)
            return (h_new, c_new), h_new

        (h, c), outs = lax.scan(
            cell, (jnp.zeros((B, H), jnp.float32), jnp.zeros((B, H), jnp.float32)), x)
        hs.append(h)
        cs.append(c)
        x = outs.astype(bf16).astype(jnp.float32)   # mirrors bf16 inter-layer storage
    return jnp.transpose(x, (1, 0, 2)), jnp.stack(hs, 0), jnp.stack(cs, 0)


def init_params(key, input_dim, hid_dim, n_layers):
    params = []
    bound = hid_dim ** -0.5
    for l in range(n_layers):
        key, k1, k2, k3, k4 = jax.random.split(key, 5)
        d_in = input_dim if l == 0 else hid_dim

        def u(k, shape):
            w = jax.random.uniform(k, shape, jnp.float32, -bound, bound)
            # Snap to the bf16 grid so the kernel's bf16 casts are exact and the
            # comparison against the reference can stay tight.
            return w.astype(jnp.bfloat16).astype(jnp.float32)

        params.append(dict(
            w_ih=u(k1, (4 * hid_dim, d_in)),
            w_hh=u(k2, (4 * hid_dim, hid_dim)),
            b_ih=u(k3, (4 * hid_dim,)),
            b_hh=u(k4, (4 * hid_dim,)),
        ))
    return params


if __name__ == "__main__":
    B, T, D, H, N_LAYERS = 2, 8, 16, 32, 2
    key = jax.random.PRNGKey(0)
    k_x, k_x2, k_p = jax.random.split(key, 3)

    inputs = jax.random.normal(k_x, (B, T, D), jnp.float32)
    inputs = inputs.astype(jnp.bfloat16).astype(jnp.float32)   # bf16-exact data
    params = init_params(k_p, D, H, N_LAYERS)

    outputs, hidden, cell = jax.block_until_ready(encoder_forward(params, inputs))

    assert outputs.shape == (B, T, H)
    assert hidden.shape == (N_LAYERS, B, H)
    assert cell.shape == (N_LAYERS, B, H)

    ref_out, ref_h, ref_c = reference_forward(params, inputs)
    tol = 1e-3
    assert float(jnp.max(jnp.abs(outputs - ref_out))) < tol
    assert float(jnp.max(jnp.abs(hidden - ref_h))) < tol
    assert float(jnp.max(jnp.abs(cell - ref_c))) < tol

    # Second check: multi-chunk grid with a remainder (tail-masked) chunk.
    T2 = 7
    inputs2 = jax.random.normal(k_x2, (B, T2, D), jnp.float32)
    inputs2 = inputs2.astype(jnp.bfloat16).astype(jnp.float32)
    out2, h2, c2 = jax.block_until_ready(
        encoder_forward(params, inputs2, time_chunk=4))
    ref_out2, ref_h2, ref_c2 = reference_forward(params, inputs2)
    assert out2.shape == (B, T2, H)
    assert float(jnp.max(jnp.abs(out2 - ref_out2))) < tol
    assert float(jnp.max(jnp.abs(h2 - ref_h2))) < tol
    assert float(jnp.max(jnp.abs(c2 - ref_c2))) < tol

    print("KERNEL_OK")
</pallas_src>

<mosaic_0001>
module attributes {stable_mosaic.version = 11 : i64} {
  func.func @_lstm_layer_kernel(%arg0: i32, %arg1: memref<64x16xbf16, #tpu.memory_space<vmem>>, %arg2: memref<16x512xbf16, #tpu.memory_space<vmem>>, %arg3: memref<128x512xbf16, #tpu.memory_space<vmem>>, %arg4: memref<1x512xf32, #tpu.memory_space<vmem>>, %arg5: memref<8x8x128xbf16, #tpu.memory_space<vmem>>, %arg6: memref<8x128xf32, #tpu.memory_space<vmem>>, %arg7: memref<8x128xf32, #tpu.memory_space<vmem>>, %arg8: memref<64x512xf32, #tpu.memory_space<vmem>>) attributes {dimension_semantics = [#tpu.dimension_semantics<arbitrary>], iteration_bounds = array<i64: 1>, scalar_prefetch = 0 : i64, scratch_operands = 1 : i64, tpu.core_type = #tpu.core_type<tc>, window_params = [{transform_indices = @transform_0, window_bounds = array<i64: 64, 16>}, {pipeline_mode = #tpu.pipeline_mode<synchronous>, transform_indices = @transform_1, window_bounds = array<i64: 16, 512>}, {pipeline_mode = #tpu.pipeline_mode<synchronous>, transform_indices = @transform_2, window_bounds = array<i64: 128, 512>}, {pipeline_mode = #tpu.pipeline_mode<synchronous>, transform_indices = @transform_3, window_bounds = array<i64: 1, 512>}, {transform_indices = @transform_4, window_bounds = array<i64: 8, 8, 128>}, {pipeline_mode = #tpu.pipeline_mode<synchronous>, transform_indices = @transform_5, window_bounds = array<i64: 8, 128>}, {pipeline_mode = #tpu.pipeline_mode<synchronous>, transform_indices = @transform_6, window_bounds = array<i64: 8, 128>}]} {
    %c0_i32 = arith.constant 0 : i32
    %0 = arith.cmpi eq, %arg0, %c0_i32 : i32
    %1 = arith.extui %0 : i1 to i32
    %c0_i32_0 = arith.constant 0 : i32
    %2 = arith.cmpi ne, %1, %c0_i32_0 : i32
    scf.if %2 {
      %cst_97 = arith.constant 0.000000e+00 : f32
      %318 = vector.broadcast %cst_97 : f32 to vector<8x128xf32>
      %c0_98 = arith.constant 0 : index
      %c0_99 = arith.constant 0 : index
      %319 = vector.load %arg6[%c0_98, %c0_99] : memref<8x128xf32, #tpu.memory_space<vmem>>, vector<8x128xf32>
      tpu.vector_store %arg6[%c0_98, %c0_99], %318 {strides = array<i32>} : memref<8x128xf32, #tpu.memory_space<vmem>>, vector<8x128xf32>,
      %cst_100 = arith.constant 0.000000e+00 : f32
      %320 = vector.broadcast %cst_100 : f32 to vector<8x128xf32>
      %c0_101 = arith.constant 0 : index
      %c0_102 = arith.constant 0 : index
      %321 = vector.load %arg7[%c0_101, %c0_102] : memref<8x128xf32, #tpu.memory_space<vmem>>, vector<8x128xf32>
      tpu.vector_store %arg7[%c0_101, %c0_102], %320 {strides = array<i32>} : memref<8x128xf32, #tpu.memory_space<vmem>>, vector<8x128xf32>,
    } else {
    }
    %c0 = arith.constant 0 : index
    %c0_1 = arith.constant 0 : index
    %3 = vector.load %arg1[%c0, %c0_1] : memref<64x16xbf16, #tpu.memory_space<vmem>>, vector<64x16xbf16>
    %c0_2 = arith.constant 0 : index
    %c0_3 = arith.constant 0 : index
    %4 = vector.load %arg2[%c0_2, %c0_3] : memref<16x512xbf16, #tpu.memory_space<vmem>>, vector<16x512xbf16>
    %cst = arith.constant dense<0.000000e+00> : vector<64x512xf32>
    %5 = tpu.matmul %3, %4, %cst {dimension_numbers = #tpu.dot_dimension_numbers<[1], [0], [0], [1], [0, 0, 1, 1], [], []>} : vector<64x16xbf16>, vector<16x512xbf16>, vector<64x512xf32> -> vector<64x512xf32>
    %c0_4 = arith.constant 0 : index
    %c0_5 = arith.constant 0 : index
    %6 = vector.load %arg4[%c0_4, %c0_5] : memref<1x512xf32, #tpu.memory_space<vmem>>, vector<1x512xf32>
    %7 = vector.broadcast %6 : vector<1x512xf32> to vector<64x512xf32>
    %8 = arith.addf %5, %7 : vector<64x512xf32>
    %c0_6 = arith.constant 0 : index
    %c0_7 = arith.constant 0 : index
    %9 = vector.load %arg8[%c0_6, %c0_7] : memref<64x512xf32, #tpu.memory_space<vmem>>, vector<64x512xf32>
    tpu.vector_store %arg8[%c0_6, %c0_7], %8 {strides = array<i32>} : memref<64x512xf32, #tpu.memory_space<vmem>>, vector<64x512xf32>,
    %c0_8 = arith.constant 0 : index
    %c0_9 = arith.constant 0 : index
    %10 = vector.load %arg6[%c0_8, %c0_9] : memref<8x128xf32, #tpu.memory_space<vmem>>, vector<8x128xf32>
    %c0_10 = arith.constant 0 : index
    %c0_11 = arith.constant 0 : index
    %11 = vector.load %arg7[%c0_10, %c0_11] : memref<8x128xf32, #tpu.memory_space<vmem>>, vector<8x128xf32>
    %c0_i32_12 = arith.constant 0 : i32
    %c8_i32 = arith.constant 8 : i32
    %12 = arith.muli %c0_i32_12, %c8_i32 : i32
    %13 = tpu.assume_multiple %12, 8 : i32
    %14 = arith.index_cast %13 : i32 to index
    %c0_13 = arith.constant 0 : index
    %15 = vector.load %arg8[%14, %c0_13] : memref<64x512xf32, #tpu.memory_space<vmem>>, vector<8x512xf32>
    %16 = arith.truncf %10 : vector<8x128xf32> to vector<8x128xbf16>
    %c0_14 = arith.constant 0 : index
    %c0_15 = arith.constant 0 : index
    %17 = vector.load %arg3[%c0_14, %c0_15] : memref<128x512xbf16, #tpu.memory_space<vmem>>, vector<128x512xbf16>
    %cst_16 = arith.constant dense<0.000000e+00> : vector<8x512xf32>
    %18 = tpu.matmul %16, %17, %cst_16 {dimension_numbers = #tpu.dot_dimension_numbers<[1], [0], [0], [1], [0, 0, 1, 1], [], []>} : vector<8x128xbf16>, vector<128x512xbf16>, vector<8x512xf32> -> vector<8x512xf32>
    %19 = arith.addf %15, %18 : vector<8x512xf32>
    %20 = vector.extract_strided_slice %19 {offsets = [0, 0], sizes = [8, 128], strides = [1, 1]} : vector<8x512xf32> to vector<8x128xf32>
    %21 = arith.negf %20 : vector<8x128xf32>
    %22 = math.exp %21 : vector<8x128xf32>
    %cst_17 = arith.constant 1.000000e+00 : f32
    %23 = vector.broadcast %cst_17 : f32 to vector<8x128xf32>
    %24 = arith.addf %23, %22 : vector<8x128xf32>
    %25 = arith.divf %23, %24 : vector<8x128xf32>
    %26 = vector.extract_strided_slice %19 {offsets = [0, 128], sizes = [8, 128], strides = [1, 1]} : vector<8x512xf32> to vector<8x128xf32>
    %27 = arith.negf %26 : vector<8x128xf32>
    %28 = math.exp %27 : vector<8x128xf32>
    %cst_18 = arith.constant 1.000000e+00 : f32
    %29 = vector.broadcast %cst_18 : f32 to vector<8x128xf32>
    %30 = arith.addf %29, %28 : vector<8x128xf32>
    %31 = arith.divf %29, %30 : vector<8x128xf32>
    %32 = vector.extract_strided_slice %19 {offsets = [0, 256], sizes = [8, 128], strides = [1, 1]} : vector<8x512xf32> to vector<8x128xf32>
    %33 = math.tanh %32 : vector<8x128xf32>
    %34 = vector.extract_strided_slice %19 {offsets = [0, 384], sizes = [8, 128], strides = [1, 1]} : vector<8x512xf32> to vector<8x128xf32>
    %35 = arith.negf %34 : vector<8x128xf32>
    %36 = math.exp %35 : vector<8x128xf32>
    %cst_19 = arith.constant 1.000000e+00 : f32
    %37 = vector.broadcast %cst_19 : f32 to vector<8x128xf32>
    %38 = arith.addf %37, %36 : vector<8x128xf32>
    %39 = arith.divf %37, %38 : vector<8x128xf32>
    %40 = arith.mulf %31, %11 : vector<8x128xf32>
    %41 = arith.mulf %25, %33 : vector<8x128xf32>
    %42 = arith.addf %40, %41 : vector<8x128xf32>
    %43 = math.tanh %42 : vector<8x128xf32>
    %44 = arith.mulf %39, %43 : vector<8x128xf32>
    %45 = arith.truncf %44 : vector<8x128xf32> to vector<8x128xbf16>
    %46 = arith.index_cast %c0_i32_12 : i32 to index
    %c0_20 = arith.constant 0 : index
    %c0_21 = arith.constant 0 : index
    %47 = vector.load %arg5[%46, %c0_20, %c0_21] : memref<8x8x128xbf16, #tpu.memory_space<vmem>>, vector<1x8x128xbf16>
    %48 = vector.shape_cast %47 : vector<1x8x128xbf16> to vector<8x128xbf16>
    %49 = vector.shape_cast %45 : vector<8x128xbf16> to vector<1x8x128xbf16>
    tpu.vector_store %arg5[%46, %c0_20, %c0_21], %49 {strides = array<i32>} : memref<8x8x128xbf16, #tpu.memory_space<vmem>>, vector<1x8x128xbf16>,
    %c1_i32 = arith.constant 1 : i32
    %c8_i32_22 = arith.constant 8 : i32
    %50 = arith.muli %c1_i32, %c8_i32_22 : i32
    %51 = tpu.assume_multiple %50, 8 : i32
    %52 = arith.index_cast %51 : i32 to index
    %c0_23 = arith.constant 0 : index
    %53 = vector.load %arg8[%52, %c0_23] : memref<64x512xf32, #tpu.memory_space<vmem>>, vector<8x512xf32>
    %54 = arith.truncf %44 : vector<8x128xf32> to vector<8x128xbf16>
    %c0_24 = arith.constant 0 : index
    %c0_25 = arith.constant 0 : index
    %55 = vector.load %arg3[%c0_24, %c0_25] : memref<128x512xbf16, #tpu.memory_space<vmem>>, vector<128x512xbf16>
    %cst_26 = arith.constant dense<0.000000e+00> : vector<8x512xf32>
    %56 = tpu.matmul %54, %55, %cst_26 {dimension_numbers = #tpu.dot_dimension_numbers<[1], [0], [0], [1], [0, 0, 1, 1], [], []>} : vector<8x128xbf16>, vector<128x512xbf16>, vector<8x512xf32> -> vector<8x512xf32>
    %57 = arith.addf %53, %56 : vector<8x512xf32>
    %58 = vector.extract_strided_slice %57 {offsets = [0, 0], sizes = [8, 128], strides = [1, 1]} : vector<8x512xf32> to vector<8x128xf32>
    %59 = arith.negf %58 : vector<8x128xf32>
    %60 = math.exp %59 : vector<8x128xf32>
    %cst_27 = arith.constant 1.000000e+00 : f32
    %61 = vector.broadcast %cst_27 : f32 to vector<8x128xf32>
    %62 = arith.addf %61, %60 : vector<8x128xf32>
    %63 = arith.divf %61, %62 : vector<8x128xf32>
    %64 = vector.extract_strided_slice %57 {offsets = [0, 128], sizes = [8, 128], strides = [1, 1]} : vector<8x512xf32> to vector<8x128xf32>
    %65 = arith.negf %64 : vector<8x128xf32>
    %66 = math.exp %65 : vector<8x128xf32>
    %cst_28 = arith.constant 1.000000e+00 : f32
    %67 = vector.broadcast %cst_28 : f32 to vector<8x128xf32>
    %68 = arith.addf %67, %66 : vector<8x128xf32>
    %69 = arith.divf %67, %68 : vector<8x128xf32>
    %70 = vector.extract_strided_slice %57 {offsets = [0, 256], sizes = [8, 128], strides = [1, 1]} : vector<8x512xf32> to vector<8x128xf32>
    %71 = math.tanh %70 : vector<8x128xf32>
    %72 = vector.extract_strided_slice %57 {offsets = [0, 384], sizes = [8, 128], strides = [1, 1]} : vector<8x512xf32> to vector<8x128xf32>
    %73 = arith.negf %72 : vector<8x128xf32>
    %74 = math.exp %73 : vector<8x128xf32>
    %cst_29 = arith.constant 1.000000e+00 : f32
    %75 = vector.broadcast %cst_29 : f32 to vector<8x128xf32>
    %76 = arith.addf %75, %74 : vector<8x128xf32>
    %77 = arith.divf %75, %76 : vector<8x128xf32>
    %78 = arith.mulf %69, %42 : vector<8x128xf32>
    %79 = arith.mulf %63, %71 : vector<8x128xf32>
    %80 = arith.addf %78, %79 : vector<8x128xf32>
    %81 = math.tanh %80 : vector<8x128xf32>
    %82 = arith.mulf %77, %81 : vector<8x128xf32>
    %83 = arith.truncf %82 : vector<8x128xf32> to vector<8x128xbf16>
    %84 = arith.index_cast %c1_i32 : i32 to index
    %c0_30 = arith.constant 0 : index
    %c0_31 = arith.constant 0 : index
    %85 = vector.load %arg5[%84, %c0_30, %c0_31] : memref<8x8x128xbf16, #tpu.memory_space<vmem>>, vector<1x8x128xbf16>
    %86 = vector.shape_cast %85 : vector<1x8x128xbf16> to vector<8x128xbf16>
    %87 = vector.shape_cast %83 : vector<8x128xbf16> to vector<1x8x128xbf16>
    tpu.vector_store %arg5[%84, %c0_30, %c0_31], %87 {strides = array<i32>} : memref<8x8x128xbf16, #tpu.memory_space<vmem>>, vector<1x8x128xbf16>,
    %c2_i32 = arith.constant 2 : i32
    %c8_i32_32 = arith.constant 8 : i32
    %88 = arith.muli %c2_i32, %c8_i32_32 : i32
    %89 = tpu.assume_multiple %88, 8 : i32
    %90 = arith.index_cast %89 : i32 to index
    %c0_33 = arith.constant 0 : index
    %91 = vector.load %arg8[%90, %c0_33] : memref<64x512xf32, #tpu.memory_space<vmem>>, vector<8x512xf32>
    %92 = arith.truncf %82 : vector<8x128xf32> to vector<8x128xbf16>
    %c0_34 = arith.constant 0 : index
    %c0_35 = arith.constant 0 : index
    %93 = vector.load %arg3[%c0_34, %c0_35] : memref<128x512xbf16, #tpu.memory_space<vmem>>, vector<128x512xbf16>
    %cst_36 = arith.constant dense<0.000000e+00> : vector<8x512xf32>
    %94 = tpu.matmul %92, %93, %cst_36 {dimension_numbers = #tpu.dot_dimension_numbers<[1], [0], [0], [1], [0, 0, 1, 1], [], []>} : vector<8x128xbf16>, vector<128x512xbf16>, vector<8x512xf32> -> vector<8x512xf32>
    %95 = arith.addf %91, %94 : vector<8x512xf32>
    %96 = vector.extract_strided_slice %95 {offsets = [0, 0], sizes = [8, 128], strides = [1, 1]} : vector<8x512xf32> to vector<8x128xf32>
    %97 = arith.negf %96 : vector<8x128xf32>
    %98 = math.exp %97 : vector<8x128xf32>
    %cst_37 = arith.constant 1.000000e+00 : f32
    %99 = vector.broadcast %cst_37 : f32 to vector<8x128xf32>
    %100 = arith.addf %99, %98 : vector<8x128xf32>
    %101 = arith.divf %99, %100 : vector<8x128xf32>
    %102 = vector.extract_strided_slice %95 {offsets = [0, 128], sizes = [8, 128], strides = [1, 1]} : vector<8x512xf32> to vector<8x128xf32>
    %103 = arith.negf %102 : vector<8x128xf32>
    %104 = math.exp %103 : vector<8x128xf32>
    %cst_38 = arith.constant 1.000000e+00 : f32
    %105 = vector.broadcast %cst_38 : f32 to vector<8x128xf32>
    %106 = arith.addf %105, %104 : vector<8x128xf32>
    %107 = arith.divf %105, %106 : vector<8x128xf32>
    %108 = vector.extract_strided_slice %95 {offsets = [0, 256], sizes = [8, 128], strides = [1, 1]} : vector<8x512xf32> to vector<8x128xf32>
    %109 = math.tanh %108 : vector<8x128xf32>
    %110 = vector.extract_strided_slice %95 {offsets = [0, 384], sizes = [8, 128], strides = [1, 1]} : vector<8x512xf32> to vector<8x128xf32>
    %111 = arith.negf %110 : vector<8x128xf32>
    %112 = math.exp %111 : vector<8x128xf32>
    %cst_39 = arith.constant 1.000000e+00 : f32
    %113 = vector.broadcast %cst_39 : f32 to vector<8x128xf32>
    %114 = arith.addf %113, %112 : vector<8x128xf32>
    %115 = arith.divf %113, %114 : vector<8x128xf32>
    %116 = arith.mulf %107, %80 : vector<8x128xf32>
    %117 = arith.mulf %101, %109 : vector<8x128xf32>
    %118 = arith.addf %116, %117 : vector<8x128xf32>
    %119 = math.tanh %118 : vector<8x128xf32>
    %120 = arith.mulf %115, %119 : vector<8x128xf32>
    %121 = arith.truncf %120 : vector<8x128xf32> to vector<8x128xbf16>
    %122 = arith.index_cast %c2_i32 : i32 to index
    %c0_40 = arith.constant 0 : index
    %c0_41 = arith.constant 0 : index
    %123 = vector.load %arg5[%122, %c0_40, %c0_41] : memref<8x8x128xbf16, #tpu.memory_space<vmem>>, vector<1x8x128xbf16>
    %124 = vector.shape_cast %123 : vector<1x8x128xbf16> to vector<8x128xbf16>
    %125 = vector.shape_cast %121 : vector<8x128xbf16> to vector<1x8x128xbf16>
    tpu.vector_store %arg5[%122, %c0_40, %c0_41], %125 {strides = array<i32>} : memref<8x8x128xbf16, #tpu.memory_space<vmem>>, vector<1x8x128xbf16>,
    %c3_i32 = arith.constant 3 : i32
    %c8_i32_42 = arith.constant 8 : i32
    %126 = arith.muli %c3_i32, %c8_i32_42 : i32
    %127 = tpu.assume_multiple %126, 8 : i32
    %128 = arith.index_cast %127 : i32 to index
    %c0_43 = arith.constant 0 : index
    %129 = vector.load %arg8[%128, %c0_43] : memref<64x512xf32, #tpu.memory_space<vmem>>, vector<8x512xf32>
    %130 = arith.truncf %120 : vector<8x128xf32> to vector<8x128xbf16>
    %c0_44 = arith.constant 0 : index
    %c0_45 = arith.constant 0 : index
    %131 = vector.load %arg3[%c0_44, %c0_45] : memref<128x512xbf16, #tpu.memory_space<vmem>>, vector<128x512xbf16>
    %cst_46 = arith.constant dense<0.000000e+00> : vector<8x512xf32>
    %132 = tpu.matmul %130, %131, %cst_46 {dimension_numbers = #tpu.dot_dimension_numbers<[1], [0], [0], [1], [0, 0, 1, 1], [], []>} : vector<8x128xbf16>, vector<128x512xbf16>, vector<8x512xf32> -> vector<8x512xf32>
    %133 = arith.addf %129, %132 : vector<8x512xf32>
    %134 = vector.extract_strided_slice %133 {offsets = [0, 0], sizes = [8, 128], strides = [1, 1]} : vector<8x512xf32> to vector<8x128xf32>
    %135 = arith.negf %134 : vector<8x128xf32>
    %136 = math.exp %135 : vector<8x128xf32>
    %cst_47 = arith.constant 1.000000e+00 : f32
    %137 = vector.broadcast %cst_47 : f32 to vector<8x128xf32>
    %138 = arith.addf %137, %136 : vector<8x128xf32>
    %139 = arith.divf %137, %138 : vector<8x128xf32>
    %140 = vector.extract_strided_slice %133 {offsets = [0, 128], sizes = [8, 128], strides = [1, 1]} : vector<8x512xf32> to vector<8x128xf32>
    %141 = arith.negf %140 : vector<8x128xf32>
    %142 = math.exp %141 : vector<8x128xf32>
    %cst_48 = arith.constant 1.000000e+00 : f32
    %143 = vector.broadcast %cst_48 : f32 to vector<8x128xf32>
    %144 = arith.addf %143, %142 : vector<8x128xf32>
    %145 = arith.divf %143, %144 : vector<8x128xf32>
    %146 = vector.extract_strided_slice %133 {offsets = [0, 256], sizes = [8, 128], strides = [1, 1]} : vector<8x512xf32> to vector<8x128xf32>
    %147 = math.tanh %146 : vector<8x128xf32>
    %148 = vector.extract_strided_slice %133 {offsets = [0, 384], sizes = [8, 128], strides = [1, 1]} : vector<8x512xf32> to vector<8x128xf32>
    %149 = arith.negf %148 : vector<8x128xf32>
    %150 = math.exp %149 : vector<8x128xf32>
    %cst_49 = arith.constant 1.000000e+00 : f32
    %151 = vector.broadcast %cst_49 : f32 to vector<8x128xf32>
    %152 = arith.addf %151, %150 : vector<8x128xf32>
    %153 = arith.divf %151, %152 : vector<8x128xf32>
    %154 = arith.mulf %145, %118 : vector<8x128xf32>
    %155 = arith.mulf %139, %147 : vector<8x128xf32>
    %156 = arith.addf %154, %155 : vector<8x128xf32>
    %157 = math.tanh %156 : vector<8x128xf32>
    %158 = arith.mulf %153, %157 : vector<8x128xf32>
    %159 = arith.truncf %158 : vector<8x128xf32> to vector<8x128xbf16>
    %160 = arith.index_cast %c3_i32 : i32 to index
    %c0_50 = arith.constant 0 : index
    %c0_51 = arith.constant 0 : index
    %161 = vector.load %arg5[%160, %c0_50, %c0_51] : memref<8x8x128xbf16, #tpu.memory_space<vmem>>, vector<1x8x128xbf16>
    %162 = vector.shape_cast %161 : vector<1x8x128xbf16> to vector<8x128xbf16>
    %163 = vector.shape_cast %159 : vector<8x128xbf16> to vector<1x8x128xbf16>
    tpu.vector_store %arg5[%160, %c0_50, %c0_51], %163 {strides = array<i32>} : memref<8x8x128xbf16, #tpu.memory_space<vmem>>, vector<1x8x128xbf16>,
    %c4_i32 = arith.constant 4 : i32
    %c8_i32_52 = arith.constant 8 : i32
    %164 = arith.muli %c4_i32, %c8_i32_52 : i32
    %165 = tpu.assume_multiple %164, 8 : i32
    %166 = arith.index_cast %165 : i32 to index
    %c0_53 = arith.constant 0 : index
    %167 = vector.load %arg8[%166, %c0_53] : memref<64x512xf32, #tpu.memory_space<vmem>>, vector<8x512xf32>
    %168 = arith.truncf %158 : vector<8x128xf32> to vector<8x128xbf16>
    %c0_54 = arith.constant 0 : index
    %c0_55 = arith.constant 0 : index
    %169 = vector.load %arg3[%c0_54, %c0_55] : memref<128x512xbf16, #tpu.memory_space<vmem>>, vector<128x512xbf16>
    %cst_56 = arith.constant dense<0.000000e+00> : vector<8x512xf32>
    %170 = tpu.matmul %168, %169, %cst_56 {dimension_numbers = #tpu.dot_dimension_numbers<[1], [0], [0], [1], [0, 0, 1, 1], [], []>} : vector<8x128xbf16>, vector<128x512xbf16>, vector<8x512xf32> -> vector<8x512xf32>
    %171 = arith.addf %167, %170 : vector<8x512xf32>
    %172 = vector.extract_strided_slice %171 {offsets = [0, 0], sizes = [8, 128], strides = [1, 1]} : vector<8x512xf32> to vector<8x128xf32>
    %173 = arith.negf %172 : vector<8x128xf32>
    %174 = math.exp %173 : vector<8x128xf32>
    %cst_57 = arith.constant 1.000000e+00 : f32
    %175 = vector.broadcast %cst_57 : f32 to vector<8x128xf32>
    %176 = arith.addf %175, %174 : vector<8x128xf32>
    %177 = arith.divf %175, %176 : vector<8x128xf32>
    %178 = vector.extract_strided_slice %171 {offsets = [0, 128], sizes = [8, 128], strides = [1, 1]} : vector<8x512xf32> to vector<8x128xf32>
    %179 = arith.negf %178 : vector<8x128xf32>
    %180 = math.exp %179 : vector<8x128xf32>
    %cst_58 = arith.constant 1.000000e+00 : f32
    %181 = vector.broadcast %cst_58 : f32 to vector<8x128xf32>
    %182 = arith.addf %181, %180 : vector<8x128xf32>
    %183 = arith.divf %181, %182 : vector<8x128xf32>
    %184 = vector.extract_strided_slice %171 {offsets = [0, 256], sizes = [8, 128], strides = [1, 1]} : vector<8x512xf32> to vector<8x128xf32>
    %185 = math.tanh %184 : vector<8x128xf32>
    %186 = vector.extract_strided_slice %171 {offsets = [0, 384], sizes = [8, 128], strides = [1, 1]} : vector<8x512xf32> to vector<8x128xf32>
    %187 = arith.negf %186 : vector<8x128xf32>
    %188 = math.exp %187 : vector<8x128xf32>
    %cst_59 = arith.constant 1.000000e+00 : f32
    %189 = vector.broadcast %cst_59 : f32 to vector<8x128xf32>
    %190 = arith.addf %189, %188 : vector<8x128xf32>
    %191 = arith.divf %189, %190 : vector<8x128xf32>
    %192 = arith.mulf %183, %156 : vector<8x128xf32>
    %193 = arith.mulf %177, %185 : vector<8x128xf32>
    %194 = arith.addf %192, %193 : vector<8x128xf32>
    %195 = math.tanh %194 : vector<8x128xf32>
    %196 = arith.mulf %191, %195 : vector<8x128xf32>
    %197 = arith.truncf %196 : vector<8x128xf32> to vector<8x128xbf16>
    %198 = arith.index_cast %c4_i32 : i32 to index
    %c0_60 = arith.constant 0 : index
    %c0_61 = arith.constant 0 : index
    %199 = vector.load %arg5[%198, %c0_60, %c0_61] : memref<8x8x128xbf16, #tpu.memory_space<vmem>>, vector<1x8x128xbf16>
    %200 = vector.shape_cast %199 : vector<1x8x128xbf16> to vector<8x128xbf16>
    %201 = vector.shape_cast %197 : vector<8x128xbf16> to vector<1x8x128xbf16>
    tpu.vector_store %arg5[%198, %c0_60, %c0_61], %201 {strides = array<i32>} : memref<8x8x128xbf16, #tpu.memory_space<vmem>>, vector<1x8x128xbf16>,
    %c5_i32 = arith.constant 5 : i32
    %c8_i32_62 = arith.constant 8 : i32
    %202 = arith.muli %c5_i32, %c8_i32_62 : i32
    %203 = tpu.assume_multiple %202, 8 : i32
    %204 = arith.index_cast %203 : i32 to index
    %c0_63 = arith.constant 0 : index
    %205 = vector.load %arg8[%204, %c0_63] : memref<64x512xf32, #tpu.memory_space<vmem>>, vector<8x512xf32>
    %206 = arith.truncf %196 : vector<8x128xf32> to vector<8x128xbf16>
    %c0_64 = arith.constant 0 : index
    %c0_65 = arith.constant 0 : index
    %207 = vector.load %arg3[%c0_64, %c0_65] : memref<128x512xbf16, #tpu.memory_space<vmem>>, vector<128x512xbf16>
    %cst_66 = arith.constant dense<0.000000e+00> : vector<8x512xf32>
    %208 = tpu.matmul %206, %207, %cst_66 {dimension_numbers = #tpu.dot_dimension_numbers<[1], [0], [0], [1], [0, 0, 1, 1], [], []>} : vector<8x128xbf16>, vector<128x512xbf16>, vector<8x512xf32> -> vector<8x512xf32>
    %209 = arith.addf %205, %208 : vector<8x512xf32>
    %210 = vector.extract_strided_slice %209 {offsets = [0, 0], sizes = [8, 128], strides = [1, 1]} : vector<8x512xf32> to vector<8x128xf32>
    %211 = arith.negf %210 : vector<8x128xf32>
    %212 = math.exp %211 : vector<8x128xf32>
    %cst_67 = arith.constant 1.000000e+00 : f32
    %213 = vector.broadcast %cst_67 : f32 to vector<8x128xf32>
    %214 = arith.addf %213, %212 : vector<8x128xf32>
    %215 = arith.divf %213, %214 : vector<8x128xf32>
    %216 = vector.extract_strided_slice %209 {offsets = [0, 128], sizes = [8, 128], strides = [1, 1]} : vector<8x512xf32> to vector<8x128xf32>
    %217 = arith.negf %216 : vector<8x128xf32>
    %218 = math.exp %217 : vector<8x128xf32>
    %cst_68 = arith.constant 1.000000e+00 : f32
    %219 = vector.broadcast %cst_68 : f32 to vector<8x128xf32>
    %220 = arith.addf %219, %218 : vector<8x128xf32>
    %221 = arith.divf %219, %220 : vector<8x128xf32>
    %222 = vector.extract_strided_slice %209 {offsets = [0, 256], sizes = [8, 128], strides = [1, 1]} : vector<8x512xf32> to vector<8x128xf32>
    %223 = math.tanh %222 : vector<8x128xf32>
    %224 = vector.extract_strided_slice %209 {offsets = [0, 384], sizes = [8, 128], strides = [1, 1]} : vector<8x512xf32> to vector<8x128xf32>
    %225 = arith.negf %224 : vector<8x128xf32>
    %226 = math.exp %225 : vector<8x128xf32>
    %cst_69 = arith.constant 1.000000e+00 : f32
    %227 = vector.broadcast %cst_69 : f32 to vector<8x128xf32>
    %228 = arith.addf %227, %226 : vector<8x128xf32>
    %229 = arith.divf %227, %228 : vector<8x128xf32>
    %230 = arith.mulf %221, %194 : vector<8x128xf32>
    %231 = arith.mulf %215, %223 : vector<8x128xf32>
    %232 = arith.addf %230, %231 : vector<8x128xf32>
    %233 = math.tanh %232 : vector<8x128xf32>
    %234 = arith.mulf %229, %233 : vector<8x128xf32>
    %235 = arith.truncf %234 : vector<8x128xf32> to vector<8x128xbf16>
    %236 = arith.index_cast %c5_i32 : i32 to index
    %c0_70 = arith.constant 0 : index
    %c0_71 = arith.constant 0 : index
    %237 = vector.load %arg5[%236, %c0_70, %c0_71] : memref<8x8x128xbf16, #tpu.memory_space<vmem>>, vector<1x8x128xbf16>
    %238 = vector.shape_cast %237 : vector<1x8x128xbf16> to vector<8x128xbf16>
    %239 = vector.shape_cast %235 : vector<8x128xbf16> to vector<1x8x128xbf16>
    tpu.vector_store %arg5[%236, %c0_70, %c0_71], %239 {strides = array<i32>} : memref<8x8x128xbf16, #tpu.memory_space<vmem>>, vector<1x8x128xbf16>,
    %c6_i32 = arith.constant 6 : i32
    %c8_i32_72 = arith.constant 8 : i32
    %240 = arith.muli %c6_i32, %c8_i32_72 : i32
    %241 = tpu.assume_multiple %240, 8 : i32
    %242 = arith.index_cast %241 : i32 to index
    %c0_73 = arith.constant 0 : index
    %243 = vector.load %arg8[%242, %c0_73] : memref<64x512xf32, #tpu.memory_space<vmem>>, vector<8x512xf32>
    %244 = arith.truncf %234 : vector<8x128xf32> to vector<8x128xbf16>
    %c0_74 = arith.constant 0 : index
    %c0_75 = arith.constant 0 : index
    %245 = vector.load %arg3[%c0_74, %c0_75] : memref<128x512xbf16, #tpu.memory_space<vmem>>, vector<128x512xbf16>
    %cst_76 = arith.constant dense<0.000000e+00> : vector<8x512xf32>
    %246 = tpu.matmul %244, %245, %cst_76 {dimension_numbers = #tpu.dot_dimension_numbers<[1], [0], [0], [1], [0, 0, 1, 1], [], []>} : vector<8x128xbf16>, vector<128x512xbf16>, vector<8x512xf32> -> vector<8x512xf32>
    %247 = arith.addf %243, %246 : vector<8x512xf32>
    %248 = vector.extract_strided_slice %247 {offsets = [0, 0], sizes = [8, 128], strides = [1, 1]} : vector<8x512xf32> to vector<8x128xf32>
    %249 = arith.negf %248 : vector<8x128xf32>
    %250 = math.exp %249 : vector<8x128xf32>
    %cst_77 = arith.constant 1.000000e+00 : f32
    %251 = vector.broadcast %cst_77 : f32 to vector<8x128xf32>
    %252 = arith.addf %251, %250 : vector<8x128xf32>
    %253 = arith.divf %251, %252 : vector<8x128xf32>
    %254 = vector.extract_strided_slice %247 {offsets = [0, 128], sizes = [8, 128], strides = [1, 1]} : vector<8x512xf32> to vector<8x128xf32>
    %255 = arith.negf %254 : vector<8x128xf32>
    %256 = math.exp %255 : vector<8x128xf32>
    %cst_78 = arith.constant 1.000000e+00 : f32
    %257 = vector.broadcast %cst_78 : f32 to vector<8x128xf32>
    %258 = arith.addf %257, %256 : vector<8x128xf32>
    %259 = arith.divf %257, %258 : vector<8x128xf32>
    %260 = vector.extract_strided_slice %247 {offsets = [0, 256], sizes = [8, 128], strides = [1, 1]} : vector<8x512xf32> to vector<8x128xf32>
    %261 = math.tanh %260 : vector<8x128xf32>
    %262 = vector.extract_strided_slice %247 {offsets = [0, 384], sizes = [8, 128], strides = [1, 1]} : vector<8x512xf32> to vector<8x128xf32>
    %263 = arith.negf %262 : vector<8x128xf32>
    %264 = math.exp %263 : vector<8x128xf32>
    %cst_79 = arith.constant 1.000000e+00 : f32
    %265 = vector.broadcast %cst_79 : f32 to vector<8x128xf32>
    %266 = arith.addf %265, %264 : vector<8x128xf32>
    %267 = arith.divf %265, %266 : vector<8x128xf32>
    %268 = arith.mulf %259, %232 : vector<8x128xf32>
    %269 = arith.mulf %253, %261 : vector<8x128xf32>
    %270 = arith.addf %268, %269 : vector<8x128xf32>
    %271 = math.tanh %270 : vector<8x128xf32>
    %272 = arith.mulf %267, %271 : vector<8x128xf32>
    %273 = arith.truncf %272 : vector<8x128xf32> to vector<8x128xbf16>
    %274 = arith.index_cast %c6_i32 : i32 to index
    %c0_80 = arith.constant 0 : index
    %c0_81 = arith.constant 0 : index
    %275 = vector.load %arg5[%274, %c0_80, %c0_81] : memref<8x8x128xbf16, #tpu.memory_space<vmem>>, vector<1x8x128xbf16>
    %276 = vector.shape_cast %275 : vector<1x8x128xbf16> to vector<8x128xbf16>
    %277 = vector.shape_cast %273 : vector<8x128xbf16> to vector<1x8x128xbf16>
    tpu.vector_store %arg5[%274, %c0_80, %c0_81], %277 {strides = array<i32>} : memref<8x8x128xbf16, #tpu.memory_space<vmem>>, vector<1x8x128xbf16>,
    %c7_i32 = arith.constant 7 : i32
    %c8_i32_82 = arith.constant 8 : i32
    %278 = arith.muli %c7_i32, %c8_i32_82 : i32
    %279 = tpu.assume_multiple %278, 8 : i32
    %280 = arith.index_cast %279 : i32 to index
    %c0_83 = arith.constant 0 : index
    %281 = vector.load %arg8[%280, %c0_83] : memref<64x512xf32, #tpu.memory_space<vmem>>, vector<8x512xf32>
    %282 = arith.truncf %272 : vector<8x128xf32> to vector<8x128xbf16>
    %c0_84 = arith.constant 0 : index
    %c0_85 = arith.constant 0 : index
    %283 = vector.load %arg3[%c0_84, %c0_85] : memref<128x512xbf16, #tpu.memory_space<vmem>>, vector<128x512xbf16>
    %cst_86 = arith.constant dense<0.000000e+00> : vector<8x512xf32>
    %284 = tpu.matmul %282, %283, %cst_86 {dimension_numbers = #tpu.dot_dimension_numbers<[1], [0], [0], [1], [0, 0, 1, 1], [], []>} : vector<8x128xbf16>, vector<128x512xbf16>, vector<8x512xf32> -> vector<8x512xf32>
    %285 = arith.addf %281, %284 : vector<8x512xf32>
    %286 = vector.extract_strided_slice %285 {offsets = [0, 0], sizes = [8, 128], strides = [1, 1]} : vector<8x512xf32> to vector<8x128xf32>
    %287 = arith.negf %286 : vector<8x128xf32>
    %288 = math.exp %287 : vector<8x128xf32>
    %cst_87 = arith.constant 1.000000e+00 : f32
    %289 = vector.broadcast %cst_87 : f32 to vector<8x128xf32>
    %290 = arith.addf %289, %288 : vector<8x128xf32>
    %291 = arith.divf %289, %290 : vector<8x128xf32>
    %292 = vector.extract_strided_slice %285 {offsets = [0, 128], sizes = [8, 128], strides = [1, 1]} : vector<8x512xf32> to vector<8x128xf32>
    %293 = arith.negf %292 : vector<8x128xf32>
    %294 = math.exp %293 : vector<8x128xf32>
    %cst_88 = arith.constant 1.000000e+00 : f32
    %295 = vector.broadcast %cst_88 : f32 to vector<8x128xf32>
    %296 = arith.addf %295, %294 : vector<8x128xf32>
    %297 = arith.divf %295, %296 : vector<8x128xf32>
    %298 = vector.extract_strided_slice %285 {offsets = [0, 256], sizes = [8, 128], strides = [1, 1]} : vector<8x512xf32> to vector<8x128xf32>
    %299 = math.tanh %298 : vector<8x128xf32>
    %300 = vector.extract_strided_slice %285 {offsets = [0, 384], sizes = [8, 128], strides = [1, 1]} : vector<8x512xf32> to vector<8x128xf32>
    %301 = arith.negf %300 : vector<8x128xf32>
    %302 = math.exp %301 : vector<8x128xf32>
    %cst_89 = arith.constant 1.000000e+00 : f32
    %303 = vector.broadcast %cst_89 : f32 to vector<8x128xf32>
    %304 = arith.addf %303, %302 : vector<8x128xf32>
    %305 = arith.divf %303, %304 : vector<8x128xf32>
    %306 = arith.mulf %297, %270 : vector<8x128xf32>
    %307 = arith.mulf %291, %299 : vector<8x128xf32>
    %308 = arith.addf %306, %307 : vector<8x128xf32>
    %309 = math.tanh %308 : vector<8x128xf32>
    %310 = arith.mulf %305, %309 : vector<8x128xf32>
    %311 = arith.truncf %310 : vector<8x128xf32> to vector<8x128xbf16>
    %312 = arith.index_cast %c7_i32 : i32 to index
    %c0_90 = arith.constant 0 : index
    %c0_91 = arith.constant 0 : index
    %313 = vector.load %arg5[%312, %c0_90, %c0_91] : memref<8x8x128xbf16, #tpu.memory_space<vmem>>, vector<1x8x128xbf16>
    %314 = vector.shape_cast %313 : vector<1x8x128xbf16> to vector<8x128xbf16>
    %315 = vector.shape_cast %311 : vector<8x128xbf16> to vector<1x8x128xbf16>
    tpu.vector_store %arg5[%312, %c0_90, %c0_91], %315 {strides = array<i32>} : memref<8x8x128xbf16, #tpu.memory_space<vmem>>, vector<1x8x128xbf16>,
    %c8_i32_92 = arith.constant 8 : i32
    %c0_93 = arith.constant 0 : index
    %c0_94 = arith.constant 0 : index
    %316 = vector.load %arg6[%c0_93, %c0_94] : memref<8x128xf32, #tpu.memory_space<vmem>>, vector<8x128xf32>
    tpu.vector_store %arg6[%c0_93, %c0_94], %310 {strides = array<i32>} : memref<8x128xf32, #tpu.memory_space<vmem>>, vector<8x128xf32>,
    %c0_95 = arith.constant 0 : index
    %c0_96 = arith.constant 0 : index
    %317 = vector.load %arg7[%c0_95, %c0_96] : memref<8x128xf32, #tpu.memory_space<vmem>>, vector<8x128xf32>
    tpu.vector_store %arg7[%c0_95, %c0_96], %308 {strides = array<i32>} : memref<8x128xf32, #tpu.memory_space<vmem>>, vector<8x128xf32>,
    return
  }
  func.func @transform_0(%arg0: i32) -> (i32, i32) {
    %c0_i32 = arith.constant 0 : i32
    %c0_i32_0 = arith.constant 0 : i32
    return %arg0, %c0_i32 : i32, i32
  }
  func.func @transform_1(%arg0: i32) -> (i32, i32) {
    %c0_i32 = arith.constant 0 : i32
    %c0_i32_0 = arith.constant 0 : i32
    %c0_i32_1 = arith.constant 0 : i32
    return %c0_i32, %c0_i32_0 : i32, i32
  }
  func.func @transform_2(%arg0: i32) -> (i32, i32) {
    %c0_i32 = arith.constant 0 : i32
    %c0_i32_0 = arith.constant 0 : i32
    %c0_i32_1 = arith.constant 0 : i32
    return %c0_i32, %c0_i32_0 : i32, i32
  }
  func.func @transform_3(%arg0: i32) -> (i32, i32) {
    %c0_i32 = arith.constant 0 : i32
    %c0_i32_0 = arith.constant 0 : i32
    %c0_i32_1 = arith.constant 0 : i32
    return %c0_i32, %c0_i32_0 : i32, i32
  }
  func.func @transform_4(%arg0: i32) -> (i32, i32, i32) {
    %c0_i32 = arith.constant 0 : i32
    %c0_i32_0 = arith.constant 0 : i32
    %c0_i32_1 = arith.constant 0 : i32
    return %arg0, %c0_i32, %c0_i32_0 : i32, i32, i32
  }
  func.func @transform_5(%arg0: i32) -> (i32, i32) {
    %c0_i32 = arith.constant 0 : i32
    %c0_i32_0 = arith.constant 0 : i32
    %c0_i32_1 = arith.constant 0 : i32
    return %c0_i32, %c0_i32_0 : i32, i32
  }
  func.func @transform_6(%arg0: i32) -> (i32, i32) {
    %c0_i32 = arith.constant 0 : i32
    %c0_i32_0 = arith.constant 0 : i32
    %c0_i32_1 = arith.constant 0 : i32
    return %c0_i32, %c0_i32_0 : i32, i32
  }
}

</mosaic_0001>

<bundles_post_ra>
// kernel: tpu_custom_call.1
= control target key start
LH: loop header
LB: loop body
LE: loop exit
PB: predicated region body
PF: predicated region fallthrough
CT: control target
= control target key end

     0   :  { %12 = vsyncpa [#allocation4], 0  ;;  %s4771_s0 = inlined_call_operand.vmem [shape: bf16[64,16], index: 0, kind: input, shape index: {}]   ;;  %s4772_s1 = inlined_call_operand.vmem [shape: bf16[16,512], index: 1, kind: input, shape index: {}]   ;;  %s4773_s2 = inlined_call_operand.hbm [shape: bf16[128,512], index: 2, kind: input, shape index: {}]   ;;  %s4774_s3 = inlined_call_operand.vmem [shape: f32[1,512], index: 3, kind: input, shape index: {}]   ;;  %s4775_s4 = inlined_call_operand.hbm [shape: bf16[8,8,128], index: 4, kind: output, shape index: {0}]   ;;  %s4776_s5 = inlined_call_operand.hbm [shape: f32[8,128], index: 5, kind: output, shape index: {1}]   ;;  %s4777_s6 = inlined_call_operand.hbm [shape: f32[8,128], index: 6, kind: output, shape index: {2}]  }
   0x1   :  { %13 = vsyncpa [#allocation5], 0 }
   0x2   :  { %14 = vsyncpa [#allocation8], 0  ;;  %s23_s23 = sshll.u32 %s4773_s2, 4  ;;  %s4496_s24 = smov [#allocation3]   ;;  %s24_s23 = int_to_ptr.hbm [resolvable:$true] %s23_s23 }
   0x3   :  { %s25_s25 = sshll.u32 %s4496_s24, 4  ;;  %s4497_s26 = smov 256   ;;  %s26_s25 = int_to_ptr.vmem [resolvable:$true] %s25_s25 }
   0x4   :  { %s4498_s27 = smov 16  }
   0x5   :  { %31 = dma.hbm_to_vmem [thread:$0]  %s24_s23, 4096, %s26_s25, [#allocation4], %s4497_s26, %s4497_s26, %s4498_s27  }
   0x6   :  { %4490 = dma.done.wait [#allocation4], 4096  }
   0x7   :  { %4491 = vsyncadd [#allocation4], 4294963200  ;;  %v2915_v0 = vld [vmem:[%s4772_s1] sm:$0xf]  ;;  %v3999_v1 = vld [vmem:[%s4772_s1 + $0xc] sm:$0xf0] }
   0x8   :  { %v3997_v2 = vld [vmem:[%s4772_s1 + $0x4] sm:$0xf]  ;;  %v2916_v3 = vor.u32 %v3999_v1, %v2915_v0  ;;  %v2917_v4 = vld [vmem:[%s4772_s1 + $0x10] sm:$0xf0]  ;;  %v2923_v5 = vld [vmem:[%s4772_s1 + $0x8] sm:$0xf] }
   0x9   :  { %v4000_v6 = vld [vmem:[%s4772_s1 + $0x14] sm:$0xf0]  ;;  %v2920_v7 = vor.u32 %v3997_v2, %v2917_v4  ;;  %v3998_v9 = vld [vmem:[%s4772_s1 + $0xc] sm:$0xf]  ;;  %v2925_v10 = vld [vmem:[%s4772_s1 + $0x18] sm:$0xf0] }
   0xa   :  { %v2924_v8 = vor.u32 %v4000_v6, %v2923_v5  ;;  %v3993_v11 = vld [vmem:[%s4771_s0] sm:$0xff]  ;;  %vm107_vm0 = vcmask 130048   ;;  %127 = vmatpush.bf16.msra.mxu0 %v2916_v3  ;;  %v2928_v12 = vor.u32 %v3998_v9, %v2925_v10  ;;  %v4031_v14 = vld [vmem:[#allocation3 + $0xec] sm:$0xf0]  ;;  %v3061_v17 = vld [vmem:[#allocation3 + $0xf0] sm:$0xf0] }
   0xb   :  { %v3059_v13 = vld [vmem:[#allocation3 + $0xe0] sm:$0xf]  ;;  %v4029_v15 = vld [vmem:[#allocation3 + $0xe4] sm:$0xf]  ;;  %156 = vmatpush.bf16.msra.mxu1 %v2920_v7  ;;  %v4030_v18 = vld [vmem:[#allocation3 + $0xec] sm:$0xf] }
   0xc   :  { %185 = vmatpush.bf16.msra.mxu2 %v2924_v8  ;;  %v3060_v16 = vor.u32 %v4031_v14, %v3059_v13  ;;  %v3069_v19 = vld [vmem:[#allocation3 + $0xf8] sm:$0xf0]  ;;  %214 = vmatpush.bf16.msra.mxu3 %v2928_v12  ;;  %v3064_v20 = vor.u32 %v4029_v15, %v3061_v17  ;;  %v3043_v22 = vld [vmem:[#allocation3 + $0xc0] sm:$0xf]  ;;  %v4027_v23 = vld [vmem:[#allocation3 + $0xcc] sm:$0xf0] }
   0xd   :  { %v3072_v21 = vor.u32 %v4030_v18, %v3069_v19  ;;  %v4025_v24 = vld [vmem:[#allocation3 + $0xc4] sm:$0xf]  ;;  %2929 = vmatmul.msk.bf16.vlgmr.msra.gmra.mxu0 %vm107_vm0, %v3993_v11  ;;  %v3045_v25 = vld [vmem:[#allocation3 + $0xd0] sm:$0xf0]  ;;  %v4026_v26 = vld [vmem:[#allocation3 + $0xcc] sm:$0xf]  ;;  %v3044_v30 = vor.u32 %v4027_v23, %v3043_v22 }
   0xe   :  { %v3053_v27 = vld [vmem:[#allocation3 + $0xd8] sm:$0xf0]  ;;  %2933 = vmatmul.msk.bf16.vlgmr.msra.gmra.mxu1 %vm107_vm0, %v3993_v11  ;;  %v3067_v28 = vld [vmem:[#allocation3 + $0xe8] sm:$0xf]  ;;  %v4032_v29 = vld [vmem:[#allocation3 + $0xf4] sm:$0xf0]  ;;  %470 = vmatpush.bf16.msrb.mxu0 %v3060_v16  ;;  %v3048_v34 = vor.u32 %v4025_v24, %v3045_v25 }
   0xf   :  { %2937 = vmatmul.msk.bf16.vlgmr.msra.gmra.mxu2 %vm107_vm0, %v3993_v11  ;;  %2941 = vmatmul.msk.bf16.vlgmr.msra.gmra.mxu3 %vm107_vm0, %v3993_v11  ;;  %v3068_v31 = vor.u32 %v4032_v29, %v3067_v28  ;;  %v3027_v32 = vld [vmem:[#allocation3 + $0xa0] sm:$0xf]  ;;  %v4023_v33 = vld [vmem:[#allocation3 + $0xac] sm:$0xf0]  ;;  %v3056_v35 = vor.u32 %v4026_v26, %v3053_v27  ;;  %v4021_v36 = vld [vmem:[#allocation3 + $0xa4] sm:$0xf] }
  0x10   :  { %483 = vmatpush.bf16.msrb.mxu1 %v3064_v20  ;;  %509 = vmatpush.bf16.msrb.mxu3 %v3072_v21  ;;  %v3029_v37 = vld [vmem:[#allocation3 + $0xb0] sm:$0xf0]  ;;  %v4022_v38 = vld [vmem:[#allocation3 + $0xac] sm:$0xf]  ;;  %v3037_v39 = vld [vmem:[#allocation3 + $0xb8] sm:$0xf0]  ;;  %v3028_v43 = vor.u32 %v4023_v33, %v3027_v32 }
  0x11   :  { %496 = vmatpush.bf16.msrb.mxu2 %v3068_v31  ;;  %v3051_v40 = vld [vmem:[#allocation3 + $0xc8] sm:$0xf]  ;;  %v4028_v41 = vld [vmem:[#allocation3 + $0xd4] sm:$0xf0]  ;;  %v3011_v44 = vld [vmem:[#allocation3 + $0x80] sm:$0xf]  ;;  %v3032_v46 = vor.u32 %v4021_v36, %v3029_v37  ;;  %v3040_v47 = vor.u32 %v4022_v38, %v3037_v39 }
  0x12   :  { %v3052_v42 = vor.u32 %v4028_v41, %v3051_v40  ;;  %471 = vmatpush.bf16.msrb.mxu0 %v3044_v30  ;;  %v3035_v45 = vld [vmem:[#allocation3 + $0xa8] sm:$0xf]  ;;  %v4019_v48 = vld [vmem:[#allocation3 + $0x8c] sm:$0xf0]  ;;  %v4017_v49 = vld [vmem:[#allocation3 + $0x84] sm:$0xf] }
  0x13   :  { %v4024_v50 = vld [vmem:[#allocation3 + $0xb4] sm:$0xf0]  ;;  %v3013_v51 = vld [vmem:[#allocation3 + $0x90] sm:$0xf0]  ;;  %v4018_v52 = vld [vmem:[#allocation3 + $0x8c] sm:$0xf]  ;;  %v3012_v57 = vor.u32 %v4019_v48, %v3011_v44 }
  0x14   :  { %484 = vmatpush.bf16.msrb.mxu1 %v3048_v34  ;;  %510 = vmatpush.bf16.msrb.mxu3 %v3056_v35  ;;  %v3021_v53 = vld [vmem:[#allocation3 + $0x98] sm:$0xf0]  ;;  %v3036_v54 = vor.u32 %v4024_v50, %v3035_v45  ;;  %v3019_v55 = vld [vmem:[#allocation3 + $0x88] sm:$0xf]  ;;  %v4020_v58 = vld [vmem:[#allocation3 + $0x94] sm:$0xf0]  ;;  %v3016_v59 = vor.u32 %v4017_v49, %v3013_v51 }
  0x15   :  { %497 = vmatpush.bf16.msrb.mxu2 %v3052_v42  ;;  %v3994_v56 = vld [vmem:[%s4771_s0 + $0x8] sm:$0xff]  ;;  %v3024_v60 = vor.u32 %v4018_v52, %v3021_v53  ;;  %v2995_v61 = vld [vmem:[#allocation3 + $0x60] sm:$0xf]  ;;  %v4015_v62 = vld [vmem:[#allocation3 + $0x6c] sm:$0xf0]  ;;  %v3020_v3 = vor.u32 %v4020_v58, %v3019_v55  ;;  %v4499_v48 = vmov 0.0|0.0  }
  0x16   :  { %472 = vmatpush.bf16.msrb.mxu0 %v3028_v43  ;;  %v4013_v63 = vld [vmem:[#allocation3 + $0x64] sm:$0xf]  ;;  %v2997_v0 = vld [vmem:[#allocation3 + $0x70] sm:$0xf0]  ;;  %v4014_v1 = vld [vmem:[#allocation3 + $0x6c] sm:$0xf]  ;;  %v2996_v6 = vor.u32 %v4015_v62, %v2995_v61 }
  0x17   :  { %v3005_v2 = vld [vmem:[#allocation3 + $0x78] sm:$0xf0]  ;;  %v3003_v4 = vld [vmem:[#allocation3 + $0x68] sm:$0xf]  ;;  %v4016_v5 = vld [vmem:[#allocation3 + $0x74] sm:$0xf0]  ;;  %v3000_v7 = vor.u32 %v4013_v63, %v2997_v0 }
  0x18   :  { %485 = vmatpush.bf16.msrb.mxu1 %v3032_v46  ;;  %511 = vmatpush.bf16.msrb.mxu3 %v3040_v47  ;;  %v3008_v8 = vor.u32 %v4014_v1, %v3005_v2  ;;  %v2979_v9 = vld [vmem:[#allocation3 + $0x40] sm:$0xf]  ;;  %v4011_v10 = vld [vmem:[#allocation3 + $0x4c] sm:$0xf0]  ;;  %v4009_v11 = vld [vmem:[#allocation3 + $0x44] sm:$0xf]  ;;  %v3004_v15 = vor.u32 %v4016_v5, %v3003_v4 }
  0x19   :  { %498 = vmatpush.bf16.msrb.mxu2 %v3036_v54  ;;  %v2981_v12 = vld [vmem:[#allocation3 + $0x50] sm:$0xf0]  ;;  %v4010_v13 = vld [vmem:[#allocation3 + $0x4c] sm:$0xf]  ;;  %v2989_v14 = vld [vmem:[#allocation3 + $0x58] sm:$0xf0]  ;;  %v2980_v16 = vor.u32 %v4011_v10, %v2979_v9 }
  0x1a   :  { %473 = vmatpush.bf16.msrb.mxu0 %v3012_v57  ;;  %v2963_v17 = vld [vmem:[#allocation3 + $0x20] sm:$0xf]  ;;  %v4007_v18 = vld [vmem:[#allocation3 + $0x2c] sm:$0xf0]  ;;  %v2984_v19 = vor.u32 %v4009_v11, %v2981_v12  ;;  %v2992_v20 = vor.u32 %v4010_v13, %v2989_v14  ;;  %v4005_v21 = vld [vmem:[#allocation3 + $0x24] sm:$0xf] }
  0x1b   :  { %v2987_v22 = vld [vmem:[#allocation3 + $0x48] sm:$0xf]  ;;  %v4012_v23 = vld [vmem:[#allocation3 + $0x54] sm:$0xf0]  ;;  %v2965_v24 = vld [vmem:[#allocation3 + $0x30] sm:$0xf0]  ;;  %v2964_v28 = vor.u32 %v4007_v18, %v2963_v17 }
  0x1c   :  { %486 = vmatpush.bf16.msrb.mxu1 %v3016_v59  ;;  %512 = vmatpush.bf16.msrb.mxu3 %v3024_v60  ;;  %v2988_v25 = vor.u32 %v4012_v23, %v2987_v22  ;;  %v4006_v26 = vld [vmem:[#allocation3 + $0x2c] sm:$0xf]  ;;  %v2973_v27 = vld [vmem:[#allocation3 + $0x38] sm:$0xf0]  ;;  %v2971_v29 = vld [vmem:[#allocation3 + $0x28] sm:$0xf]  ;;  %v2968_v31 = vor.u32 %v4005_v21, %v2965_v24 }
  0x1d   :  { %2930 = vmatmul.msk.bf16.gmra.mxu0 %vm107_vm0, %v3994_v56  ;;  %499 = vmatpush.bf16.msrb.mxu2 %v3020_v3  ;;  %v4008_v30 = vld [vmem:[#allocation3 + $0x34] sm:$0xf0]  ;;  %v2976_v32 = vor.u32 %v4006_v26, %v2973_v27  ;;  %v2947_v33 = vld [vmem:[#allocation3] sm:$0xf]  ;;  %v4003_v34 = vld [vmem:[#allocation3 + $0xc] sm:$0xf0] }
  0x1e   :  { %2934 = vmatmul.msk.bf16.gmra.mxu1 %vm107_vm0, %v3994_v56  ;;  %474 = vmatpush.bf16.msrb.mxu0 %v2996_v6  ;;  %v4001_v35 = vld [vmem:[#allocation3 + $0x4] sm:$0xf]  ;;  %v2949_v36 = vld [vmem:[#allocation3 + $0x10] sm:$0xf0]  ;;  %v2972_v37 = vor.u32 %v4008_v30, %v2971_v29  ;;  %v4002_v38 = vld [vmem:[#allocation3 + $0xc] sm:$0xf]  ;;  %v2948_v42 = vor.u32 %v4003_v34, %v2947_v33 }
  0x1f   :  { %2938 = vmatmul.msk.bf16.gmra.mxu2 %vm107_vm0, %v3994_v56  ;;  %2942 = vmatmul.msk.bf16.gmra.mxu3 %vm107_vm0, %v3994_v56  ;;  %v2957_v39 = vld [vmem:[#allocation3 + $0x18] sm:$0xf0]  ;;  %v2955_v40 = vld [vmem:[#allocation3 + $0x8] sm:$0xf]  ;;  %v4004_v41 = vld [vmem:[#allocation3 + $0x14] sm:$0xf0]  ;;  %v2952_v43 = vor.u32 %v4001_v35, %v2949_v36 }
  0x20   :  { %487 = vmatpush.bf16.msrb.mxu1 %v3000_v7  ;;  %513 = vmatpush.bf16.msrb.mxu3 %v3008_v8  ;;  %v2960_v44 = vor.u32 %v4002_v38, %v2957_v39  ;;  %v3995_v45 = vld [vmem:[%s4771_s0 + $0x10] sm:$0xff]  ;;  %v2956_v46 = vor.u32 %v4004_v41, %v2955_v40  ;;  %v3996_v47 = vld [vmem:[%s4771_s0 + $0x18] sm:$0xff]  ;;  %v57_v51 = vld [vmem:[%s4774_s3] sm:$0xf]  ;;  %s4500_s0 = smov [#allocation7]   ;;  %s2860_s30 = sshll.u32 %s4776_s5, 4  ;;  %s2861_s30 = int_to_ptr.hbm [resolvable:$true] %s2860_s30 }
  0x21   :  { %500 = vmatpush.bf16.msrb.mxu2 %v3004_v15  ;;  %v4602_v52 = vperm.slane %v57_v51, 0  ;;  %v4606_v54 = vperm.slane %v57_v51, 1  ;;  %v4616_v60 = vperm.slane %v57_v51, 2  ;;  %v4618_v61 = vperm.slane %v57_v51, 3  ;;  %v4061_v33 = vld [vmem:[#allocation3 + $0xe4] sm:$0xf] }
  0x22   :  { %475 = vmatpush.bf16.msrb.mxu0 %v2980_v16  ;;  %v3192_v38 = vld [vmem:[#allocation3 + $0xf0] sm:$0xf0]  ;;  %v3198_v39 = vld [vmem:[#allocation3 + $0xe8] sm:$0xf]  ;;  %v4064_v40 = vld [vmem:[#allocation3 + $0xf4] sm:$0xf0] }
  0x23   :  { %s2858_s3 = sshll.u32 %s4500_s0, 4  ;;  %s4501_s7 = smov [#allocation6]   ;;  %s2859_s3 = int_to_ptr.vmem [resolvable:$true] %s2858_s3 }
  0x24   :  { %488 = vmatpush.bf16.msrb.mxu1 %v2984_v19  ;;  %514 = vmatpush.bf16.msrb.mxu3 %v2992_v20  ;;  %s2844_s8 = sshll.u32 %s4501_s7, 4  ;;  %s2846_s10 = sshll.u32 %s4775_s4, 4  ;;  %s2845_s8 = int_to_ptr.vmem [resolvable:$true] %s2844_s8  ;;  %s2847_s10 = int_to_ptr.hbm [resolvable:$true] %s2846_s10 }
  0x25   :  { %501 = vmatpush.bf16.msrb.mxu2 %v2988_v25  ;;  %s4502_s11 = smov [#allocation9]   ;;  %s2871_s15 = sshll.u32 %s4777_s6, 4  ;;  %s2872_s15 = int_to_ptr.hbm [resolvable:$true] %s2871_s15 }
  0x26   :  { %476 = vmatpush.bf16.msrb.mxu0 %v2964_v28  ;;  %s2869_s12 = sshll.u32 %s4502_s11, 4  ;;  %s4503_s4 = smov 64   ;;  %s2870_s12 = int_to_ptr.vmem [resolvable:$true] %s2869_s12 }
  0x27   :  { %s4504_s5 = smov 4  }
  0x28   :  { %489 = vmatpush.bf16.msrb.mxu1 %v2968_v31  ;;  %515 = vmatpush.bf16.msrb.mxu3 %v2976_v32  ;;  %v3190_v31 = vld [vmem:[#allocation3 + $0xe0] sm:$0xf]  ;;  %v4063_v32 = vld [vmem:[#allocation3 + $0xec] sm:$0xf0] }
  0x29   :  { %502 = vmatpush.bf16.msrb.mxu2 %v2972_v37  ;;  %v3191_v37 = vor.u32 %v4063_v32, %v3190_v31  ;;  %v3160_v32 = vld [vmem:[#allocation3 + $0xb0] sm:$0xf0] }
  0x2a   :  { %477 = vmatpush.bf16.msrb.mxu0 %v2948_v42 }
  0x2c   :  { %490 = vmatpush.bf16.msrb.mxu1 %v2952_v43  ;;  %516 = vmatpush.bf16.msrb.mxu3 %v2960_v44  ;;  %v3195_v44 = vor.u32 %v4061_v33, %v3192_v38  ;;  %v3166_v33 = vld [vmem:[#allocation3 + $0xa8] sm:$0xf] }
  0x2d   :  { %2931 = vmatmul.msk.bf16.gmra.mxu0 %vm107_vm0, %v3995_v45  ;;  %503 = vmatpush.bf16.msrb.mxu2 %v2956_v46  ;;  %v4062_v46 = vld [vmem:[#allocation3 + $0xec] sm:$0xf] }
  0x2e   :  { %2935 = vmatmul.msk.bf16.gmra.mxu1 %vm107_vm0, %v3995_v45  ;;  %790 = vmatpush.bf16.msra.mxu0 %v3191_v37 }
  0x2f   :  { %2939 = vmatmul.msk.bf16.gmra.mxu2 %vm107_vm0, %v3995_v45  ;;  %2943 = vmatmul.msk.bf16.gmra.mxu3 %vm107_vm0, %v3995_v45  ;;  %v3199_v45 = vor.u32 %v4064_v40, %v3198_v39 }
  0x30   :  { %803 = vmatpush.bf16.msra.mxu1 %v3195_v44  ;;  %v3168_v44 = vld [vmem:[#allocation3 + $0xb8] sm:$0xf0] }
  0x31   :  { %816 = vmatpush.bf16.msra.mxu2 %v3199_v45 }
  0x3d   :  { %2932 = vmatmul.msk.bf16.gmra.mxu0 %vm107_vm0, %v3996_v47 }
  0x3e   :  { %2936 = vmatmul.msk.bf16.gmra.mxu1 %vm107_vm0, %v3996_v47 }
  0x3f   :  { %2940 = vmatmul.msk.bf16.gmra.mxu2 %vm107_vm0, %v3996_v47  ;;  %2944 = vmatmul.msk.bf16.gmra.mxu3 %vm107_vm0, %v3996_v47  ;;  %v3200_v47 = vld [vmem:[#allocation3 + $0xf8] sm:$0xf0] }
  0x40   :  { %v3203_v51 = vor.u32 %v4062_v46, %v3200_v47  ;;  %v3142_v47 = vld [vmem:[#allocation3 + $0x80] sm:$0xf] }
  0x42   :  { %829 = vmatpush.bf16.msra.mxu3 %v3203_v51  ;;  %v4051_v51 = vld [vmem:[#allocation3 + $0x8c] sm:$0xf0] }
  0x4d   :  { %478 = vmatmul.bf16.vlgmr.msrb.gmra.mxu0 %v4499_v48 }
  0x4e   :  { %491 = vmatmul.bf16.vlgmr.msrb.gmra.mxu1 %v4499_v48 }
  0x4f   :  { %504 = vmatmul.bf16.vlgmr.msrb.gmra.mxu2 %v4499_v48  ;;  %517 = vmatmul.bf16.vlgmr.msrb.gmra.mxu3 %v4499_v48 }
  0x8a   :  { %v4595_v49 = vpop.f32.mrf.mxu0 }
  0x8b   :  { %v4597_v50 = vpop.f32.mrf.mxu1 }
  0x92   :  { %v4604_v53 = vpop.f32.mrf.mxu2  ;;  %v4608_v55 = vpop.f32.mrf.mxu3 }
  0x93   :  { %v131_v56 = vpop.f32.mrf.mxu0  ;;  %v160_v58 = vpop.f32.mrf.mxu1 }
  0x94   :  { %v4611_v57 = vadd.f32 %v131_v56, %v4602_v52  ;;  %v4614_v59 = vadd.f32 %v160_v58, %v4606_v54  ;;  %v3174_v56 = vld [vmem:[#allocation3 + $0xc0] sm:$0xf]  ;;  %v4059_v58 = vld [vmem:[#allocation3 + $0xcc] sm:$0xf0] }
  0x9a   :  { %v189_v62 = vpop.f32.mrf.mxu2  ;;  %v218_v0 = vpop.f32.mrf.mxu3 }
  0x9b   :  { %v4621_v63 = vadd.f32 %v189_v62, %v4616_v60  ;;  %v134_v1 = vpop.f32.mrf.mxu0  ;;  %v4624_v2 = vadd.f32 %v218_v0, %v4618_v61  ;;  %v163_v4 = vpop.f32.mrf.mxu1  ;;  %v4057_v62 = vld [vmem:[#allocation3 + $0xc4] sm:$0xf]  ;;  %v3175_v0 = vor.u32 %v4059_v58, %v3174_v56  ;;  %v3143_v58 = vor.u32 %v4051_v51, %v3142_v47  ;;  %v3110_v51 = vld [vmem:[#allocation3 + $0x40] sm:$0xf] }
  0x9c   :  { %v4627_v3 = vadd.f32 %v134_v1, %v4602_v52  ;;  %v4630_v5 = vadd.f32 %v163_v4, %v4606_v54  ;;  %v3176_v1 = vld [vmem:[#allocation3 + $0xd0] sm:$0xf0]  ;;  %v3182_v4 = vld [vmem:[#allocation3 + $0xc8] sm:$0xf]  ;;  %v4049_v56 = vld [vmem:[#allocation3 + $0x84] sm:$0xf] }
  0x9d   :  { %791 = vmatpush.bf16.msra.mxu0 %v3175_v0  ;;  %v3150_v0 = vld [vmem:[#allocation3 + $0x88] sm:$0xf] }
  0xa2   :  { %v192_v6 = vpop.f32.mrf.mxu2  ;;  %v221_v8 = vpop.f32.mrf.mxu3 }
  0xa3   :  { %v4633_v7 = vadd.f32 %v192_v6, %v4616_v60  ;;  %v136_v9 = vpop.f32.mrf.mxu0  ;;  %v4636_v10 = vadd.f32 %v221_v8, %v4618_v61  ;;  %v165_v12 = vpop.f32.mrf.mxu1  ;;  %v4060_v6 = vld [vmem:[#allocation3 + $0xd4] sm:$0xf0]  ;;  %v3179_v8 = vor.u32 %v4057_v62, %v3176_v1  ;;  %v3144_v62 = vld [vmem:[#allocation3 + $0x90] sm:$0xf0] }
  0xa4   :  { %v4639_v11 = vadd.f32 %v136_v9, %v4602_v52  ;;  %v4642_v13 = vadd.f32 %v165_v12, %v4606_v54  ;;  %v3183_v9 = vor.u32 %v4060_v6, %v3182_v4  ;;  %v4058_v12 = vld [vmem:[#allocation3 + $0xcc] sm:$0xf]  ;;  %v4052_v1 = vld [vmem:[#allocation3 + $0x94] sm:$0xf0]  ;;  %v3147_v4 = vor.u32 %v4049_v56, %v3144_v62  ;;  %v4043_v56 = vld [vmem:[#allocation3 + $0x4c] sm:$0xf0] }
  0xa5   :  { %804 = vmatpush.bf16.msra.mxu1 %v3179_v8  ;;  %v3151_v6 = vor.u32 %v4052_v1, %v3150_v0  ;;  %v4050_v8 = vld [vmem:[#allocation3 + $0x8c] sm:$0xf]  ;;  %v3111_v62 = vor.u32 %v4043_v56, %v3110_v51  ;;  %v4041_v0 = vld [vmem:[#allocation3 + $0x44] sm:$0xf]  ;;  %v3112_v1 = vld [vmem:[#allocation3 + $0x50] sm:$0xf0] }
  0xa6   :  { %817 = vmatpush.bf16.msra.mxu2 %v3183_v9  ;;  %v3152_v9 = vld [vmem:[#allocation3 + $0x98] sm:$0xf0]  ;;  %v3080_v56 = vld [vmem:[#allocation3 + $0x10] sm:$0xf0] }
  0xaa   :  { %v194_v14 = vpop.f32.mrf.mxu2  ;;  %v223_v16 = vpop.f32.mrf.mxu3 }
  0xab   :  { %v4645_v15 = vadd.f32 %v194_v14, %v4616_v60  ;;  %v139_v17 = vpop.f32.mrf.mxu0  ;;  %v4648_v18 = vadd.f32 %v223_v16, %v4618_v61  ;;  %v168_v20 = vpop.f32.mrf.mxu1  ;;  %v3184_v14 = vld [vmem:[#allocation3 + $0xd8] sm:$0xf0] }
  0xac   :  { %v4651_v19 = vadd.f32 %v139_v17, %v4602_v52  ;;  %v4654_v21 = vadd.f32 %v168_v20, %v4606_v54  ;;  %v3187_v16 = vor.u32 %v4058_v12, %v3184_v14  ;;  %v3158_v20 = vld [vmem:[#allocation3 + $0xa0] sm:$0xf]  ;;  %v3155_v12 = vor.u32 %v4050_v8, %v3152_v9  ;;  %v4044_v8 = vld [vmem:[#allocation3 + $0x54] sm:$0xf0]  ;;  %v4042_v9 = vld [vmem:[#allocation3 + $0x4c] sm:$0xf] }
  0xad   :  { %v130_v14 = vadd.f32 %v4595_v49, %v4602_v52 }
  0xae   :  { %830 = vmatpush.bf16.msra.mxu3 %v3187_v16 }
  0xb2   :  { %v197_v22 = vpop.f32.mrf.mxu2  ;;  %v226_v24 = vpop.f32.mrf.mxu3 }
  0xb3   :  { %v4657_v23 = vadd.f32 %v197_v22, %v4616_v60  ;;  %v141_v25 = vpop.f32.mrf.mxu0  ;;  %v4660_v26 = vadd.f32 %v226_v24, %v4618_v61  ;;  %v170_v28 = vpop.f32.mrf.mxu1  ;;  %v4055_v22 = vld [vmem:[#allocation3 + $0xac] sm:$0xf0]  ;;  %v4053_v24 = vld [vmem:[#allocation3 + $0xa4] sm:$0xf] }
  0xb4   :  { %v4663_v27 = vadd.f32 %v141_v25, %v4602_v52  ;;  %v4666_v29 = vadd.f32 %v170_v28, %v4606_v54  ;;  %v3159_v31 = vor.u32 %v4055_v22, %v3158_v20  ;;  %v3163_v39 = vor.u32 %v4053_v24, %v3160_v32  ;;  %v4047_v20 = vld [vmem:[#allocation3 + $0x6c] sm:$0xf0]  ;;  %v4045_v22 = vld [vmem:[#allocation3 + $0x64] sm:$0xf] }
  0xb5   :  { %v159_v24 = vadd.f32 %v4597_v50, %v4606_v54 }
  0xb6   :  { %792 = vmatpush.bf16.msra.mxu0 %v3159_v31  ;;  %805 = vmatpush.bf16.msra.mxu1 %v3163_v39 }
  0xba   :  { %v199_v30 = vpop.f32.mrf.mxu2  ;;  %v228_v35 = vpop.f32.mrf.mxu3  ;;  %793 = vmatpush.bf16.msra.mxu0 %v3143_v58  ;;  %806 = vmatpush.bf16.msra.mxu1 %v3147_v4  ;;  %v3115_v4 = vor.u32 %v4041_v0, %v3112_v1 }
  0xbb   :  { %v4669_v34 = vadd.f32 %v199_v30, %v4616_v60  ;;  %v144_v36 = vpop.f32.mrf.mxu0  ;;  %v4672_v41 = vadd.f32 %v228_v35, %v4618_v61  ;;  %v173_v43 = vpop.f32.mrf.mxu1  ;;  %v4056_v35 = vld [vmem:[#allocation3 + $0xb4] sm:$0xf0] }
  0xbc   :  { %v4675_v42 = vadd.f32 %v144_v36, %v4602_v52  ;;  %v4678_v48 = vadd.f32 %v173_v43, %v4606_v54  ;;  %v3167_v40 = vor.u32 %v4056_v35, %v3166_v33  ;;  %v4054_v43 = vld [vmem:[#allocation3 + $0xac] sm:$0xf]  ;;  %v3128_v33 = vld [vmem:[#allocation3 + $0x70] sm:$0xf0]  ;;  %v3134_v35 = vld [vmem:[#allocation3 + $0x68] sm:$0xf] }
  0xbd   :  { %v3171_v46 = vor.u32 %v4054_v43, %v3168_v44  ;;  %v4046_v44 = vld [vmem:[#allocation3 + $0x6c] sm:$0xf] }
  0xbe   :  { %818 = vmatpush.bf16.msra.mxu2 %v3167_v40  ;;  %v3131_v40 = vor.u32 %v4045_v22, %v3128_v33  ;;  %v3102_v33 = vld [vmem:[#allocation3 + $0x28] sm:$0xf] }
  0xbf   :  { %831 = vmatpush.bf16.msra.mxu3 %v3171_v46  ;;  %v3136_v46 = vld [vmem:[#allocation3 + $0x78] sm:$0xf0] }
  0xc0   :  { %807 = vmatpush.bf16.msra.mxu1 %v3131_v40  ;;  %v4038_v40 = vld [vmem:[#allocation3 + $0x2c] sm:$0xf] }
  0xc2   :  { %v202_v17 = vpop.f32.mrf.mxu2  ;;  %v231_v28 = vpop.f32.mrf.mxu3  ;;  %819 = vmatpush.bf16.msra.mxu2 %v3151_v6  ;;  %v3118_v6 = vld [vmem:[#allocation3 + $0x48] sm:$0xf] }
  0xc3   :  { %v4681_v25 = vadd.f32 %v202_v17, %v4616_v60  ;;  %v146_v30 = vpop.f32.mrf.mxu0  ;;  %v4684_v36 = vadd.f32 %v231_v28, %v4618_v61  ;;  %v175_v38 = vpop.f32.mrf.mxu1  ;;  %v3126_v17 = vld [vmem:[#allocation3 + $0x60] sm:$0xf]  ;;  %832 = vmatpush.bf16.msra.mxu3 %v3155_v12  ;;  %v3119_v12 = vor.u32 %v4044_v8, %v3118_v6  ;;  %v4034_v6 = vld [vmem:[#allocation3 + $0xc] sm:$0xf]  ;;  %v3088_v8 = vld [vmem:[#allocation3 + $0x18] sm:$0xf0] }
  0xc4   :  { %v4687_v37 = vadd.f32 %v146_v30, %v4602_v52  ;;  %v4690_v45 = vadd.f32 %v175_v38, %v4606_v54  ;;  %v3127_v32 = vor.u32 %v4047_v20, %v3126_v17  ;;  %v4048_v38 = vld [vmem:[#allocation3 + $0x74] sm:$0xf0]  ;;  %v3139_v54 = vor.u32 %v4046_v44, %v3136_v46  ;;  %v4039_v17 = vld [vmem:[#allocation3 + $0x2c] sm:$0xf0]  ;;  %808 = vmatpush.bf16.msra.mxu1 %v3115_v4 }
  0xc5   :  { %v3135_v43 = vor.u32 %v4048_v38, %v3134_v35  ;;  %v217_v20 = vadd.f32 %v4608_v55, %v4618_v61  ;;  %v3078_v55 = vld [vmem:[#allocation3] sm:$0xf] }
  0xc6   :  { %794 = vmatpush.bf16.msra.mxu0 %v3127_v32  ;;  %v3096_v32 = vld [vmem:[#allocation3 + $0x30] sm:$0xf0] }
  0xc7   :  { %820 = vmatpush.bf16.msra.mxu2 %v3135_v43  ;;  %833 = vmatpush.bf16.msra.mxu3 %v3139_v54  ;;  %v3104_v43 = vld [vmem:[#allocation3 + $0x38] sm:$0xf0] }
  0xc8   :  { %v3107_v54 = vor.u32 %v4038_v40, %v3104_v43 }
  0xca   :  { %v204_v16 = vpop.f32.mrf.mxu2  ;;  %v233_v30 = vpop.f32.mrf.mxu3  ;;  %795 = vmatpush.bf16.msra.mxu0 %v3111_v62  ;;  %v4036_v62 = vld [vmem:[#allocation3 + $0x14] sm:$0xf0] }
  0xcb   :  { %v4697_v28 = vadd.f32 %v204_v16, %v4616_v60  ;;  %v479_v31 = vpop.f32.mrf.mxu0  ;;  %v4700_v49 = vadd.f32 %v233_v30, %v4618_v61  ;;  %v492_v39 = vpop.f32.mrf.mxu1  ;;  %v3094_v16 = vld [vmem:[#allocation3 + $0x20] sm:$0xf]  ;;  %821 = vmatpush.bf16.msra.mxu2 %v3119_v12  ;;  %v4035_v61 = vld [vmem:[#allocation3 + $0xc] sm:$0xf0] }
  0xcc   :  { %v522_v52 = vadd.f32 %v479_v31, %v130_v14  ;;  %v523_v50 = vadd.f32 %v492_v39, %v159_v24  ;;  %v3120_v14 = vld [vmem:[#allocation3 + $0x58] sm:$0xf0]  ;;  %v3095_v30 = vor.u32 %v4039_v17, %v3094_v16  ;;  %v4037_v31 = vld [vmem:[#allocation3 + $0x24] sm:$0xf]  ;;  %v4040_v39 = vld [vmem:[#allocation3 + $0x34] sm:$0xf0]  ;;  %v3079_v51 = vor.u32 %v4035_v61, %v3078_v55 }
  0xcd   :  { %v3123_v24 = vor.u32 %v4042_v9, %v3120_v14  ;;  %v3091_v17 = vor.u32 %v4034_v6, %v3088_v8 }
  0xce   :  { %v3073_v47 = vmul.f32 -1.442695, %v522_v52  ;;  %v3074_v58 = vmul.f32 -1.442695, %v523_v50  ;;  %v3099_v52 = vor.u32 %v4037_v31, %v3096_v32  ;;  %v3103_v50 = vor.u32 %v4040_v39, %v3102_v33  ;;  %796 = vmatpush.bf16.msra.mxu0 %v3095_v30 }
  0xcf   :  { %834 = vmatpush.bf16.msra.mxu3 %v3123_v24  ;;  %v188_v30 = vadd.f32 %v4604_v53, %v4616_v60 }
  0xd0   :  { %4266 = vpow2.f32 %v3073_v47  ;;  %v4033_v47 = vld [vmem:[#allocation3 + $0x4] sm:$0xf]  ;;  %809 = vmatpush.bf16.msra.mxu1 %v3099_v52  ;;  %822 = vmatpush.bf16.msra.mxu2 %v3103_v50 }
  0xd1   :  { %4268 = vpow2.f32 %v3074_v58  ;;  %v3086_v58 = vld [vmem:[#allocation3 + $0x8] sm:$0xf]  ;;  %v3083_v4 = vor.u32 %v4033_v47, %v3080_v56 }
  0xd2   :  { %v505_v22 = vpop.f32.mrf.mxu2  ;;  %v518_v35 = vpop.f32.mrf.mxu3  ;;  %v3087_v14 = vor.u32 %v4036_v62, %v3086_v58  ;;  %797 = vmatpush.bf16.msra.mxu0 %v3079_v51 }
  0xd3   :  { %v481_v38 = vpop.f32.mrf.mxu0  ;;  %v525_v44 = vadd.f32 %v518_v35, %v217_v20  ;;  %v494_v46 = vpop.f32.mrf.mxu1  ;;  %835 = vmatpush.bf16.msra.mxu3 %v3107_v54  ;;  %v524_v33 = vadd.f32 %v505_v22, %v188_v30 }
  0xd4   :  { %810 = vmatpush.bf16.msra.mxu1 %v3083_v4  ;;  %823 = vmatpush.bf16.msra.mxu2 %v3087_v14 }
  0xd5   :  { %v3075_v1 = vmul.f32 -1.442695, %v525_v44 }
  0xd6   :  { %v4267_v0 = vpop.eup %4266 }
  0xd7   :  { %v4269_v9 = vpop.eup %4268  ;;  %v529_v12 = vadd.f32 1.0, %v4267_v0  ;;  %4270 = vpow2.f32 %v3075_v1  ;;  %836 = vmatpush.bf16.msra.mxu3 %v3091_v17 }
  0xd8   :  { %v548_v16 = vadd.f32 1.0, %v4269_v9 }
  0xd9   :  { %4272 = vrcp.f32 %v529_v12  ;;  %v541_v44 = vand.u32 2147483648, %v529_v12  ;;  %v539_v54 = vand.u32 2147483647, %v529_v12  ;;  %vm535_vm3 = vweird.f32 %v529_v12 }
  0xda   :  { %4274 = vrcp.f32 %v548_v16  ;;  %v507_v20 = vpop.f32.mrf.mxu2  ;;  %v520_v24 = vpop.f32.mrf.mxu3  ;;  %v560_v46 = vand.u32 2147483648, %v548_v16  ;;  %v558_v61 = vand.u32 2147483647, %v548_v16  ;;  %vm554_vm4 = vweird.f32 %v548_v16 }
  0xdb   :  { %v542_v22 = vor.u32 1.1754944e-38, %v541_v44  ;;  %vm540_vm7 = vcmp.eq.f32.partialorder %v539_v54, 8.507059e+37  ;;  %v3323_v44 = vld [vmem:[#allocation3 + $0xf0] sm:$0xf0] }
  0xdc   :  { %v561_v51 = vor.u32 1.1754944e-38, %v560_v46  ;;  %vm559_vm8 = vcmp.eq.f32.partialorder %v558_v61, 8.507059e+37  ;;  %v3329_v46 = vld [vmem:[#allocation3 + $0xe8] sm:$0xf]  ;;  %v3331_v61 = vld [vmem:[#allocation3 + $0xf8] sm:$0xf0] }
  0xdd   :  { %v4271_v31 = vpop.eup %4270 }
  0xde   :  { %v568_v35 = vadd.f32 1.0, %v4271_v31 }
  0xdf   :  { %v4273_v32 = vpop.eup %4272 }
  0xe0   :  { %v4275_v38 = vpop.eup %4274  ;;  %v531_v52 = vmul.f32 %v4273_v32, %v529_v12  ;;  %4276 = vrcp.f32 %v568_v35  ;;  %vm536_vm1 = vweird.f32 %v4273_v32  ;;  %v580_v17 = vand.u32 2147483648, %v568_v35 }
  0xe1   :  { %v550_v39 = vmul.f32 %v4275_v38, %v548_v16  ;;  %4278 = vtanh.f32 %v524_v33  ;;  %vm555_vm2 = vweird.f32 %v4275_v38  ;;  %vm537_vm5 = vmor %vm535_vm3, %vm536_vm1  ;;  %vm574_vm10 = vweird.f32 %v568_v35 }
  0xe2   :  { %v532_v40 = vsub.f32 1.0, %v531_v52  ;;  %vm556_vm6 = vmor %vm554_vm4, %vm555_vm2  ;;  %v578_v20 = vand.u32 2147483647, %v568_v35  ;;  %v581_v30 = vor.u32 1.1754944e-38, %v580_v17  ;;  %v3321_v52 = vld [vmem:[#allocation3 + $0xe0] sm:$0xf] }
  0xe3   :  { %v551_v43 = vsub.f32 1.0, %v550_v39  ;;  %v4095_v39 = vld [vmem:[#allocation3 + $0xec] sm:$0xf0] }
  0xe4   :  { %v533_v50 = vmul.f32 %v4273_v32, %v532_v40  ;;  %vm579_vm12 = vcmp.eq.f32.partialorder %v578_v20, 8.507059e+37  ;;  %v4093_v40 = vld [vmem:[#allocation3 + $0xe4] sm:$0xf]  ;;  %v3291_v20 = vld [vmem:[#allocation3 + $0xb0] sm:$0xf0] }
  0xe5   :  { %v552_v55 = vmul.f32 %v4275_v38, %v551_v43  ;;  %v3322_v43 = vor.u32 %v4095_v39, %v3321_v52  ;;  %v3273_v39 = vld [vmem:[#allocation3 + $0x80] sm:$0xf] }
  0xe6   :  { %v534_v53 = vadd.f32 %v4273_v32, %v533_v50  ;;  %v4277_v60 = vpop.eup %4276  ;;  %v3326_v50 = vor.u32 %v4093_v40, %v3323_v44  ;;  %v4083_v40 = vld [vmem:[#allocation3 + $0x8c] sm:$0xf0] }
  0xe7   :  { %v553_v47 = vadd.f32 %v4275_v38, %v552_v55  ;;  %v570_v58 = vmul.f32 %v4277_v60, %v568_v35  ;;  %v4279_v62 = vpop.eup %4278  ;;  %vm575_vm9 = vweird.f32 %v4277_v60  ;;  %v4096_v35 = vld [vmem:[#allocation3 + $0xf4] sm:$0xf0]  ;;  %v4094_v55 = vld [vmem:[#allocation3 + $0xec] sm:$0xf]  ;;  %1111 = vmatpush.bf16.msrb.mxu0 %v3322_v43  ;;  %v4081_v43 = vld [vmem:[#allocation3 + $0x84] sm:$0xf]  ;;  %v3274_v44 = vor.u32 %v4083_v40, %v3273_v39 }
  0xe8   :  { %v538_v56 = vsel %vm537_vm5, %v4273_v32, %v534_v53  ;;  %vm576_vm11 = vmor %vm574_vm10, %vm575_vm9  ;;  %v3330_v54 = vor.u32 %v4096_v35, %v3329_v46  ;;  %v3334_v53 = vor.u32 %v4094_v55, %v3331_v61  ;;  %1124 = vmatpush.bf16.msrb.mxu1 %v3326_v50  ;;  %v3275_v46 = vld [vmem:[#allocation3 + $0x90] sm:$0xf0]  ;;  %v3281_v35 = vld [vmem:[#allocation3 + $0x88] sm:$0xf] }
  0xe9   :  { %v543_v0 = vsel %vm540_vm7, %v542_v22, %v538_v56  ;;  %v557_v1 = vsel %vm556_vm6, %v4275_v38, %v553_v47  ;;  %v571_v8 = vsub.f32 1.0, %v570_v58  ;;  %v4091_v22 = vld [vmem:[#allocation3 + $0xcc] sm:$0xf0]  ;;  %v4089_v47 = vld [vmem:[#allocation3 + $0xc4] sm:$0xf] }
  0xea   :  { %v562_v4 = vsel %vm559_vm8, %v561_v51, %v557_v1  ;;  %v585_v6 = vmul.f32 %v4279_v62, %v543_v0  ;;  %1137 = vmatpush.bf16.msrb.mxu2 %v3330_v54  ;;  %1150 = vmatpush.bf16.msrb.mxu3 %v3334_v53  ;;  %v3307_v56 = vld [vmem:[#allocation3 + $0xd0] sm:$0xf0]  ;;  %v3313_v58 = vld [vmem:[#allocation3 + $0xc8] sm:$0xf]  ;;  %v4092_v62 = vld [vmem:[#allocation3 + $0xd4] sm:$0xf0]  ;;  %v3278_v54 = vor.u32 %v4081_v43, %v3275_v46 }
  0xeb   :  { %v584_v9 = vmul.f32 0.0, %v562_v4  ;;  %v572_v14 = vmul.f32 %v4277_v60, %v571_v8  ;;  %v3310_v0 = vor.u32 %v4089_v47, %v3307_v56  ;;  %v3314_v1 = vor.u32 %v4092_v62, %v3313_v58  ;;  %v4090_v4 = vld [vmem:[#allocation3 + $0xcc] sm:$0xf]  ;;  %v4084_v50 = vld [vmem:[#allocation3 + $0x94] sm:$0xf0] }
  0xec   :  { %v3282_v55 = vor.u32 %v4084_v50, %v3281_v35  ;;  %v4082_v61 = vld [vmem:[#allocation3 + $0x8c] sm:$0xf]  ;;  %v3283_v53 = vld [vmem:[#allocation3 + $0x98] sm:$0xf0]  ;;  %v4079_v47 = vld [vmem:[#allocation3 + $0x6c] sm:$0xf0] }
  0xed   :  { %v4706_v12 = vadd.f32 %v585_v6, %v584_v9  ;;  %v573_v16 = vadd.f32 %v4277_v60, %v572_v14  ;;  %v3315_v6 = vld [vmem:[#allocation3 + $0xd8] sm:$0xf0]  ;;  %1125 = vmatpush.bf16.msrb.mxu1 %v3310_v0  ;;  %v3289_v9 = vld [vmem:[#allocation3 + $0xa0] sm:$0xf]  ;;  %v4087_v14 = vld [vmem:[#allocation3 + $0xac] sm:$0xf0] }
  0xee   :  { %v3318_v8 = vor.u32 %v4090_v4, %v3315_v6  ;;  %1138 = vmatpush.bf16.msrb.mxu2 %v3314_v1  ;;  %v3290_v17 = vor.u32 %v4087_v14, %v3289_v9  ;;  %v3259_v58 = vld [vmem:[#allocation3 + $0x70] sm:$0xf0]  ;;  %v3265_v62 = vld [vmem:[#allocation3 + $0x68] sm:$0xf]  ;;  %v4080_v0 = vld [vmem:[#allocation3 + $0x74] sm:$0xf0] }
  0xef   :  { %4280 = vtanh.f32 %v4706_v12  ;;  %v577_v24 = vsel %vm576_vm11, %v4277_v60, %v573_v16  ;;  %v3305_v60 = vld [vmem:[#allocation3 + $0xc0] sm:$0xf]  ;;  %v4085_v16 = vld [vmem:[#allocation3 + $0xa4] sm:$0xf]  ;;  %v4078_v9 = vld [vmem:[#allocation3 + $0x6c] sm:$0xf] }
  0xf0   :  { %v582_v32 = vsel %vm579_vm12, %v581_v30, %v577_v24  ;;  %v3306_v51 = vor.u32 %v4091_v22, %v3305_v60  ;;  %1151 = vmatpush.bf16.msrb.mxu3 %v3318_v8  ;;  %v3297_v24 = vld [vmem:[#allocation3 + $0xa8] sm:$0xf]  ;;  %v4088_v30 = vld [vmem:[#allocation3 + $0xb4] sm:$0xf0]  ;;  %v3286_v60 = vor.u32 %v4082_v61, %v3283_v53  ;;  %v3257_v22 = vld [vmem:[#allocation3 + $0x60] sm:$0xf]  ;;  %v3266_v8 = vor.u32 %v4080_v0, %v3265_v62 }
  0xf1   :  { %v3258_v56 = vor.u32 %v4079_v47, %v3257_v22  ;;  %v3267_v14 = vld [vmem:[#allocation3 + $0x78] sm:$0xf0]  ;;  %v3249_v40 = vld [vmem:[#allocation3 + $0x48] sm:$0xf]  ;;  %v4076_v43 = vld [vmem:[#allocation3 + $0x54] sm:$0xf0] }
  0xf2   :  { %1112 = vmatpush.bf16.msrb.mxu0 %v3306_v51  ;;  %v4077_v51 = vld [vmem:[#allocation3 + $0x64] sm:$0xf]  ;;  %v3225_v46 = vld [vmem:[#allocation3 + $0x20] sm:$0xf]  ;;  %v4071_v35 = vld [vmem:[#allocation3 + $0x2c] sm:$0xf0] }
  0xf3   :  { %v3262_v6 = vor.u32 %v4077_v51, %v3259_v58  ;;  %v3227_v61 = vld [vmem:[#allocation3 + $0x30] sm:$0xf0]  ;;  %v3233_v53 = vld [vmem:[#allocation3 + $0x28] sm:$0xf]  ;;  %v4072_v51 = vld [vmem:[#allocation3 + $0x34] sm:$0xf0] }
  0xf4   :  { %v3235_v58 = vld [vmem:[#allocation3 + $0x38] sm:$0xf0] }
  0xf5   :  { %v4281_v31 = vpop.eup %4280 }
  0xf6   :  { %v588_v33 = vmul.f32 %v4281_v31, %v582_v32  ;;  %v3294_v31 = vor.u32 %v4085_v16, %v3291_v20  ;;  %v3298_v32 = vor.u32 %v4088_v30, %v3297_v24  ;;  %1113 = vmatpush.bf16.msrb.mxu0 %v3290_v17  ;;  %v3270_v20 = vor.u32 %v4078_v9, %v3267_v14  ;;  %v3241_v24 = vld [vmem:[#allocation3 + $0x40] sm:$0xf]  ;;  %v4075_v30 = vld [vmem:[#allocation3 + $0x4c] sm:$0xf0]  ;;  %v4065_v14 = vld [vmem:[#allocation3 + $0x4] sm:$0xf] }
  0xf7   :  { %v4067_v9 = vld [vmem:[#allocation3 + $0xc] sm:$0xf0] }
  0xf8   :  { %v589_v38 = vpack.c.bf16 %v588_v33, %v588_v33  ;;  %v4086_v33 = vld [vmem:[#allocation3 + $0xac] sm:$0xf]  ;;  %1126 = vmatpush.bf16.msrb.mxu1 %v3294_v31  ;;  %1139 = vmatpush.bf16.msrb.mxu2 %v3298_v32  ;;  %v4073_v31 = vld [vmem:[#allocation3 + $0x44] sm:$0xf] }
  0xfa   :  { %590 = vst [vmem:[#allocation6] sm:$0xf] %v589_v38  ;;  %798 = vmatmul.bf16.vlgmr.msra.gmra.mxu0 %v589_v38  ;;  %811 = vmatmul.bf16.vlgmr.msra.gmra.mxu1 %v589_v38 }
  0xfb   :  { %824 = vmatmul.bf16.vlgmr.msra.gmra.mxu2 %v589_v38  ;;  %837 = vmatmul.bf16.vlgmr.msra.gmra.mxu3 %v589_v38  ;;  %v3299_v38 = vld [vmem:[#allocation3 + $0xb8] sm:$0xf0] }
  0xfc   :  { %v3302_v52 = vor.u32 %v4086_v33, %v3299_v38  ;;  %1114 = vmatpush.bf16.msrb.mxu0 %v3274_v44  ;;  %1127 = vmatpush.bf16.msrb.mxu1 %v3278_v54  ;;  %v3242_v38 = vor.u32 %v4075_v30, %v3241_v24  ;;  %v4074_v44 = vld [vmem:[#allocation3 + $0x4c] sm:$0xf]  ;;  %v3226_v54 = vor.u32 %v4071_v35, %v3225_v46  ;;  %v4068_v24 = vld [vmem:[#allocation3 + $0x14] sm:$0xf0] }
  0xfd   :  { %1140 = vmatpush.bf16.msrb.mxu2 %v3282_v55  ;;  %v4069_v55 = vld [vmem:[#allocation3 + $0x24] sm:$0xf] }
  0xfe   :  { %1152 = vmatpush.bf16.msrb.mxu3 %v3302_v52  ;;  %v3243_v52 = vld [vmem:[#allocation3 + $0x50] sm:$0xf0]  ;;  %v3230_v47 = vor.u32 %v4069_v55, %v3227_v61 }
  0xff   :  { %v3246_v39 = vor.u32 %v4073_v31, %v3243_v52 }
 0x100   :  { %1115 = vmatpush.bf16.msrb.mxu0 %v3258_v56  ;;  %1128 = vmatpush.bf16.msrb.mxu1 %v3262_v6  ;;  %v4070_v56 = vld [vmem:[#allocation3 + $0x2c] sm:$0xf] }
 0x101   :  { %1141 = vmatpush.bf16.msrb.mxu2 %v3266_v8  ;;  %v3238_v6 = vor.u32 %v4070_v56, %v3235_v58  ;;  %v3209_v8 = vld [vmem:[#allocation3] sm:$0xf] }
 0x102   :  { %1153 = vmatpush.bf16.msrb.mxu3 %v3286_v60 }
 0x104   :  { %1116 = vmatpush.bf16.msrb.mxu0 %v3242_v38  ;;  %1129 = vmatpush.bf16.msrb.mxu1 %v3246_v39 }
 0x106   :  { %1154 = vmatpush.bf16.msrb.mxu3 %v3270_v20  ;;  %v3217_v20 = vld [vmem:[#allocation3 + $0x8] sm:$0xf] }
 0x108   :  { %1117 = vmatpush.bf16.msrb.mxu0 %v3226_v54  ;;  %1130 = vmatpush.bf16.msrb.mxu1 %v3230_v47 }
 0x177   :  { %v799_v1 = vpop.f32.mrf.mxu0  ;;  %v812_v4 = vpop.f32.mrf.mxu1 }
 0x178   :  { %v842_v16 = vadd.f32 %v799_v1, %v4611_v57  ;;  %v843_v17 = vadd.f32 %v812_v4, %v4614_v59  ;;  %v3250_v57 = vor.u32 %v4076_v43, %v3249_v40  ;;  %v3251_v59 = vld [vmem:[#allocation3 + $0x58] sm:$0xf0]  ;;  %v3234_v4 = vor.u32 %v4072_v51, %v3233_v53 }
 0x179   :  { %v3254_v50 = vor.u32 %v4074_v44, %v3251_v59 }
 0x17a   :  { %v3204_v32 = vmul.f32 -1.442695, %v842_v16  ;;  %v3205_v33 = vmul.f32 -1.442695, %v843_v17  ;;  %1142 = vmatpush.bf16.msrb.mxu2 %v3250_v57  ;;  %v3210_v16 = vor.u32 %v4067_v9, %v3209_v8  ;;  %v3211_v17 = vld [vmem:[#allocation3 + $0x10] sm:$0xf0] }
 0x17b   :  { %1155 = vmatpush.bf16.msrb.mxu3 %v3254_v50  ;;  %v3214_v31 = vor.u32 %v4065_v14, %v3211_v17 }
 0x17c   :  { %4282 = vpow2.f32 %v3204_v32  ;;  %v4066_v32 = vld [vmem:[#allocation3 + $0xc] sm:$0xf]  ;;  %1118 = vmatpush.bf16.msrb.mxu0 %v3210_v16 }
 0x17d   :  { %4284 = vpow2.f32 %v3205_v33  ;;  %v3219_v33 = vld [vmem:[#allocation3 + $0x18] sm:$0xf0]  ;;  %1131 = vmatpush.bf16.msrb.mxu1 %v3214_v31 }
 0x17e   :  { %v825_v60 = vpop.f32.mrf.mxu2  ;;  %v838_v22 = vpop.f32.mrf.mxu3  ;;  %1143 = vmatpush.bf16.msrb.mxu2 %v3234_v4  ;;  %v3222_v40 = vor.u32 %v4066_v32, %v3219_v33 }
 0x17f   :  { %v845_v62 = vadd.f32 %v838_v22, %v4624_v2  ;;  %v801_v0 = vpop.f32.mrf.mxu0  ;;  %v814_v1 = vpop.f32.mrf.mxu1  ;;  %v3218_v2 = vor.u32 %v4068_v24, %v3217_v20  ;;  %1156 = vmatpush.bf16.msrb.mxu3 %v3238_v6  ;;  %v844_v50 = vadd.f32 %v825_v60, %v4621_v63 }
 0x181   :  { %v3206_v30 = vmul.f32 -1.442695, %v845_v62 }
 0x182   :  { %v4283_v38 = vpop.eup %4282  ;;  %1144 = vmatpush.bf16.msrb.mxu2 %v3218_v2 }
 0x183   :  { %v4285_v52 = vpop.eup %4284  ;;  %v849_v39 = vadd.f32 1.0, %v4283_v38  ;;  %4286 = vpow2.f32 %v3206_v30  ;;  %1157 = vmatpush.bf16.msrb.mxu3 %v3222_v40 }
 0x184   :  { %v868_v43 = vadd.f32 1.0, %v4285_v52 }
 0x185   :  { %4288 = vrcp.f32 %v849_v39  ;;  %v861_v47 = vand.u32 2147483648, %v849_v39  ;;  %v859_v58 = vand.u32 2147483647, %v849_v39  ;;  %vm855_vm15 = vweird.f32 %v849_v39 }
 0x186   :  { %4290 = vrcp.f32 %v868_v43  ;;  %v827_v44 = vpop.f32.mrf.mxu2  ;;  %v840_v57 = vpop.f32.mrf.mxu3  ;;  %v880_v51 = vand.u32 2147483648, %v868_v43  ;;  %v878_v0 = vand.u32 2147483647, %v868_v43  ;;  %vm874_vm0 = vweird.f32 %v868_v43 }
 0x187   :  { %v862_v63 = vor.u32 1.1754944e-38, %v861_v47  ;;  %vm860_vm3 = vcmp.eq.f32.partialorder %v859_v58, 8.507059e+37  ;;  %v4126_v47 = vld [vmem:[#allocation3 + $0xec] sm:$0xf]  ;;  %v3436_v58 = vld [vmem:[#allocation3 + $0xc0] sm:$0xf] }
 0x188   :  { %v881_v8 = vor.u32 1.1754944e-38, %v880_v51  ;;  %vm879_vm4 = vcmp.eq.f32.partialorder %v878_v0, 8.507059e+37  ;;  %v3462_v51 = vld [vmem:[#allocation3 + $0xf8] sm:$0xf0]  ;;  %v4121_v0 = vld [vmem:[#allocation3 + $0xc4] sm:$0xf] }
 0x189   :  { %v4287_v59 = vpop.eup %4286 }
 0x18a   :  { %v888_v46 = vadd.f32 1.0, %v4287_v59 }
 0x18b   :  { %v4289_v35 = vpop.eup %4288 }
 0x18c   :  { %v4291_v54 = vpop.eup %4290  ;;  %v851_v55 = vmul.f32 %v4289_v35, %v849_v39  ;;  %4292 = vrcp.f32 %v888_v46  ;;  %vm856_vm13 = vweird.f32 %v4289_v35  ;;  %v900_v2 = vand.u32 2147483648, %v888_v46 }
 0x18d   :  { %v870_v61 = vmul.f32 %v4291_v54, %v868_v43  ;;  %4294 = vtanh.f32 %v844_v50  ;;  %vm875_vm14 = vweird.f32 %v4291_v54  ;;  %vm857_vm1 = vmor %vm855_vm15, %vm856_vm13  ;;  %vm894_vm6 = vweird.f32 %v888_v46  ;;  %v4125_v50 = vld [vmem:[#allocation3 + $0xe4] sm:$0xf] }
 0x18e   :  { %v852_v53 = vsub.f32 1.0, %v851_v55  ;;  %vm876_vm2 = vmor %vm874_vm0, %vm875_vm14  ;;  %v898_v52 = vand.u32 2147483647, %v888_v46  ;;  %v901_v40 = vor.u32 1.1754944e-38, %v900_v2  ;;  %v3454_v55 = vld [vmem:[#allocation3 + $0xf0] sm:$0xf0] }
 0x18f   :  { %v871_v22 = vsub.f32 1.0, %v870_v61  ;;  %v3460_v61 = vld [vmem:[#allocation3 + $0xe8] sm:$0xf] }
 0x190   :  { %v853_v56 = vmul.f32 %v4289_v35, %v852_v53  ;;  %vm899_vm8 = vcmp.eq.f32.partialorder %v898_v52, 8.507059e+37  ;;  %v3457_v53 = vor.u32 %v4125_v50, %v3454_v55  ;;  %v3412_v50 = vld [vmem:[#allocation3 + $0x88] sm:$0xf] }
 0x191   :  { %v872_v62 = vmul.f32 %v4291_v54, %v871_v22 }
 0x192   :  { %v4293_v1 = vpop.eup %4292  ;;  %v854_v4 = vadd.f32 %v4289_v35, %v853_v56  ;;  %v3465_v56 = vor.u32 %v4126_v47, %v3462_v51  ;;  %1445 = vmatpush.bf16.msra.mxu1 %v3457_v53  ;;  %v3414_v53 = vld [vmem:[#allocation3 + $0x98] sm:$0xf0]  ;;  %v3388_v47 = vld [vmem:[#allocation3 + $0x60] sm:$0xf]  ;;  %v4111_v51 = vld [vmem:[#allocation3 + $0x6c] sm:$0xf0] }
 0x193   :  { %v873_v60 = vadd.f32 %v4291_v54, %v872_v62  ;;  %v890_v6 = vmul.f32 %v4293_v1, %v888_v46  ;;  %v4295_v14 = vpop.eup %4294  ;;  %vm895_vm5 = vweird.f32 %v4293_v1  ;;  %v4128_v46 = vld [vmem:[#allocation3 + $0xf4] sm:$0xf0]  ;;  %v4123_v62 = vld [vmem:[#allocation3 + $0xcc] sm:$0xf0] }
 0x194   :  { %v858_v9 = vsel %vm857_vm1, %v4289_v35, %v854_v4  ;;  %vm896_vm7 = vmor %vm894_vm6, %vm895_vm5  ;;  %v4127_v35 = vld [vmem:[#allocation3 + $0xec] sm:$0xf0]  ;;  %v3461_v22 = vor.u32 %v4128_v46, %v3460_v61  ;;  %1471 = vmatpush.bf16.msra.mxu3 %v3465_v56  ;;  %v3438_v4 = vld [vmem:[#allocation3 + $0xd0] sm:$0xf0] }
 0x195   :  { %v863_v16 = vsel %vm860_vm3, %v862_v63, %v858_v9  ;;  %v877_v17 = vsel %vm876_vm2, %v4291_v54, %v873_v60  ;;  %v891_v20 = vsub.f32 1.0, %v890_v6  ;;  %v3444_v63 = vld [vmem:[#allocation3 + $0xc8] sm:$0xf]  ;;  %v4124_v60 = vld [vmem:[#allocation3 + $0xd4] sm:$0xf0]  ;;  %v3441_v6 = vor.u32 %v4121_v0, %v3438_v4 }
 0x196   :  { %v882_v24 = vsel %vm879_vm4, %v881_v8, %v877_v17  ;;  %v905_v30 = vmul.f32 %v4295_v14, %v863_v16  ;;  %1458 = vmatpush.bf16.msra.mxu2 %v3461_v22  ;;  %v3445_v8 = vor.u32 %v4124_v60, %v3444_v63  ;;  %v4122_v9 = vld [vmem:[#allocation3 + $0xcc] sm:$0xf]  ;;  %v3446_v14 = vld [vmem:[#allocation3 + $0xd8] sm:$0xf0]  ;;  %v3420_v17 = vld [vmem:[#allocation3 + $0xa0] sm:$0xf] }
 0x197   :  { %v904_v31 = vmul.f32 %v882_v24, %v4706_v12  ;;  %v892_v32 = vmul.f32 %v4293_v1, %v891_v20  ;;  %v3452_v12 = vld [vmem:[#allocation3 + $0xe0] sm:$0xf]  ;;  %v3449_v16 = vor.u32 %v4122_v9, %v3446_v14  ;;  %1446 = vmatpush.bf16.msra.mxu1 %v3441_v6  ;;  %v4119_v20 = vld [vmem:[#allocation3 + $0xac] sm:$0xf0]  ;;  %v4117_v24 = vld [vmem:[#allocation3 + $0xa4] sm:$0xf] }
 0x198   :  { %v3453_v54 = vor.u32 %v4127_v35, %v3452_v12  ;;  %v3406_v35 = vld [vmem:[#allocation3 + $0x90] sm:$0xf0]  ;;  %v4114_v46 = vld [vmem:[#allocation3 + $0x8c] sm:$0xf]  ;;  %v4109_v56 = vld [vmem:[#allocation3 + $0x64] sm:$0xf] }
 0x199   :  { %v4714_v33 = vadd.f32 %v905_v30, %v904_v31  ;;  %v893_v38 = vadd.f32 %v4293_v1, %v892_v32  ;;  %1472 = vmatpush.bf16.msra.mxu3 %v3449_v16  ;;  %v3421_v30 = vor.u32 %v4119_v20, %v3420_v17  ;;  %v3422_v31 = vld [vmem:[#allocation3 + $0xb0] sm:$0xf0]  ;;  %v3428_v32 = vld [vmem:[#allocation3 + $0xa8] sm:$0xf]  ;;  %v3417_v22 = vor.u32 %v4114_v46, %v3414_v53  ;;  %v3398_v9 = vld [vmem:[#allocation3 + $0x78] sm:$0xf0] }
 0x19a   :  { %1432 = vmatpush.bf16.msra.mxu0 %v3453_v54  ;;  %1459 = vmatpush.bf16.msra.mxu2 %v3445_v8  ;;  %v3425_v2 = vor.u32 %v4117_v24, %v3422_v31  ;;  %v4116_v54 = vld [vmem:[#allocation3 + $0x94] sm:$0xf0]  ;;  %v3396_v0 = vld [vmem:[#allocation3 + $0x68] sm:$0xf]  ;;  %v4110_v8 = vld [vmem:[#allocation3 + $0x6c] sm:$0xf] }
 0x19b   :  { %4296 = vtanh.f32 %v4714_v33  ;;  %v897_v39 = vsel %vm896_vm7, %v4293_v1, %v893_v38  ;;  %v3437_v1 = vor.u32 %v4123_v62, %v3436_v58  ;;  %v4120_v38 = vld [vmem:[#allocation3 + $0xb4] sm:$0xf0]  ;;  %v3413_v61 = vor.u32 %v4116_v54, %v3412_v50  ;;  %v3390_v62 = vld [vmem:[#allocation3 + $0x70] sm:$0xf0]  ;;  %v3372_v20 = vld [vmem:[#allocation3 + $0x40] sm:$0xf] }
 0x19c   :  { %v902_v44 = vsel %vm899_vm8, %v901_v40, %v897_v39  ;;  %v3429_v52 = vor.u32 %v4120_v38, %v3428_v32  ;;  %v4118_v39 = vld [vmem:[#allocation3 + $0xac] sm:$0xf]  ;;  %v3430_v40 = vld [vmem:[#allocation3 + $0xb8] sm:$0xf0]  ;;  %1447 = vmatpush.bf16.msra.mxu1 %v3425_v2  ;;  %v3389_v58 = vor.u32 %v4111_v51, %v3388_v47  ;;  %v3393_v60 = vor.u32 %v4109_v56, %v3390_v62  ;;  %v4107_v24 = vld [vmem:[#allocation3 + $0x4c] sm:$0xf0] }
 0x19d   :  { %v3401_v17 = vor.u32 %v4110_v8, %v3398_v9  ;;  %v3373_v38 = vor.u32 %v4107_v24, %v3372_v20  ;;  %v3374_v2 = vld [vmem:[#allocation3 + $0x50] sm:$0xf0]  ;;  %v3364_v54 = vld [vmem:[#allocation3 + $0x28] sm:$0xf]  ;;  %v4104_v53 = vld [vmem:[#allocation3 + $0x34] sm:$0xf0] }
 0x19e   :  { %1433 = vmatpush.bf16.msra.mxu0 %v3437_v1  ;;  %1460 = vmatpush.bf16.msra.mxu2 %v3429_v52  ;;  %v4112_v1 = vld [vmem:[#allocation3 + $0x74] sm:$0xf0]  ;;  %v3358_v50 = vld [vmem:[#allocation3 + $0x30] sm:$0xf0]  ;;  %v3366_v47 = vld [vmem:[#allocation3 + $0x38] sm:$0xf0]  ;;  %v3365_v62 = vor.u32 %v4104_v53, %v3364_v54 }
 0x19f   :  { %v3397_v6 = vor.u32 %v4112_v1, %v3396_v0  ;;  %v3340_v1 = vld [vmem:[#allocation3] sm:$0xf]  ;;  %v3348_v8 = vld [vmem:[#allocation3 + $0x8] sm:$0xf]  ;;  %v4100_v9 = vld [vmem:[#allocation3 + $0x14] sm:$0xf0] }
 0x1a0   :  { %v3350_v20 = vld [vmem:[#allocation3 + $0x18] sm:$0xf0] }
 0x1a1   :  { %v4297_v43 = vpop.eup %4296 }
 0x1a2   :  { %v908_v57 = vmul.f32 %v4297_v43, %v902_v44  ;;  %1434 = vmatpush.bf16.msra.mxu0 %v3421_v30  ;;  %v3433_v43 = vor.u32 %v4118_v39, %v3430_v40  ;;  %v3404_v44 = vld [vmem:[#allocation3 + $0x80] sm:$0xf]  ;;  %1461 = vmatpush.bf16.msra.mxu2 %v3413_v61  ;;  %v4105_v30 = vld [vmem:[#allocation3 + $0x44] sm:$0xf]  ;;  %v3380_v39 = vld [vmem:[#allocation3 + $0x48] sm:$0xf] }
 0x1a3   :  { %v3377_v52 = vor.u32 %v4105_v30, %v3374_v2  ;;  %v4108_v40 = vld [vmem:[#allocation3 + $0x54] sm:$0xf0] }
 0x1a4   :  { %v909_v59 = vpack.c.bf16 %v908_v57, %v908_v57  ;;  %v4115_v57 = vld [vmem:[#allocation3 + $0x8c] sm:$0xf0]  ;;  %1473 = vmatpush.bf16.msra.mxu3 %v3433_v43  ;;  %v4106_v43 = vld [vmem:[#allocation3 + $0x4c] sm:$0xf] }
 0x1a5   :  { %v3405_v12 = vor.u32 %v4115_v57, %v3404_v44  ;;  %v3356_v44 = vld [vmem:[#allocation3 + $0x20] sm:$0xf]  ;;  %v4103_v57 = vld [vmem:[#allocation3 + $0x2c] sm:$0xf0] }
 0x1a6   :  { %911 = vst [vmem:[#allocation6 + $0x4] sm:$0xf] %v909_v59  ;;  %1119 = vmatmul.bf16.vlgmr.msrb.gmra.mxu0 %v909_v59  ;;  %1132 = vmatmul.bf16.vlgmr.msrb.gmra.mxu1 %v909_v59 }
 0x1a7   :  { %1145 = vmatmul.bf16.vlgmr.msrb.gmra.mxu2 %v909_v59  ;;  %1158 = vmatmul.bf16.vlgmr.msrb.gmra.mxu3 %v909_v59  ;;  %v4113_v59 = vld [vmem:[#allocation3 + $0x84] sm:$0xf] }
 0x1a8   :  { %v3409_v55 = vor.u32 %v4113_v59, %v3406_v35  ;;  %1435 = vmatpush.bf16.msra.mxu0 %v3405_v12  ;;  %1474 = vmatpush.bf16.msra.mxu3 %v3417_v22  ;;  %v3357_v12 = vor.u32 %v4103_v57, %v3356_v44  ;;  %v4101_v35 = vld [vmem:[#allocation3 + $0x24] sm:$0xf]  ;;  %v4102_v22 = vld [vmem:[#allocation3 + $0x2c] sm:$0xf] }
 0x1a9   :  { %1462 = vmatpush.bf16.msra.mxu2 %v3397_v6  ;;  %v3361_v46 = vor.u32 %v4101_v35, %v3358_v50  ;;  %v3369_v0 = vor.u32 %v4102_v22, %v3366_v47  ;;  %v3342_v6 = vld [vmem:[#allocation3 + $0x10] sm:$0xf0] }
 0x1aa   :  { %1448 = vmatpush.bf16.msra.mxu1 %v3409_v55 }
 0x1ac   :  { %1436 = vmatpush.bf16.msra.mxu0 %v3389_v58  ;;  %1475 = vmatpush.bf16.msra.mxu3 %v3401_v17  ;;  %v4098_v17 = vld [vmem:[#allocation3 + $0xc] sm:$0xf] }
 0x1ae   :  { %1449 = vmatpush.bf16.msra.mxu1 %v3393_v60 }
 0x1b0   :  { %1437 = vmatpush.bf16.msra.mxu0 %v3373_v38 }
 0x1b2   :  { %1450 = vmatpush.bf16.msra.mxu1 %v3377_v52 }
 0x1b4   :  { %1438 = vmatpush.bf16.msra.mxu0 %v3357_v12 }
 0x1b6   :  { %1451 = vmatpush.bf16.msra.mxu1 %v3361_v46 }
 0x223   :  { %v1120_v4 = vpop.f32.mrf.mxu0  ;;  %v1133_v63 = vpop.f32.mrf.mxu1 }
 0x224   :  { %v1163_v14 = vadd.f32 %v1120_v4, %v4627_v3  ;;  %v1164_v16 = vadd.f32 %v1133_v63, %v4630_v5  ;;  %v3381_v3 = vor.u32 %v4108_v40, %v3380_v39  ;;  %v3382_v5 = vld [vmem:[#allocation3 + $0x58] sm:$0xf0]  ;;  %v4099_v4 = vld [vmem:[#allocation3 + $0xc] sm:$0xf0]  ;;  %v4097_v63 = vld [vmem:[#allocation3 + $0x4] sm:$0xf] }
 0x225   :  { %v3385_v59 = vor.u32 %v4106_v43, %v3382_v5  ;;  %v3341_v60 = vor.u32 %v4099_v4, %v3340_v1 }
 0x226   :  { %v3335_v31 = vmul.f32 -1.442695, %v1163_v14  ;;  %v3336_v32 = vmul.f32 -1.442695, %v1164_v16  ;;  %1463 = vmatpush.bf16.msra.mxu2 %v3381_v3  ;;  %v3345_v16 = vor.u32 %v4097_v63, %v3342_v6 }
 0x227   :  { %1476 = vmatpush.bf16.msra.mxu3 %v3385_v59  ;;  %1439 = vmatpush.bf16.msra.mxu0 %v3341_v60 }
 0x228   :  { %4298 = vpow2.f32 %v3335_v31  ;;  %1452 = vmatpush.bf16.msra.mxu1 %v3345_v16 }
 0x229   :  { %4300 = vpow2.f32 %v3336_v32  ;;  %v3353_v32 = vor.u32 %v4098_v17, %v3350_v20 }
 0x22a   :  { %v1146_v55 = vpop.f32.mrf.mxu2  ;;  %v1159_v61 = vpop.f32.mrf.mxu3  ;;  %1464 = vmatpush.bf16.msra.mxu2 %v3365_v62 }
 0x22b   :  { %v1166_v51 = vadd.f32 %v1159_v61, %v4636_v10  ;;  %v1122_v56 = vpop.f32.mrf.mxu0  ;;  %v1135_v58 = vpop.f32.mrf.mxu1  ;;  %v3349_v10 = vor.u32 %v4100_v9, %v3348_v8  ;;  %1477 = vmatpush.bf16.msra.mxu3 %v3369_v0  ;;  %v1165_v3 = vadd.f32 %v1146_v55, %v4633_v7 }
 0x22d   :  { %v3337_v14 = vmul.f32 -1.442695, %v1166_v51 }
 0x22e   :  { %v4299_v24 = vpop.eup %4298  ;;  %1465 = vmatpush.bf16.msra.mxu2 %v3349_v10 }
 0x22f   :  { %v4301_v30 = vpop.eup %4300  ;;  %v1170_v31 = vadd.f32 1.0, %v4299_v24  ;;  %4302 = vpow2.f32 %v3337_v14  ;;  %1478 = vmatpush.bf16.msra.mxu3 %v3353_v32 }
 0x230   :  { %v1189_v38 = vadd.f32 1.0, %v4301_v30 }
 0x231   :  { %4304 = vrcp.f32 %v1170_v31  ;;  %v1182_v35 = vand.u32 2147483648, %v1170_v31  ;;  %v1180_v61 = vand.u32 2147483647, %v1170_v31  ;;  %vm1176_vm11 = vweird.f32 %v1170_v31 }
 0x232   :  { %4306 = vrcp.f32 %v1189_v38  ;;  %v1148_v2 = vpop.f32.mrf.mxu2  ;;  %v1161_v52 = vpop.f32.mrf.mxu3  ;;  %v1201_v50 = vand.u32 2147483648, %v1189_v38  ;;  %v1199_v53 = vand.u32 2147483647, %v1189_v38  ;;  %vm1195_vm12 = vweird.f32 %v1189_v38 }
 0x233   :  { %v1183_v7 = vor.u32 1.1754944e-38, %v1182_v35  ;;  %vm1181_vm15 = vcmp.eq.f32.partialorder %v1180_v61, 8.507059e+37  ;;  %v4157_v2 = vld [vmem:[#allocation3 + $0xe4] sm:$0xf]  ;;  %v4155_v35 = vld [vmem:[#allocation3 + $0xcc] sm:$0xf0] }
 0x234   :  { %v1202_v56 = vor.u32 1.1754944e-38, %v1201_v50  ;;  %vm1200_vm0 = vcmp.eq.f32.partialorder %v1199_v53, 8.507059e+37  ;;  %v4153_v50 = vld [vmem:[#allocation3 + $0xc4] sm:$0xf]  ;;  %v3569_v61 = vld [vmem:[#allocation3 + $0xd0] sm:$0xf0] }
 0x235   :  { %v4303_v39 = vpop.eup %4302  ;;  %v4156_v53 = vld [vmem:[#allocation3 + $0xd4] sm:$0xf0] }
 0x236   :  { %v1209_v40 = vadd.f32 1.0, %v4303_v39  ;;  %v3585_v39 = vld [vmem:[#allocation3 + $0xf0] sm:$0xf0] }
 0x237   :  { %v4305_v43 = vpop.eup %4304 }
 0x238   :  { %v4307_v5 = vpop.eup %4306  ;;  %v1172_v44 = vmul.f32 %v4305_v43, %v1170_v31  ;;  %4308 = vrcp.f32 %v1209_v40  ;;  %vm1177_vm9 = vweird.f32 %v4305_v43  ;;  %v1221_v16 = vand.u32 2147483648, %v1209_v40 }
 0x239   :  { %v1191_v57 = vmul.f32 %v4307_v5, %v1189_v38  ;;  %4310 = vtanh.f32 %v1165_v3  ;;  %vm1196_vm10 = vweird.f32 %v4307_v5  ;;  %vm1178_vm13 = vmor %vm1176_vm11, %vm1177_vm9  ;;  %vm1215_vm2 = vweird.f32 %v1209_v40  ;;  %v4159_v38 = vld [vmem:[#allocation3 + $0xec] sm:$0xf0] }
 0x23a   :  { %v1173_v59 = vsub.f32 1.0, %v1172_v44  ;;  %vm1197_vm14 = vmor %vm1195_vm12, %vm1196_vm10  ;;  %v1219_v17 = vand.u32 2147483647, %v1209_v40  ;;  %v1222_v24 = vor.u32 1.1754944e-38, %v1221_v16  ;;  %v3588_v3 = vor.u32 %v4157_v2, %v3585_v39  ;;  %v4158_v44 = vld [vmem:[#allocation3 + $0xec] sm:$0xf] }
 0x23b   :  { %v1192_v12 = vsub.f32 1.0, %v1191_v57  ;;  %v3593_v57 = vld [vmem:[#allocation3 + $0xf8] sm:$0xf0]  ;;  %v4146_v2 = vld [vmem:[#allocation3 + $0x8c] sm:$0xf] }
 0x23c   :  { %v1174_v54 = vmul.f32 %v4305_v43, %v1173_v59  ;;  %vm1220_vm4 = vcmp.eq.f32.partialorder %v1219_v17, 8.507059e+37  ;;  %v3596_v59 = vor.u32 %v4158_v44, %v3593_v57  ;;  %1766 = vmatpush.bf16.msrb.mxu1 %v3588_v3  ;;  %v3535_v17 = vld [vmem:[#allocation3 + $0x80] sm:$0xf]  ;;  %v4141_v3 = vld [vmem:[#allocation3 + $0x64] sm:$0xf] }
 0x23d   :  { %v1193_v46 = vmul.f32 %v4307_v5, %v1192_v12  ;;  %v3567_v12 = vld [vmem:[#allocation3 + $0xc0] sm:$0xf]  ;;  %v3521_v44 = vld [vmem:[#allocation3 + $0x70] sm:$0xf0]  ;;  %v3527_v57 = vld [vmem:[#allocation3 + $0x68] sm:$0xf] }
 0x23e   :  { %v4309_v22 = vpop.eup %4308  ;;  %v1175_v47 = vadd.f32 %v4305_v43, %v1174_v54  ;;  %1792 = vmatpush.bf16.msrb.mxu3 %v3596_v59  ;;  %v3568_v54 = vor.u32 %v4155_v35, %v3567_v12  ;;  %v4144_v59 = vld [vmem:[#allocation3 + $0x74] sm:$0xf0] }
 0x23f   :  { %v1194_v55 = vadd.f32 %v4307_v5, %v1193_v46  ;;  %v1211_v51 = vmul.f32 %v4309_v22, %v1209_v40  ;;  %v4311_v62 = vpop.eup %4310  ;;  %vm1216_vm1 = vweird.f32 %v4309_v22  ;;  %v4160_v40 = vld [vmem:[#allocation3 + $0xf4] sm:$0xf0]  ;;  %v3575_v46 = vld [vmem:[#allocation3 + $0xc8] sm:$0xf] }
 0x240   :  { %v1179_v58 = vsel %vm1178_vm13, %v4305_v43, %v1175_v47  ;;  %vm1217_vm3 = vmor %vm1215_vm2, %vm1216_vm1  ;;  %v3591_v43 = vld [vmem:[#allocation3 + $0xe8] sm:$0xf]  ;;  %v3576_v47 = vor.u32 %v4156_v53, %v3575_v46  ;;  %v3529_v46 = vld [vmem:[#allocation3 + $0x78] sm:$0xf0] }
 0x241   :  { %v1184_v0 = vsel %vm1181_vm15, %v1183_v7, %v1179_v58  ;;  %v1198_v1 = vsel %vm1197_vm14, %v4307_v5, %v1194_v55  ;;  %v1212_v4 = vsub.f32 1.0, %v1211_v51  ;;  %v3592_v5 = vor.u32 %v4160_v40, %v3591_v43  ;;  %v4154_v7 = vld [vmem:[#allocation3 + $0xcc] sm:$0xf]  ;;  %v3577_v55 = vld [vmem:[#allocation3 + $0xd8] sm:$0xf0] }
 0x242   :  { %v1203_v63 = vsel %vm1200_vm0, %v1202_v56, %v1198_v1  ;;  %v1226_v60 = vmul.f32 %v4311_v62, %v1184_v0  ;;  %v3580_v51 = vor.u32 %v4154_v7, %v3577_v55  ;;  %v3551_v56 = vld [vmem:[#allocation3 + $0xa0] sm:$0xf]  ;;  %v4151_v58 = vld [vmem:[#allocation3 + $0xac] sm:$0xf0]  ;;  %v4149_v62 = vld [vmem:[#allocation3 + $0xa4] sm:$0xf] }
 0x243   :  { %v1225_v6 = vmul.f32 %v1203_v63, %v4714_v33  ;;  %v1213_v8 = vmul.f32 %v4309_v22, %v1212_v4  ;;  %v3583_v33 = vld [vmem:[#allocation3 + $0xe0] sm:$0xf]  ;;  %1779 = vmatpush.bf16.msrb.mxu2 %v3592_v5  ;;  %v3552_v0 = vor.u32 %v4151_v58, %v3551_v56  ;;  %v3553_v1 = vld [vmem:[#allocation3 + $0xb0] sm:$0xf0]  ;;  %v3559_v4 = vld [vmem:[#allocation3 + $0xa8] sm:$0xf] }
 0x244   :  { %v3584_v52 = vor.u32 %v4159_v38, %v3583_v33  ;;  %1793 = vmatpush.bf16.msrb.mxu3 %v3580_v51  ;;  %v4152_v63 = vld [vmem:[#allocation3 + $0xb4] sm:$0xf0]  ;;  %v3519_v43 = vld [vmem:[#allocation3 + $0x60] sm:$0xf]  ;;  %v4143_v40 = vld [vmem:[#allocation3 + $0x6c] sm:$0xf0] }
 0x245   :  { %v4722_v9 = vadd.f32 %v1226_v60, %v1225_v6  ;;  %v1214_v14 = vadd.f32 %v4309_v22, %v1213_v8  ;;  %v3556_v60 = vor.u32 %v4149_v62, %v3553_v1  ;;  %v3560_v6 = vor.u32 %v4152_v63, %v3559_v4  ;;  %v4150_v8 = vld [vmem:[#allocation3 + $0xac] sm:$0xf]  ;;  %v3503_v7 = vld [vmem:[#allocation3 + $0x40] sm:$0xf]  ;;  %v4139_v55 = vld [vmem:[#allocation3 + $0x4c] sm:$0xf0] }
 0x246   :  { %1753 = vmatpush.bf16.msrb.mxu0 %v3584_v52  ;;  %v3545_v52 = vld [vmem:[#allocation3 + $0x98] sm:$0xf0]  ;;  %v3520_v5 = vor.u32 %v4143_v40, %v3519_v43  ;;  %v4137_v51 = vld [vmem:[#allocation3 + $0x44] sm:$0xf]  ;;  %v3504_v62 = vor.u32 %v4139_v55, %v3503_v7  ;;  %v3511_v4 = vld [vmem:[#allocation3 + $0x48] sm:$0xf] }
 0x247   :  { %4312 = vtanh.f32 %v4722_v9  ;;  %v1218_v20 = vsel %vm1217_vm3, %v4309_v22, %v1214_v14  ;;  %v3572_v22 = vor.u32 %v4153_v50, %v3569_v61  ;;  %1780 = vmatpush.bf16.msrb.mxu2 %v3576_v47  ;;  %v3561_v14 = vld [vmem:[#allocation3 + $0xb8] sm:$0xf0]  ;;  %v3548_v39 = vor.u32 %v4146_v2, %v3545_v52  ;;  %v4142_v61 = vld [vmem:[#allocation3 + $0x6c] sm:$0xf]  ;;  %v4140_v63 = vld [vmem:[#allocation3 + $0x54] sm:$0xf0] }
 0x248   :  { %v1223_v30 = vsel %vm1220_vm4, %v1222_v24, %v1218_v20  ;;  %v3564_v16 = vor.u32 %v4150_v8, %v3561_v14  ;;  %v4147_v20 = vld [vmem:[#allocation3 + $0x8c] sm:$0xf0]  ;;  %v4145_v24 = vld [vmem:[#allocation3 + $0x84] sm:$0xf]  ;;  %v3524_v50 = vor.u32 %v4141_v3, %v3521_v44  ;;  %v3532_v47 = vor.u32 %v4142_v61, %v3529_v46  ;;  %v3471_v3 = vld [vmem:[#allocation3] sm:$0xf] }
 0x249   :  { %1767 = vmatpush.bf16.msrb.mxu1 %v3572_v22  ;;  %v4135_v8 = vld [vmem:[#allocation3 + $0x2c] sm:$0xf0]  ;;  %v4129_v44 = vld [vmem:[#allocation3 + $0x4] sm:$0xf]  ;;  %v4130_v61 = vld [vmem:[#allocation3 + $0xc] sm:$0xf] }
 0x24a   :  { %1754 = vmatpush.bf16.msrb.mxu0 %v3568_v54  ;;  %1794 = vmatpush.bf16.msrb.mxu3 %v3564_v16  ;;  %v3528_v54 = vor.u32 %v4144_v59, %v3527_v57  ;;  %v3473_v59 = vld [vmem:[#allocation3 + $0x10] sm:$0xf0]  ;;  %v3481_v46 = vld [vmem:[#allocation3 + $0x18] sm:$0xf0] }
 0x24b   :  { %1781 = vmatpush.bf16.msrb.mxu2 %v3560_v6  ;;  %v3487_v6 = vld [vmem:[#allocation3 + $0x20] sm:$0xf]  ;;  %v3484_v7 = vor.u32 %v4130_v61, %v3481_v46 }
 0x24c   :  { %v3488_v16 = vor.u32 %v4135_v8, %v3487_v6 }
 0x24d   :  { %v4313_v10 = vpop.eup %4312  ;;  %1768 = vmatpush.bf16.msrb.mxu1 %v3556_v60  ;;  %v4138_v60 = vld [vmem:[#allocation3 + $0x4c] sm:$0xf] }
 0x24e   :  { %v1229_v31 = vmul.f32 %v4313_v10, %v1223_v30  ;;  %1755 = vmatpush.bf16.msrb.mxu0 %v3552_v0  ;;  %v3536_v10 = vor.u32 %v4147_v20, %v3535_v17  ;;  %v3537_v30 = vld [vmem:[#allocation3 + $0x90] sm:$0xf0]  ;;  %1795 = vmatpush.bf16.msrb.mxu3 %v3548_v39  ;;  %v4133_v17 = vld [vmem:[#allocation3 + $0x24] sm:$0xf] }
 0x24f   :  { %v3540_v33 = vor.u32 %v4145_v24, %v3537_v30  ;;  %v3505_v0 = vld [vmem:[#allocation3 + $0x50] sm:$0xf0]  ;;  %v3495_v24 = vld [vmem:[#allocation3 + $0x28] sm:$0xf] }
 0x250   :  { %v1230_v32 = vpack.c.bf16 %v1229_v31, %v1229_v31  ;;  %v3543_v31 = vld [vmem:[#allocation3 + $0x88] sm:$0xf]  ;;  %v3508_v1 = vor.u32 %v4137_v51, %v3505_v0  ;;  %v3489_v20 = vld [vmem:[#allocation3 + $0x30] sm:$0xf0] }
 0x251   :  { %1769 = vmatpush.bf16.msrb.mxu1 %v3540_v33  ;;  %v4134_v33 = vld [vmem:[#allocation3 + $0x2c] sm:$0xf] }
 0x252   :  { %1232 = vst [vmem:[#allocation6 + $0x8] sm:$0xf] %v1230_v32  ;;  %1440 = vmatmul.bf16.vlgmr.msra.gmra.mxu0 %v1230_v32  ;;  %1453 = vmatmul.bf16.vlgmr.msra.gmra.mxu1 %v1230_v32 }
 0x253   :  { %1466 = vmatmul.bf16.vlgmr.msra.gmra.mxu2 %v1230_v32  ;;  %1479 = vmatmul.bf16.vlgmr.msra.gmra.mxu3 %v1230_v32  ;;  %v4148_v32 = vld [vmem:[#allocation3 + $0x94] sm:$0xf0] }
 0x254   :  { %v3544_v38 = vor.u32 %v4148_v32, %v3543_v31  ;;  %1756 = vmatpush.bf16.msrb.mxu0 %v3536_v10  ;;  %1796 = vmatpush.bf16.msrb.mxu3 %v3532_v47  ;;  %v3492_v31 = vor.u32 %v4133_v17, %v3489_v20  ;;  %v4136_v32 = vld [vmem:[#allocation3 + $0x34] sm:$0xf0] }
 0x255   :  { %1770 = vmatpush.bf16.msrb.mxu1 %v3524_v50  ;;  %v3496_v43 = vor.u32 %v4136_v32, %v3495_v24 }
 0x256   :  { %1782 = vmatpush.bf16.msrb.mxu2 %v3544_v38  ;;  %v3497_v38 = vld [vmem:[#allocation3 + $0x38] sm:$0xf0] }
 0x257   :  { %v3500_v40 = vor.u32 %v4134_v33, %v3497_v38 }
 0x258   :  { %1757 = vmatpush.bf16.msrb.mxu0 %v3520_v5  ;;  %v4131_v5 = vld [vmem:[#allocation3 + $0xc] sm:$0xf0] }
 0x259   :  { %1771 = vmatpush.bf16.msrb.mxu1 %v3508_v1  ;;  %v3472_v57 = vor.u32 %v4131_v5, %v3471_v3 }
 0x25a   :  { %1783 = vmatpush.bf16.msrb.mxu2 %v3528_v54  ;;  %v3476_v54 = vor.u32 %v4129_v44, %v3473_v59 }
 0x25c   :  { %1758 = vmatpush.bf16.msrb.mxu0 %v3504_v62 }
 0x25d   :  { %1772 = vmatpush.bf16.msrb.mxu1 %v3492_v31 }
 0x260   :  { %1759 = vmatpush.bf16.msrb.mxu0 %v3488_v16 }
 0x261   :  { %1773 = vmatpush.bf16.msrb.mxu1 %v3476_v54 }
 0x264   :  { %1760 = vmatpush.bf16.msrb.mxu0 %v3472_v57 }
 0x2cf   :  { %v1441_v12 = vpop.f32.mrf.mxu0  ;;  %v1454_v35 = vpop.f32.mrf.mxu1 }
 0x2d0   :  { %v1484_v53 = vadd.f32 %v1441_v12, %v4639_v11  ;;  %v1485_v22 = vadd.f32 %v1454_v35, %v4642_v13  ;;  %v3512_v11 = vor.u32 %v4140_v63, %v3511_v4  ;;  %v3513_v13 = vld [vmem:[#allocation3 + $0x58] sm:$0xf0]  ;;  %v3479_v12 = vld [vmem:[#allocation3 + $0x8] sm:$0xf]  ;;  %v4132_v35 = vld [vmem:[#allocation3 + $0x14] sm:$0xf0] }
 0x2d1   :  { %v3516_v14 = vor.u32 %v4138_v60, %v3513_v13 }
 0x2d2   :  { %v3466_v56 = vmul.f32 -1.442695, %v1484_v53  ;;  %v3467_v58 = vmul.f32 -1.442695, %v1485_v22  ;;  %1784 = vmatpush.bf16.msrb.mxu2 %v3512_v11 }
 0x2d3   :  { %1797 = vmatpush.bf16.msrb.mxu3 %v3516_v14 }
 0x2d4   :  { %4314 = vpow2.f32 %v3466_v56 }
 0x2d5   :  { %4316 = vpow2.f32 %v3467_v58 }
 0x2d6   :  { %v1467_v10 = vpop.f32.mrf.mxu2  ;;  %v1480_v30 = vpop.f32.mrf.mxu3  ;;  %1785 = vmatpush.bf16.msrb.mxu2 %v3496_v43 }
 0x2d7   :  { %v1487_v2 = vadd.f32 %v1480_v30, %v4648_v18  ;;  %v1443_v52 = vpop.f32.mrf.mxu0  ;;  %v1456_v39 = vpop.f32.mrf.mxu1  ;;  %v3480_v18 = vor.u32 %v4132_v35, %v3479_v12  ;;  %1798 = vmatpush.bf16.msrb.mxu3 %v3500_v40  ;;  %v1486_v1 = vadd.f32 %v1467_v10, %v4645_v15 }
 0x2d9   :  { %v3468_v50 = vmul.f32 -1.442695, %v1487_v2 }
 0x2da   :  { %v4315_v53 = vpop.eup %4314  ;;  %1786 = vmatpush.bf16.msrb.mxu2 %v3480_v18  ;;  %v4191_v18 = vld [vmem:[#allocation3 + $0xec] sm:$0xf0] }
 0x2db   :  { %v4317_v22 = vpop.eup %4316  ;;  %v1491_v47 = vadd.f32 1.0, %v4315_v53  ;;  %4318 = vpow2.f32 %v3468_v50  ;;  %1799 = vmatpush.bf16.msrb.mxu3 %v3484_v7  ;;  %v3716_v7 = vld [vmem:[#allocation3 + $0xf0] sm:$0xf0] }
 0x2dc   :  { %v1510_v55 = vadd.f32 1.0, %v4317_v22  ;;  %v4189_v22 = vld [vmem:[#allocation3 + $0xe4] sm:$0xf] }
 0x2dd   :  { %4320 = vrcp.f32 %v1491_v47  ;;  %v1503_v6 = vand.u32 2147483648, %v1491_v47  ;;  %v1501_v16 = vand.u32 2147483647, %v1491_v47  ;;  %vm1497_vm7 = vweird.f32 %v1491_v47 }
 0x2de   :  { %4322 = vrcp.f32 %v1510_v55  ;;  %v1469_v51 = vpop.f32.mrf.mxu2  ;;  %v1482_v56 = vpop.f32.mrf.mxu3  ;;  %v1522_v8 = vand.u32 2147483648, %v1510_v55  ;;  %v1520_v20 = vand.u32 2147483647, %v1510_v55  ;;  %vm1516_vm8 = vweird.f32 %v1510_v55 }
 0x2df   :  { %v1504_v15 = vor.u32 1.1754944e-38, %v1503_v6  ;;  %vm1502_vm11 = vcmp.eq.f32.partialorder %v1501_v16, 8.507059e+37  ;;  %v4192_v51 = vld [vmem:[#allocation3 + $0xf4] sm:$0xf0]  ;;  %v3719_v56 = vor.u32 %v4189_v22, %v3716_v7  ;;  %v3706_v6 = vld [vmem:[#allocation3 + $0xc8] sm:$0xf] }
 0x2e0   :  { %v1523_v32 = vor.u32 1.1754944e-38, %v1522_v8  ;;  %vm1521_vm12 = vcmp.eq.f32.partialorder %v1520_v20, 8.507059e+37  ;;  %v4188_v8 = vld [vmem:[#allocation3 + $0xd4] sm:$0xf0]  ;;  %v3708_v20 = vld [vmem:[#allocation3 + $0xd8] sm:$0xf0] }
 0x2e1   :  { %v4319_v58 = vpop.eup %4318  ;;  %2087 = vmatpush.bf16.msra.mxu1 %v3719_v56  ;;  %v3707_v16 = vor.u32 %v4188_v8, %v3706_v6  ;;  %v4175_v22 = vld [vmem:[#allocation3 + $0x6c] sm:$0xf0]  ;;  %v4176_v56 = vld [vmem:[#allocation3 + $0x74] sm:$0xf0]  ;;  %v3634_v6 = vld [vmem:[#allocation3 + $0x40] sm:$0xf] }
 0x2e2   :  { %v1530_v62 = vadd.f32 1.0, %v4319_v58  ;;  %v4171_v8 = vld [vmem:[#allocation3 + $0x4c] sm:$0xf0] }
 0x2e3   :  { %v4321_v0 = vpop.eup %4320 }
 0x2e4   :  { %v4323_v4 = vpop.eup %4322  ;;  %v1493_v63 = vmul.f32 %v4321_v0, %v1491_v47  ;;  %4324 = vrcp.f32 %v1530_v62  ;;  %vm1498_vm5 = vweird.f32 %v4321_v0  ;;  %v1542_v59 = vand.u32 2147483648, %v1530_v62 }
 0x2e5   :  { %v1512_v60 = vmul.f32 %v4323_v4, %v1510_v55  ;;  %4326 = vtanh.f32 %v1486_v1  ;;  %vm1517_vm6 = vweird.f32 %v4323_v4  ;;  %vm1499_vm9 = vmor %vm1497_vm7, %vm1498_vm5  ;;  %vm1536_vm14 = vweird.f32 %v1530_v62  ;;  %v3722_v55 = vld [vmem:[#allocation3 + $0xe8] sm:$0xf] }
 0x2e6   :  { %v1494_v11 = vsub.f32 1.0, %v1493_v63  ;;  %vm1518_vm10 = vmor %vm1516_vm8, %vm1517_vm6  ;;  %v1540_v12 = vand.u32 2147483647, %v1530_v62  ;;  %v1543_v50 = vor.u32 1.1754944e-38, %v1542_v59  ;;  %v3723_v58 = vor.u32 %v4192_v51, %v3722_v55  ;;  %v4187_v63 = vld [vmem:[#allocation3 + $0xcc] sm:$0xf0] }
 0x2e7   :  { %v1513_v13 = vsub.f32 1.0, %v1512_v60  ;;  %v4185_v60 = vld [vmem:[#allocation3 + $0xc4] sm:$0xf]  ;;  %v3652_v55 = vld [vmem:[#allocation3 + $0x70] sm:$0xf0] }
 0x2e8   :  { %v1495_v14 = vmul.f32 %v4321_v0, %v1494_v11  ;;  %vm1541_vm0 = vcmp.eq.f32.partialorder %v1540_v12, 8.507059e+37  ;;  %2100 = vmatpush.bf16.msra.mxu2 %v3723_v58  ;;  %v3668_v12 = vld [vmem:[#allocation3 + $0x90] sm:$0xf0]  ;;  %v3658_v51 = vld [vmem:[#allocation3 + $0x68] sm:$0xf] }
 0x2e9   :  { %v1514_v17 = vmul.f32 %v4323_v4, %v1513_v13  ;;  %v3700_v13 = vld [vmem:[#allocation3 + $0xd0] sm:$0xf0] }
 0x2ea   :  { %v4325_v24 = vpop.eup %4324  ;;  %v1496_v30 = vadd.f32 %v4321_v0, %v1495_v14  ;;  %v3703_v14 = vor.u32 %v4185_v60, %v3700_v13 }
 0x2eb   :  { %v1515_v10 = vadd.f32 %v4323_v4, %v1514_v17  ;;  %v1532_v31 = vmul.f32 %v4325_v24, %v1530_v62  ;;  %v4327_v38 = vpop.eup %4326  ;;  %vm1537_vm13 = vweird.f32 %v4325_v24  ;;  %v4190_v62 = vld [vmem:[#allocation3 + $0xec] sm:$0xf] }
 0x2ec   :  { %v1500_v33 = vsel %vm1499_vm9, %v4321_v0, %v1496_v30  ;;  %vm1538_vm15 = vmor %vm1536_vm14, %vm1537_vm13  ;;  %v3724_v0 = vld [vmem:[#allocation3 + $0xf8] sm:$0xf0]  ;;  %v4186_v17 = vld [vmem:[#allocation3 + $0xcc] sm:$0xf]  ;;  %2088 = vmatpush.bf16.msra.mxu1 %v3703_v14  ;;  %2101 = vmatpush.bf16.msra.mxu2 %v3707_v16 }
 0x2ed   :  { %v1505_v2 = vsel %vm1502_vm11, %v1504_v15, %v1500_v33  ;;  %v1519_v52 = vsel %vm1518_vm10, %v4323_v4, %v1515_v10  ;;  %v1533_v39 = vsub.f32 1.0, %v1532_v31  ;;  %v3727_v1 = vor.u32 %v4190_v62, %v3724_v0  ;;  %v3698_v4 = vld [vmem:[#allocation3 + $0xc0] sm:$0xf]  ;;  %v4183_v15 = vld [vmem:[#allocation3 + $0xac] sm:$0xf0] }
 0x2ee   :  { %v1524_v43 = vsel %vm1521_vm12, %v1523_v32, %v1519_v52  ;;  %v1547_v40 = vmul.f32 %v4327_v38, %v1505_v2  ;;  %v3699_v11 = vor.u32 %v4187_v63, %v3698_v4  ;;  %v3682_v30 = vld [vmem:[#allocation3 + $0xa0] sm:$0xf]  ;;  %v4181_v10 = vld [vmem:[#allocation3 + $0xa4] sm:$0xf]  ;;  %v3684_v32 = vld [vmem:[#allocation3 + $0xb0] sm:$0xf0] }
 0x2ef   :  { %v1546_v3 = vmul.f32 %v1524_v43, %v4722_v9  ;;  %v1534_v5 = vmul.f32 %v4325_v24, %v1533_v39  ;;  %v3714_v9 = vld [vmem:[#allocation3 + $0xe0] sm:$0xf]  ;;  %2113 = vmatpush.bf16.msra.mxu3 %v3727_v1  ;;  %v3683_v31 = vor.u32 %v4183_v15, %v3682_v30  ;;  %v3690_v33 = vld [vmem:[#allocation3 + $0xa8] sm:$0xf]  ;;  %v4184_v38 = vld [vmem:[#allocation3 + $0xb4] sm:$0xf0]  ;;  %v3687_v2 = vor.u32 %v4181_v10, %v3684_v32 }
 0x2f0   :  { %v3715_v47 = vor.u32 %v4191_v18, %v3714_v9  ;;  %v3691_v52 = vor.u32 %v4184_v38, %v3690_v33  ;;  %v4182_v39 = vld [vmem:[#allocation3 + $0xac] sm:$0xf]  ;;  %v3692_v43 = vld [vmem:[#allocation3 + $0xb8] sm:$0xf0]  ;;  %v3650_v18 = vld [vmem:[#allocation3 + $0x60] sm:$0xf]  ;;  %v3659_v1 = vor.u32 %v4176_v56, %v3658_v51 }
 0x2f1   :  { %v4730_v44 = vadd.f32 %v1547_v40, %v1546_v3  ;;  %v1535_v57 = vadd.f32 %v4325_v24, %v1534_v5  ;;  %v3695_v40 = vor.u32 %v4182_v39, %v3692_v43  ;;  %2089 = vmatpush.bf16.msra.mxu1 %v3687_v2  ;;  %v3666_v3 = vld [vmem:[#allocation3 + $0x80] sm:$0xf]  ;;  %v4179_v5 = vld [vmem:[#allocation3 + $0x8c] sm:$0xf0]  ;;  %v3651_v7 = vor.u32 %v4175_v22, %v3650_v18  ;;  %v4174_v4 = vld [vmem:[#allocation3 + $0x6c] sm:$0xf] }
 0x2f2   :  { %2074 = vmatpush.bf16.msra.mxu0 %v3715_v47  ;;  %2102 = vmatpush.bf16.msra.mxu2 %v3691_v52  ;;  %v3667_v59 = vor.u32 %v4179_v5, %v3666_v3  ;;  %v4173_v47 = vld [vmem:[#allocation3 + $0x64] sm:$0xf]  ;;  %v3660_v63 = vld [vmem:[#allocation3 + $0x78] sm:$0xf0]  ;;  %v3642_v15 = vld [vmem:[#allocation3 + $0x48] sm:$0xf] }
 0x2f3   :  { %4328 = vtanh.f32 %v4730_v44  ;;  %v1539_v35 = vsel %vm1538_vm15, %v4325_v24, %v1535_v57  ;;  %v3711_v24 = vor.u32 %v4186_v17, %v3708_v20  ;;  %v4177_v57 = vld [vmem:[#allocation3 + $0x84] sm:$0xf]  ;;  %v3655_v0 = vor.u32 %v4173_v47, %v3652_v55  ;;  %v4172_v10 = vld [vmem:[#allocation3 + $0x54] sm:$0xf0]  ;;  %v3618_v32 = vld [vmem:[#allocation3 + $0x20] sm:$0xf] }
 0x2f4   :  { %v1544_v61 = vsel %vm1541_vm0, %v1543_v50, %v1539_v35  ;;  %v3674_v35 = vld [vmem:[#allocation3 + $0x88] sm:$0xf]  ;;  %v4180_v50 = vld [vmem:[#allocation3 + $0x94] sm:$0xf0]  ;;  %v3663_v13 = vor.u32 %v4174_v4, %v3660_v63  ;;  %v4169_v14 = vld [vmem:[#allocation3 + $0x44] sm:$0xf]  ;;  %v3635_v20 = vor.u32 %v4171_v8, %v3634_v6 }
 0x2f5   :  { %2114 = vmatpush.bf16.msra.mxu3 %v3711_v24  ;;  %v3636_v24 = vld [vmem:[#allocation3 + $0x50] sm:$0xf0]  ;;  %v4167_v33 = vld [vmem:[#allocation3 + $0x2c] sm:$0xf0]  ;;  %v4165_v52 = vld [vmem:[#allocation3 + $0x24] sm:$0xf] }
 0x2f6   :  { %2075 = vmatpush.bf16.msra.mxu0 %v3699_v11  ;;  %v3639_v30 = vor.u32 %v4169_v14, %v3636_v24  ;;  %v3619_v2 = vor.u32 %v4167_v33, %v3618_v32  ;;  %v3620_v39 = vld [vmem:[#allocation3 + $0x30] sm:$0xf0]  ;;  %v3626_v43 = vld [vmem:[#allocation3 + $0x28] sm:$0xf]  ;;  %v4161_v18 = vld [vmem:[#allocation3 + $0x4] sm:$0xf] }
 0x2f7   :  { %v3623_v5 = vor.u32 %v4165_v52, %v3620_v39  ;;  %v3604_v47 = vld [vmem:[#allocation3 + $0x10] sm:$0xf0]  ;;  %v4164_v55 = vld [vmem:[#allocation3 + $0x14] sm:$0xf0] }
 0x2f8   :  { %v3607_v56 = vor.u32 %v4161_v18, %v3604_v47 }
 0x2f9   :  { %v4329_v54 = vpop.eup %4328  ;;  %2115 = vmatpush.bf16.msra.mxu3 %v3695_v40 }
 0x2fa   :  { %v1550_v46 = vmul.f32 %v4329_v54, %v1544_v61  ;;  %2076 = vmatpush.bf16.msra.mxu0 %v3683_v31  ;;  %v3671_v54 = vor.u32 %v4177_v57, %v3668_v12  ;;  %v3675_v61 = vor.u32 %v4180_v50, %v3674_v35  ;;  %v4170_v31 = vld [vmem:[#allocation3 + $0x4c] sm:$0xf]  ;;  %v4168_v57 = vld [vmem:[#allocation3 + $0x34] sm:$0xf0]  ;;  %v3628_v12 = vld [vmem:[#allocation3 + $0x38] sm:$0xf0] }
 0x2fc   :  { %v1551_v53 = vpack.c.bf16 %v1550_v46, %v1550_v46  ;;  %v4178_v46 = vld [vmem:[#allocation3 + $0x8c] sm:$0xf]  ;;  %2090 = vmatpush.bf16.msra.mxu1 %v3671_v54  ;;  %2103 = vmatpush.bf16.msra.mxu2 %v3675_v61  ;;  %v3627_v61 = vor.u32 %v4168_v57, %v3626_v43 }
 0x2fe   :  { %1553 = vst [vmem:[#allocation6 + $0xc] sm:$0xf] %v1551_v53  ;;  %1761 = vmatmul.bf16.vlgmr.msrb.gmra.mxu0 %v1551_v53  ;;  %1774 = vmatmul.bf16.vlgmr.msrb.gmra.mxu1 %v1551_v53 }
 0x2ff   :  { %1787 = vmatmul.bf16.vlgmr.msrb.gmra.mxu2 %v1551_v53  ;;  %1800 = vmatmul.bf16.vlgmr.msrb.gmra.mxu3 %v1551_v53  ;;  %v3676_v53 = vld [vmem:[#allocation3 + $0x98] sm:$0xf0] }
 0x300   :  { %2077 = vmatpush.bf16.msra.mxu0 %v3667_v59  ;;  %v3679_v9 = vor.u32 %v4178_v46, %v3676_v53  ;;  %2091 = vmatpush.bf16.msra.mxu1 %v3655_v0  ;;  %v4166_v59 = vld [vmem:[#allocation3 + $0x2c] sm:$0xf]  ;;  %v3602_v53 = vld [vmem:[#allocation3] sm:$0xf] }
 0x301   :  { %2104 = vmatpush.bf16.msra.mxu2 %v3659_v1  ;;  %v3631_v46 = vor.u32 %v4166_v59, %v3628_v12 }
 0x302   :  { %2116 = vmatpush.bf16.msra.mxu3 %v3679_v9  ;;  %v4163_v9 = vld [vmem:[#allocation3 + $0xc] sm:$0xf0] }
 0x303   :  { %v3603_v22 = vor.u32 %v4163_v9, %v3602_v53 }
 0x304   :  { %2078 = vmatpush.bf16.msra.mxu0 %v3651_v7  ;;  %2092 = vmatpush.bf16.msra.mxu1 %v3639_v30  ;;  %v3610_v7 = vld [vmem:[#allocation3 + $0x8] sm:$0xf] }
 0x306   :  { %2117 = vmatpush.bf16.msra.mxu3 %v3663_v13 }
 0x308   :  { %2079 = vmatpush.bf16.msra.mxu0 %v3635_v20  ;;  %2093 = vmatpush.bf16.msra.mxu1 %v3623_v5 }
 0x30c   :  { %2080 = vmatpush.bf16.msra.mxu0 %v3619_v2  ;;  %2094 = vmatpush.bf16.msra.mxu1 %v3607_v56  ;;  %v4223_v56 = vld [vmem:[#allocation3 + $0xec] sm:$0xf0] }
 0x310   :  { %2081 = vmatpush.bf16.msra.mxu0 %v3603_v22 }
 0x37b   :  { %v1762_v58 = vpop.f32.mrf.mxu0  ;;  %v1775_v62 = vpop.f32.mrf.mxu1 }
 0x37c   :  { %v1805_v60 = vadd.f32 %v1762_v58, %v4651_v19  ;;  %v1806_v11 = vadd.f32 %v1775_v62, %v4654_v21  ;;  %v3643_v19 = vor.u32 %v4172_v10, %v3642_v15  ;;  %v3644_v21 = vld [vmem:[#allocation3 + $0x58] sm:$0xf0]  ;;  %v4162_v58 = vld [vmem:[#allocation3 + $0xc] sm:$0xf] }
 0x37d   :  { %v3647_v38 = vor.u32 %v4170_v31, %v3644_v21  ;;  %v3612_v62 = vld [vmem:[#allocation3 + $0x18] sm:$0xf0] }
 0x37e   :  { %v3597_v16 = vmul.f32 -1.442695, %v1805_v60  ;;  %v3598_v17 = vmul.f32 -1.442695, %v1806_v11  ;;  %2105 = vmatpush.bf16.msra.mxu2 %v3643_v19  ;;  %v3615_v63 = vor.u32 %v4162_v58, %v3612_v62  ;;  %v4221_v58 = vld [vmem:[#allocation3 + $0xe4] sm:$0xf] }
 0x37f   :  { %2118 = vmatpush.bf16.msra.mxu3 %v3647_v38 }
 0x380   :  { %4330 = vpow2.f32 %v3597_v16 }
 0x381   :  { %4332 = vpow2.f32 %v3598_v17 }
 0x382   :  { %v1788_v40 = vpop.f32.mrf.mxu2  ;;  %v1801_v3 = vpop.f32.mrf.mxu3  ;;  %2106 = vmatpush.bf16.msra.mxu2 %v3627_v61 }
 0x383   :  { %v1808_v35 = vadd.f32 %v1801_v3, %v4660_v26  ;;  %v1764_v50 = vpop.f32.mrf.mxu0  ;;  %v1777_v54 = vpop.f32.mrf.mxu1  ;;  %v3611_v26 = vor.u32 %v4164_v55, %v3610_v7  ;;  %2119 = vmatpush.bf16.msra.mxu3 %v3631_v46  ;;  %v1807_v16 = vadd.f32 %v1788_v40, %v4657_v23 }
 0x385   :  { %v3599_v51 = vmul.f32 -1.442695, %v1808_v35 }
 0x386   :  { %v4331_v0 = vpop.eup %4330  ;;  %2107 = vmatpush.bf16.msra.mxu2 %v3611_v26  ;;  %v3853_v26 = vld [vmem:[#allocation3 + $0xe8] sm:$0xf] }
 0x387   :  { %v4333_v1 = vpop.eup %4332  ;;  %v1812_v4 = vadd.f32 1.0, %v4331_v0  ;;  %4334 = vpow2.f32 %v3599_v51  ;;  %2120 = vmatpush.bf16.msra.mxu3 %v3615_v63  ;;  %v3847_v0 = vld [vmem:[#allocation3 + $0xf0] sm:$0xf0] }
 0x388   :  { %v1831_v60 = vadd.f32 1.0, %v4333_v1  ;;  %v4224_v1 = vld [vmem:[#allocation3 + $0xf4] sm:$0xf0] }
 0x389   :  { %4336 = vrcp.f32 %v1812_v4  ;;  %v1824_v10 = vand.u32 2147483648, %v1812_v4  ;;  %v1822_v21 = vand.u32 2147483647, %v1812_v4  ;;  %vm1818_vm3 = vweird.f32 %v1812_v4 }
 0x38a   :  { %4338 = vrcp.f32 %v1831_v60  ;;  %v1790_v11 = vpop.f32.mrf.mxu2  ;;  %v1803_v13 = vpop.f32.mrf.mxu3  ;;  %v1843_v31 = vand.u32 2147483648, %v1831_v60  ;;  %v1841_v33 = vand.u32 2147483647, %v1831_v60  ;;  %vm1837_vm4 = vweird.f32 %v1831_v60 }
 0x38b   :  { %v1825_v23 = vor.u32 1.1754944e-38, %v1824_v10  ;;  %vm1823_vm7 = vcmp.eq.f32.partialorder %v1822_v21, 8.507059e+37  ;;  %v3854_v63 = vor.u32 %v4224_v1, %v3853_v26  ;;  %v3855_v11 = vld [vmem:[#allocation3 + $0xf8] sm:$0xf0]  ;;  %v4218_v10 = vld [vmem:[#allocation3 + $0xcc] sm:$0xf] }
 0x38c   :  { %v1844_v43 = vor.u32 1.1754944e-38, %v1843_v31  ;;  %vm1842_vm8 = vcmp.eq.f32.partialorder %v1841_v33, 8.507059e+37  ;;  %v3839_v31 = vld [vmem:[#allocation3 + $0xd8] sm:$0xf0]  ;;  %v3813_v21 = vld [vmem:[#allocation3 + $0xa0] sm:$0xf] }
 0x38d   :  { %v4335_v6 = vpop.eup %4334  ;;  %2421 = vmatpush.bf16.msrb.mxu2 %v3854_v63  ;;  %v4213_v33 = vld [vmem:[#allocation3 + $0xa4] sm:$0xf]  ;;  %v4206_v63 = vld [vmem:[#allocation3 + $0x6c] sm:$0xf] }
 0x38e   :  { %v1851_v8 = vadd.f32 1.0, %v4335_v6  ;;  %v3829_v6 = vld [vmem:[#allocation3 + $0xc0] sm:$0xf] }
 0x38f   :  { %v4337_v14 = vpop.eup %4336 }
 0x390   :  { %v4339_v17 = vpop.eup %4338  ;;  %v1814_v20 = vmul.f32 %v4337_v14, %v1812_v4  ;;  %4340 = vrcp.f32 %v1851_v8  ;;  %vm1819_vm1 = vweird.f32 %v4337_v14  ;;  %v1863_v53 = vand.u32 2147483648, %v1851_v8 }
 0x391   :  { %v1833_v24 = vmul.f32 %v4339_v17, %v1831_v60  ;;  %4342 = vtanh.f32 %v1807_v16  ;;  %vm1838_vm2 = vweird.f32 %v4339_v17  ;;  %vm1820_vm5 = vmor %vm1818_vm3, %vm1819_vm1  ;;  %vm1857_vm10 = vweird.f32 %v1851_v8  ;;  %v4222_v60 = vld [vmem:[#allocation3 + $0xec] sm:$0xf] }
 0x392   :  { %v1815_v30 = vsub.f32 1.0, %v1814_v20  ;;  %vm1839_vm6 = vmor %vm1837_vm4, %vm1838_vm2  ;;  %v1861_v9 = vand.u32 2147483647, %v1851_v8  ;;  %v1864_v22 = vor.u32 1.1754944e-38, %v1863_v53  ;;  %v3850_v4 = vor.u32 %v4221_v58, %v3847_v0  ;;  %v3837_v20 = vld [vmem:[#allocation3 + $0xc8] sm:$0xf] }
 0x393   :  { %v1834_v15 = vsub.f32 1.0, %v1833_v24  ;;  %v3858_v13 = vor.u32 %v4222_v60, %v3855_v11  ;;  %v4220_v24 = vld [vmem:[#allocation3 + $0xd4] sm:$0xf0]  ;;  %v3789_v58 = vld [vmem:[#allocation3 + $0x68] sm:$0xf] }
 0x394   :  { %v1816_v19 = vmul.f32 %v4337_v14, %v1815_v30  ;;  %vm1862_vm12 = vcmp.eq.f32.partialorder %v1861_v9, 8.507059e+37  ;;  %2408 = vmatpush.bf16.msrb.mxu1 %v3850_v4  ;;  %v3791_v60 = vld [vmem:[#allocation3 + $0x78] sm:$0xf0] }
 0x395   :  { %v1835_v32 = vmul.f32 %v4339_v17, %v1834_v15  ;;  %2434 = vmatpush.bf16.msrb.mxu3 %v3858_v13  ;;  %v3838_v15 = vor.u32 %v4220_v24, %v3837_v20 }
 0x396   :  { %v4341_v38 = vpop.eup %4340  ;;  %v1817_v2 = vadd.f32 %v4337_v14, %v1816_v19  ;;  %v3842_v19 = vor.u32 %v4218_v10, %v3839_v31  ;;  %v3773_v10 = vld [vmem:[#allocation3 + $0x48] sm:$0xf]  ;;  %v4204_v31 = vld [vmem:[#allocation3 + $0x54] sm:$0xf0] }
 0x397   :  { %v1836_v52 = vadd.f32 %v4339_v17, %v1835_v32  ;;  %v1853_v39 = vmul.f32 %v4341_v38, %v1851_v8  ;;  %v4343_v3 = vpop.eup %4342  ;;  %vm1858_vm9 = vweird.f32 %v4341_v38  ;;  %v4219_v8 = vld [vmem:[#allocation3 + $0xcc] sm:$0xf0]  ;;  %2422 = vmatpush.bf16.msrb.mxu2 %v3838_v15 }
 0x398   :  { %v1821_v40 = vsel %vm1820_vm5, %v4337_v14, %v1817_v2  ;;  %vm1859_vm11 = vmor %vm1857_vm10, %vm1858_vm9  ;;  %v4217_v14 = vld [vmem:[#allocation3 + $0xc4] sm:$0xf]  ;;  %v3830_v16 = vor.u32 %v4219_v8, %v3829_v6  ;;  %v4215_v32 = vld [vmem:[#allocation3 + $0xac] sm:$0xf0]  ;;  %v3794_v6 = vor.u32 %v4206_v63, %v3791_v60 }
 0x399   :  { %v1826_v5 = vsel %vm1823_vm7, %v1825_v23, %v1821_v40  ;;  %v1840_v57 = vsel %vm1839_vm6, %v4339_v17, %v1836_v52  ;;  %v1854_v59 = vsub.f32 1.0, %v1853_v39  ;;  %v3831_v17 = vld [vmem:[#allocation3 + $0xd0] sm:$0xf0]  ;;  %2435 = vmatpush.bf16.msrb.mxu3 %v3842_v19  ;;  %v3821_v23 = vld [vmem:[#allocation3 + $0xa8] sm:$0xf] }
 0x39a   :  { %v1845_v12 = vsel %vm1842_vm8, %v1844_v43, %v1840_v57  ;;  %v1868_v35 = vmul.f32 %v4343_v3, %v1826_v5  ;;  %v3834_v30 = vor.u32 %v4217_v14, %v3831_v17  ;;  %v3815_v2 = vld [vmem:[#allocation3 + $0xb0] sm:$0xf0]  ;;  %v4216_v52 = vld [vmem:[#allocation3 + $0xb4] sm:$0xf0]  ;;  %v4214_v40 = vld [vmem:[#allocation3 + $0xac] sm:$0xf] }
 0x39b   :  { %v1867_v50 = vmul.f32 %v1845_v12, %v4730_v44  ;;  %v1855_v54 = vmul.f32 %v4341_v38, %v1854_v59  ;;  %v3845_v44 = vld [vmem:[#allocation3 + $0xe0] sm:$0xf]  ;;  %v3818_v39 = vor.u32 %v4213_v33, %v3815_v2  ;;  %v3822_v43 = vor.u32 %v4216_v52, %v3821_v23  ;;  %v3823_v3 = vld [vmem:[#allocation3 + $0xb8] sm:$0xf0]  ;;  %v4211_v59 = vld [vmem:[#allocation3 + $0x8c] sm:$0xf0] }
 0x39c   :  { %v3846_v62 = vor.u32 %v4223_v56, %v3845_v44  ;;  %2409 = vmatpush.bf16.msrb.mxu1 %v3834_v30  ;;  %v3826_v5 = vor.u32 %v4214_v40, %v3823_v3  ;;  %v3797_v57 = vld [vmem:[#allocation3 + $0x80] sm:$0xf]  ;;  %v4209_v12 = vld [vmem:[#allocation3 + $0x84] sm:$0xf]  ;;  %v3783_v56 = vld [vmem:[#allocation3 + $0x70] sm:$0xf0] }
 0x39d   :  { %v4738_v61 = vadd.f32 %v1868_v35, %v1867_v50  ;;  %v1856_v46 = vadd.f32 %v4341_v38, %v1855_v54  ;;  %2423 = vmatpush.bf16.msrb.mxu2 %v3822_v43  ;;  %v3798_v35 = vor.u32 %v4211_v59, %v3797_v57  ;;  %v3799_v50 = vld [vmem:[#allocation3 + $0x90] sm:$0xf0]  ;;  %v3805_v54 = vld [vmem:[#allocation3 + $0x88] sm:$0xf]  ;;  %v3765_v8 = vld [vmem:[#allocation3 + $0x40] sm:$0xf] }
 0x39e   :  { %2395 = vmatpush.bf16.msrb.mxu0 %v3846_v62  ;;  %2436 = vmatpush.bf16.msrb.mxu3 %v3826_v5  ;;  %v3802_v53 = vor.u32 %v4209_v12, %v3799_v50  ;;  %v4208_v62 = vld [vmem:[#allocation3 + $0x74] sm:$0xf0]  ;;  %v4203_v14 = vld [vmem:[#allocation3 + $0x4c] sm:$0xf0]  ;;  %v3767_v30 = vld [vmem:[#allocation3 + $0x50] sm:$0xf0] }
 0x39f   :  { %4344 = vtanh.f32 %v4738_v61  ;;  %v1860_v18 = vsel %vm1859_vm11, %v4341_v38, %v1856_v46  ;;  %v3814_v38 = vor.u32 %v4215_v32, %v3813_v21  ;;  %v4212_v46 = vld [vmem:[#allocation3 + $0x94] sm:$0xf0]  ;;  %v3790_v4 = vor.u32 %v4208_v62, %v3789_v58  ;;  %v4202_v19 = vld [vmem:[#allocation3 + $0x4c] sm:$0xf]  ;;  %v3749_v21 = vld [vmem:[#allocation3 + $0x20] sm:$0xf] }
 0x3a0   :  { %v1865_v7 = vsel %vm1862_vm12, %v1864_v22, %v1860_v18  ;;  %2410 = vmatpush.bf16.msrb.mxu1 %v3818_v39  ;;  %v3806_v9 = vor.u32 %v4212_v46, %v3805_v54  ;;  %v4210_v18 = vld [vmem:[#allocation3 + $0x8c] sm:$0xf]  ;;  %v3807_v22 = vld [vmem:[#allocation3 + $0x98] sm:$0xf0]  ;;  %v3766_v24 = vor.u32 %v4203_v14, %v3765_v8  ;;  %v4199_v32 = vld [vmem:[#allocation3 + $0x2c] sm:$0xf0] }
 0x3a1   :  { %v4197_v2 = vld [vmem:[#allocation3 + $0x24] sm:$0xf]  ;;  %v3751_v23 = vld [vmem:[#allocation3 + $0x30] sm:$0xf0]  ;;  %v3757_v52 = vld [vmem:[#allocation3 + $0x28] sm:$0xf] }
 0x3a2   :  { %2396 = vmatpush.bf16.msrb.mxu0 %v3830_v16  ;;  %2424 = vmatpush.bf16.msrb.mxu2 %v3806_v9  ;;  %v4201_v16 = vld [vmem:[#allocation3 + $0x44] sm:$0xf]  ;;  %v3754_v40 = vor.u32 %v4197_v2, %v3751_v23  ;;  %v4200_v3 = vld [vmem:[#allocation3 + $0x34] sm:$0xf0]  ;;  %v4198_v5 = vld [vmem:[#allocation3 + $0x2c] sm:$0xf] }
 0x3a3   :  { %v3770_v15 = vor.u32 %v4201_v16, %v3767_v30  ;;  %v3759_v57 = vld [vmem:[#allocation3 + $0x38] sm:$0xf0]  ;;  %v3758_v50 = vor.u32 %v4200_v3, %v3757_v52  ;;  %v3733_v46 = vld [vmem:[#allocation3] sm:$0xf]  ;;  %v4193_v9 = vld [vmem:[#allocation3 + $0x4] sm:$0xf] }
 0x3a4   :  { %2411 = vmatpush.bf16.msrb.mxu1 %v3802_v53  ;;  %v3762_v54 = vor.u32 %v4198_v5, %v3759_v57  ;;  %v4195_v53 = vld [vmem:[#allocation3 + $0xc] sm:$0xf0] }
 0x3a5   :  { %v4345_v47 = vpop.eup %4344 }
 0x3a6   :  { %v1871_v55 = vmul.f32 %v4345_v47, %v1865_v7  ;;  %2397 = vmatpush.bf16.msrb.mxu0 %v3814_v38  ;;  %v3810_v47 = vor.u32 %v4210_v18, %v3807_v22  ;;  %v3781_v7 = vld [vmem:[#allocation3 + $0x60] sm:$0xf]  ;;  %2425 = vmatpush.bf16.msrb.mxu2 %v3790_v4  ;;  %v3750_v38 = vor.u32 %v4199_v32, %v3749_v21  ;;  %v3735_v22 = vld [vmem:[#allocation3 + $0x10] sm:$0xf0] }
 0x3a7   :  { %v3734_v18 = vor.u32 %v4195_v53, %v3733_v46 }
 0x3a8   :  { %v1872_v51 = vpack.c.bf16 %v1871_v55, %v1871_v55  ;;  %v4207_v55 = vld [vmem:[#allocation3 + $0x6c] sm:$0xf0]  ;;  %2437 = vmatpush.bf16.msrb.mxu3 %v3810_v47  ;;  %v3741_v47 = vld [vmem:[#allocation3 + $0x8] sm:$0xf] }
 0x3a9   :  { %v3782_v44 = vor.u32 %v4207_v55, %v3781_v7  ;;  %v4196_v7 = vld [vmem:[#allocation3 + $0x14] sm:$0xf0] }
 0x3aa   :  { %1874 = vst [vmem:[#allocation6 + $0x10] sm:$0xf] %v1872_v51  ;;  %2082 = vmatmul.bf16.vlgmr.msra.gmra.mxu0 %v1872_v51  ;;  %2095 = vmatmul.bf16.vlgmr.msra.gmra.mxu1 %v1872_v51 }
 0x3ab   :  { %2108 = vmatmul.bf16.vlgmr.msra.gmra.mxu2 %v1872_v51  ;;  %2121 = vmatmul.bf16.vlgmr.msra.gmra.mxu3 %v1872_v51  ;;  %v4205_v51 = vld [vmem:[#allocation3 + $0x64] sm:$0xf] }
 0x3ac   :  { %2398 = vmatpush.bf16.msrb.mxu0 %v3798_v35  ;;  %v3786_v1 = vor.u32 %v4205_v51, %v3783_v56  ;;  %2438 = vmatpush.bf16.msrb.mxu3 %v3794_v6  ;;  %v3738_v51 = vor.u32 %v4193_v9, %v3735_v22  ;;  %v3743_v56 = vld [vmem:[#allocation3 + $0x18] sm:$0xf0]  ;;  %v4255_v22 = vld [vmem:[#allocation3 + $0xec] sm:$0xf0] }
 0x3ae   :  { %2412 = vmatpush.bf16.msrb.mxu1 %v3786_v1 }
 0x3b0   :  { %2399 = vmatpush.bf16.msrb.mxu0 %v3782_v44  ;;  %v4194_v44 = vld [vmem:[#allocation3 + $0xc] sm:$0xf] }
 0x3b2   :  { %2413 = vmatpush.bf16.msrb.mxu1 %v3770_v15 }
 0x3b4   :  { %2400 = vmatpush.bf16.msrb.mxu0 %v3766_v24 }
 0x3b6   :  { %2414 = vmatpush.bf16.msrb.mxu1 %v3754_v40 }
 0x3b8   :  { %2401 = vmatpush.bf16.msrb.mxu0 %v3750_v38 }
 0x3ba   :  { %2415 = vmatpush.bf16.msrb.mxu1 %v3738_v51  ;;  %v3984_v51 = vld [vmem:[#allocation3 + $0xe8] sm:$0xf] }
 0x3bc   :  { %2402 = vmatpush.bf16.msrb.mxu0 %v3734_v18 }
 0x427   :  { %v2083_v0 = vpop.f32.mrf.mxu0  ;;  %v2096_v26 = vpop.f32.mrf.mxu1 }
 0x428   :  { %v2126_v11 = vadd.f32 %v2083_v0, %v4663_v27  ;;  %v2127_v13 = vadd.f32 %v2096_v26, %v4666_v29  ;;  %v3774_v27 = vor.u32 %v4204_v31, %v3773_v10  ;;  %v3775_v29 = vld [vmem:[#allocation3 + $0x58] sm:$0xf0]  ;;  %v3746_v26 = vor.u32 %v4194_v44, %v3743_v56  ;;  %v4256_v44 = vld [vmem:[#allocation3 + $0xf4] sm:$0xf0] }
 0x429   :  { %v3778_v33 = vor.u32 %v4202_v19, %v3775_v29 }
 0x42a   :  { %v3728_v17 = vmul.f32 -1.442695, %v2126_v11  ;;  %v3729_v20 = vmul.f32 -1.442695, %v2127_v13  ;;  %2426 = vmatpush.bf16.msrb.mxu2 %v3774_v27 }
 0x42b   :  { %2439 = vmatpush.bf16.msrb.mxu3 %v3778_v33 }
 0x42c   :  { %4346 = vpow2.f32 %v3728_v17 }
 0x42d   :  { %4348 = vpow2.f32 %v3729_v20 }
 0x42e   :  { %v2109_v39 = vpop.f32.mrf.mxu2  ;;  %v2122_v43 = vpop.f32.mrf.mxu3  ;;  %2427 = vmatpush.bf16.msrb.mxu2 %v3758_v50 }
 0x42f   :  { %v2129_v59 = vadd.f32 %v2122_v43, %v4672_v41  ;;  %v2085_v12 = vpop.f32.mrf.mxu0  ;;  %v2098_v35 = vpop.f32.mrf.mxu1  ;;  %v3742_v41 = vor.u32 %v4196_v7, %v3741_v47  ;;  %2440 = vmatpush.bf16.msrb.mxu3 %v3762_v54  ;;  %v2128_v6 = vadd.f32 %v2109_v39, %v4669_v34  ;;  %v4253_v47 = vld [vmem:[#allocation3 + $0xe4] sm:$0xf] }
 0x431   :  { %v3730_v55 = vmul.f32 -1.442695, %v2129_v59 }
 0x432   :  { %v4347_v58 = vpop.eup %4346  ;;  %2428 = vmatpush.bf16.msrb.mxu2 %v3742_v41  ;;  %v4254_v41 = vld [vmem:[#allocation3 + $0xec] sm:$0xf] }
 0x433   :  { %v4349_v62 = vpop.eup %4348  ;;  %v2133_v0 = vadd.f32 1.0, %v4347_v58  ;;  %4350 = vpow2.f32 %v3730_v55  ;;  %2441 = vmatpush.bf16.msrb.mxu3 %v3746_v26  ;;  %v3978_v55 = vld [vmem:[#allocation3 + $0xf0] sm:$0xf0]  ;;  %v3985_v58 = vor.u32 %v4256_v44, %v3984_v51  ;;  %v3960_v26 = vld [vmem:[#allocation3 + $0xc0] sm:$0xf] }
 0x434   :  { %v2152_v1 = vadd.f32 1.0, %v4349_v62  ;;  %v3981_v56 = vor.u32 %v4253_v47, %v3978_v55  ;;  %v3986_v62 = vld [vmem:[#allocation3 + $0xf8] sm:$0xf0]  ;;  %v4238_v55 = vld [vmem:[#allocation3 + $0x6c] sm:$0xf] }
 0x435   :  { %4352 = vrcp.f32 %v2133_v0  ;;  %v2145_v24 = vand.u32 2147483648, %v2133_v0  ;;  %v2143_v10 = vand.u32 2147483647, %v2133_v0  ;;  %vm2139_vm15 = vweird.f32 %v2133_v0  ;;  %v3922_v51 = vld [vmem:[#allocation3 + $0x78] sm:$0xf0] }
 0x436   :  { %4354 = vrcp.f32 %v2152_v1  ;;  %v2111_v4 = vpop.f32.mrf.mxu2  ;;  %v2124_v63 = vpop.f32.mrf.mxu3  ;;  %v2164_v30 = vand.u32 2147483648, %v2152_v1  ;;  %v2162_v19 = vand.u32 2147483647, %v2152_v1  ;;  %vm2158_vm0 = vweird.f32 %v2152_v1  ;;  %2729 = vmatpush.bf16.msra.mxu1 %v3981_v56  ;;  %2742 = vmatpush.bf16.msra.mxu2 %v3985_v58 }
 0x437   :  { %v2146_v34 = vor.u32 1.1754944e-38, %v2145_v24  ;;  %vm2144_vm3 = vcmp.eq.f32.partialorder %v2143_v10, 8.507059e+37  ;;  %v4249_v4 = vld [vmem:[#allocation3 + $0xc4] sm:$0xf]  ;;  %v4247_v24 = vld [vmem:[#allocation3 + $0xac] sm:$0xf0]  ;;  %v3925_v58 = vor.u32 %v4238_v55, %v3922_v51 }
 0x438   :  { %v2165_v33 = vor.u32 1.1754944e-38, %v2164_v30  ;;  %vm2163_vm4 = vcmp.eq.f32.partialorder %v2162_v19, 8.507059e+37  ;;  %v4245_v30 = vld [vmem:[#allocation3 + $0xa4] sm:$0xf]  ;;  %v3946_v10 = vld [vmem:[#allocation3 + $0xb0] sm:$0xf0] }
 0x439   :  { %v4351_v60 = vpop.eup %4350  ;;  %v4248_v19 = vld [vmem:[#allocation3 + $0xb4] sm:$0xf0] }
 0x43a   :  { %v2172_v11 = vadd.f32 1.0, %v4351_v60  ;;  %v3962_v60 = vld [vmem:[#allocation3 + $0xd0] sm:$0xf0] }
 0x43b   :  { %v4353_v13 = vpop.eup %4352 }
 0x43c   :  { %v4355_v8 = vpop.eup %4354  ;;  %v2135_v14 = vmul.f32 %v4353_v13, %v2133_v0  ;;  %4356 = vrcp.f32 %v2172_v11  ;;  %vm2140_vm13 = vweird.f32 %v4353_v13  ;;  %v2184_v12 = vand.u32 2147483648, %v2172_v11 }
 0x43d   :  { %v2154_v16 = vmul.f32 %v4355_v8, %v2152_v1  ;;  %4358 = vtanh.f32 %v2128_v6  ;;  %vm2159_vm14 = vweird.f32 %v4355_v8  ;;  %vm2141_vm1 = vmor %vm2139_vm15, %vm2140_vm13  ;;  %vm2178_vm6 = vweird.f32 %v2172_v11  ;;  %v4251_v1 = vld [vmem:[#allocation3 + $0xcc] sm:$0xf0] }
 0x43e   :  { %v2136_v17 = vsub.f32 1.0, %v2135_v14  ;;  %vm2160_vm2 = vmor %vm2158_vm0, %vm2159_vm14  ;;  %v2182_v35 = vand.u32 2147483647, %v2172_v11  ;;  %v2185_v54 = vor.u32 1.1754944e-38, %v2184_v12  ;;  %v3989_v0 = vor.u32 %v4254_v41, %v3986_v62  ;;  %v4250_v14 = vld [vmem:[#allocation3 + $0xcc] sm:$0xf] }
 0x43f   :  { %v2155_v20 = vsub.f32 1.0, %v2154_v16  ;;  %v3961_v63 = vor.u32 %v4251_v1, %v3960_v26  ;;  %v3965_v6 = vor.u32 %v4249_v4, %v3962_v60  ;;  %v3970_v16 = vld [vmem:[#allocation3 + $0xd8] sm:$0xf0]  ;;  %v3896_v41 = vld [vmem:[#allocation3 + $0x40] sm:$0xf] }
 0x440   :  { %v2137_v15 = vmul.f32 %v4353_v13, %v2136_v17  ;;  %vm2183_vm8 = vcmp.eq.f32.partialorder %v2182_v35, 8.507059e+37  ;;  %2755 = vmatpush.bf16.msra.mxu3 %v3989_v0  ;;  %v3973_v17 = vor.u32 %v4250_v14, %v3970_v16  ;;  %v3912_v35 = vld [vmem:[#allocation3 + $0x60] sm:$0xf]  ;;  %v4235_v62 = vld [vmem:[#allocation3 + $0x4c] sm:$0xf0] }
 0x441   :  { %v2156_v31 = vmul.f32 %v4355_v8, %v2155_v20  ;;  %2730 = vmatpush.bf16.msra.mxu1 %v3965_v6  ;;  %v3944_v20 = vld [vmem:[#allocation3 + $0xa0] sm:$0xf]  ;;  %v4233_v0 = vld [vmem:[#allocation3 + $0x44] sm:$0xf]  ;;  %v3897_v4 = vor.u32 %v4235_v62, %v3896_v41  ;;  %v4234_v6 = vld [vmem:[#allocation3 + $0x4c] sm:$0xf] }
 0x442   :  { %v4357_v27 = vpop.eup %4356  ;;  %v2138_v29 = vadd.f32 %v4353_v13, %v2137_v15  ;;  %v3945_v15 = vor.u32 %v4247_v24, %v3944_v20  ;;  %v4231_v14 = vld [vmem:[#allocation3 + $0x2c] sm:$0xf0]  ;;  %v4229_v20 = vld [vmem:[#allocation3 + $0x24] sm:$0xf]  ;;  %v3882_v24 = vld [vmem:[#allocation3 + $0x30] sm:$0xf0] }
 0x443   :  { %v2157_v21 = vadd.f32 %v4355_v8, %v2156_v31  ;;  %v2174_v32 = vmul.f32 %v4357_v27, %v2172_v11  ;;  %v4359_v2 = vpop.eup %4358  ;;  %vm2179_vm5 = vweird.f32 %v4357_v27  ;;  %v3968_v11 = vld [vmem:[#allocation3 + $0xc8] sm:$0xf] }
 0x444   :  { %v2142_v38 = vsel %vm2141_vm1, %v4353_v13, %v2138_v29  ;;  %vm2180_vm7 = vmor %vm2178_vm6, %vm2179_vm5  ;;  %v4252_v13 = vld [vmem:[#allocation3 + $0xd4] sm:$0xf0]  ;;  %2756 = vmatpush.bf16.msra.mxu3 %v3973_v17  ;;  %v3952_v31 = vld [vmem:[#allocation3 + $0xa8] sm:$0xf] }
 0x445   :  { %v2147_v23 = vsel %vm2144_vm3, %v2146_v34, %v2142_v38  ;;  %v2161_v52 = vsel %vm2160_vm2, %v4355_v8, %v2157_v21  ;;  %v2175_v39 = vsub.f32 1.0, %v2174_v32  ;;  %v3969_v8 = vor.u32 %v4252_v13, %v3968_v11  ;;  %v4246_v34 = vld [vmem:[#allocation3 + $0xac] sm:$0xf]  ;;  %v3954_v21 = vld [vmem:[#allocation3 + $0xb8] sm:$0xf0] }
 0x446   :  { %v2166_v43 = vsel %vm2163_vm4, %v2165_v33, %v2161_v52  ;;  %v2189_v40 = vmul.f32 %v4359_v2, %v2147_v23  ;;  %v3953_v29 = vor.u32 %v4248_v19, %v3952_v31  ;;  %v3957_v32 = vor.u32 %v4246_v34, %v3954_v21  ;;  %v3928_v33 = vld [vmem:[#allocation3 + $0x80] sm:$0xf]  ;;  %v4243_v38 = vld [vmem:[#allocation3 + $0x8c] sm:$0xf0]  ;;  %v4241_v2 = vld [vmem:[#allocation3 + $0x84] sm:$0xf] }
 0x447   :  { %v2188_v3 = vmul.f32 %v2166_v43, %v4738_v61  ;;  %v2176_v5 = vmul.f32 %v4357_v27, %v2175_v39  ;;  %v3976_v61 = vld [vmem:[#allocation3 + $0xe0] sm:$0xf]  ;;  %2743 = vmatpush.bf16.msra.mxu2 %v3969_v8  ;;  %v3929_v23 = vor.u32 %v4243_v38, %v3928_v33  ;;  %v3930_v52 = vld [vmem:[#allocation3 + $0x90] sm:$0xf0]  ;;  %v3936_v39 = vld [vmem:[#allocation3 + $0x88] sm:$0xf]  ;;  %v3885_v31 = vor.u32 %v4229_v20, %v3882_v24 }
 0x448   :  { %v3977_v7 = vor.u32 %v4255_v22, %v3976_v61  ;;  %2757 = vmatpush.bf16.msra.mxu3 %v3957_v32  ;;  %v4244_v43 = vld [vmem:[#allocation3 + $0x94] sm:$0xf0]  ;;  %v3904_v11 = vld [vmem:[#allocation3 + $0x48] sm:$0xf]  ;;  %v3880_v8 = vld [vmem:[#allocation3 + $0x20] sm:$0xf] }
 0x449   :  { %v4746_v57 = vadd.f32 %v2189_v40, %v2188_v3  ;;  %v2177_v59 = vadd.f32 %v4357_v27, %v2176_v5  ;;  %v3933_v40 = vor.u32 %v4241_v2, %v3930_v52  ;;  %v3937_v3 = vor.u32 %v4244_v43, %v3936_v39  ;;  %v4242_v5 = vld [vmem:[#allocation3 + $0x8c] sm:$0xf]  ;;  %v4236_v13 = vld [vmem:[#allocation3 + $0x54] sm:$0xf0]  ;;  %v3864_v2 = vld [vmem:[#allocation3] sm:$0xf] }
 0x44a   :  { %2716 = vmatpush.bf16.msra.mxu0 %v3977_v7  ;;  %v3881_v17 = vor.u32 %v4231_v14, %v3880_v8  ;;  %v4232_v19 = vld [vmem:[#allocation3 + $0x34] sm:$0xf0]  ;;  %v4225_v52 = vld [vmem:[#allocation3 + $0x4] sm:$0xf]  ;;  %v3866_v43 = vld [vmem:[#allocation3 + $0x10] sm:$0xf0] }
 0x44b   :  { %4360 = vtanh.f32 %v4746_v57  ;;  %v2181_v50 = vsel %vm2180_vm7, %v4357_v27, %v2177_v59  ;;  %v3949_v27 = vor.u32 %v4245_v30, %v3946_v10  ;;  %2744 = vmatpush.bf16.msra.mxu2 %v3953_v29  ;;  %v3938_v59 = vld [vmem:[#allocation3 + $0x98] sm:$0xf0]  ;;  %v3888_v30 = vld [vmem:[#allocation3 + $0x28] sm:$0xf] }
 0x44c   :  { %v2186_v53 = vsel %vm2183_vm8, %v2185_v54, %v2181_v50  ;;  %v3941_v12 = vor.u32 %v4242_v5, %v3938_v59  ;;  %v4239_v50 = vld [vmem:[#allocation3 + $0x6c] sm:$0xf0]  ;;  %v4237_v54 = vld [vmem:[#allocation3 + $0x64] sm:$0xf]  ;;  %v3890_v29 = vld [vmem:[#allocation3 + $0x38] sm:$0xf0]  ;;  %v3889_v33 = vor.u32 %v4232_v19, %v3888_v30  ;;  %v3869_v59 = vor.u32 %v4225_v52, %v3866_v43 }
 0x44d   :  { %2731 = vmatpush.bf16.msra.mxu1 %v3949_v27  ;;  %v4230_v27 = vld [vmem:[#allocation3 + $0x2c] sm:$0xf] }
 0x44e   :  { %2717 = vmatpush.bf16.msra.mxu0 %v3961_v63  ;;  %2758 = vmatpush.bf16.msra.mxu3 %v3941_v12  ;;  %v3898_v63 = vld [vmem:[#allocation3 + $0x50] sm:$0xf0]  ;;  %v3893_v38 = vor.u32 %v4230_v27, %v3890_v29  ;;  %v4226_v12 = vld [vmem:[#allocation3 + $0xc] sm:$0xf] }
 0x44f   :  { %2745 = vmatpush.bf16.msra.mxu2 %v3937_v3  ;;  %v3901_v60 = vor.u32 %v4233_v0, %v3898_v63  ;;  %v4228_v3 = vld [vmem:[#allocation3 + $0x14] sm:$0xf0] }
 0x451   :  { %v4361_v46 = vpop.eup %4360  ;;  %2732 = vmatpush.bf16.msra.mxu1 %v3933_v40  ;;  %v3872_v40 = vld [vmem:[#allocation3 + $0x8] sm:$0xf] }
 0x452   :  { %v2192_v9 = vmul.f32 %v4361_v46, %v2186_v53  ;;  %2718 = vmatpush.bf16.msra.mxu0 %v3945_v15  ;;  %v3913_v46 = vor.u32 %v4239_v50, %v3912_v35  ;;  %v3914_v53 = vld [vmem:[#allocation3 + $0x70] sm:$0xf0]  ;;  %2759 = vmatpush.bf16.msra.mxu3 %v3925_v58  ;;  %v3874_v35 = vld [vmem:[#allocation3 + $0x18] sm:$0xf0] }
 0x453   :  { %v3917_v47 = vor.u32 %v4237_v54, %v3914_v53  ;;  %v3877_v53 = vor.u32 %v4226_v12, %v3874_v35 }
 0x454   :  { %v2193_v18 = vpack.c.bf16 %v2192_v9, %v2192_v9  ;;  %v3920_v9 = vld [vmem:[#allocation3 + $0x68] sm:$0xf] }
 0x455   :  { %2733 = vmatpush.bf16.msra.mxu1 %v3917_v47 }
 0x456   :  { %2195 = vst [vmem:[#allocation6 + $0x14] sm:$0xf] %v2193_v18  ;;  %2403 = vmatmul.bf16.vlgmr.msrb.gmra.mxu0 %v2193_v18  ;;  %2416 = vmatmul.bf16.vlgmr.msrb.gmra.mxu1 %v2193_v18 }
 0x457   :  { %2429 = vmatmul.bf16.vlgmr.msrb.gmra.mxu2 %v2193_v18  ;;  %2442 = vmatmul.bf16.vlgmr.msrb.gmra.mxu3 %v2193_v18  ;;  %v4240_v18 = vld [vmem:[#allocation3 + $0x74] sm:$0xf0] }
 0x458   :  { %2719 = vmatpush.bf16.msra.mxu0 %v3929_v23  ;;  %v3921_v7 = vor.u32 %v4240_v18, %v3920_v9  ;;  %v4227_v23 = vld [vmem:[#allocation3 + $0xc] sm:$0xf0] }
 0x459   :  { %2734 = vmatpush.bf16.msra.mxu1 %v3901_v60  ;;  %v3865_v39 = vor.u32 %v4227_v23, %v3864_v2 }
 0x45a   :  { %2746 = vmatpush.bf16.msra.mxu2 %v3921_v7 }
 0x45c   :  { %2720 = vmatpush.bf16.msra.mxu0 %v3913_v46 }
 0x45d   :  { %2735 = vmatpush.bf16.msra.mxu1 %v3885_v31 }
 0x460   :  { %2721 = vmatpush.bf16.msra.mxu0 %v3897_v4 }
 0x461   :  { %2736 = vmatpush.bf16.msra.mxu1 %v3869_v59 }
 0x464   :  { %2722 = vmatpush.bf16.msra.mxu0 %v3881_v17 }
 0x468   :  { %2723 = vmatpush.bf16.msra.mxu0 %v3865_v39 }
 0x4d3   :  { %v2404_v61 = vpop.f32.mrf.mxu0  ;;  %v2417_v22 = vpop.f32.mrf.mxu1 }
 0x4d4   :  { %v2447_v44 = vadd.f32 %v2404_v61, %v4675_v42  ;;  %v2448_v56 = vadd.f32 %v2417_v22, %v4678_v48  ;;  %v3905_v42 = vor.u32 %v4236_v13, %v3904_v11  ;;  %v3906_v48 = vld [vmem:[#allocation3 + $0x58] sm:$0xf0] }
 0x4d5   :  { %v3909_v16 = vor.u32 %v4234_v6, %v3906_v48 }
 0x4d6   :  { %v3859_v26 = vmul.f32 -1.442695, %v2447_v44  ;;  %v3860_v1 = vmul.f32 -1.442695, %v2448_v56  ;;  %2747 = vmatpush.bf16.msra.mxu2 %v3905_v42 }
 0x4d7   :  { %2760 = vmatpush.bf16.msra.mxu3 %v3909_v16 }
 0x4d8   :  { %4362 = vpow2.f32 %v3859_v26 }
 0x4d9   :  { %4364 = vpow2.f32 %v3860_v1 }
 0x4da   :  { %v2430_v15 = vpop.f32.mrf.mxu2  ;;  %v2443_v10 = vpop.f32.mrf.mxu3  ;;  %2748 = vmatpush.bf16.msra.mxu2 %v3889_v33 }
 0x4db   :  { %v2450_v34 = vadd.f32 %v2443_v10, %v4684_v36  ;;  %v2406_v21 = vpop.f32.mrf.mxu0  ;;  %v2419_v32 = vpop.f32.mrf.mxu1  ;;  %v3873_v36 = vor.u32 %v4228_v3, %v3872_v40  ;;  %2761 = vmatpush.bf16.msra.mxu3 %v3893_v38  ;;  %v2449_v55 = vadd.f32 %v2430_v15, %v4681_v25 }
 0x4dd   :  { %v3861_v5 = vmul.f32 -1.442695, %v2450_v34 }
 0x4de   :  { %v4363_v50 = vpop.eup %4362  ;;  %2749 = vmatpush.bf16.msra.mxu2 %v3873_v36 }
 0x4df   :  { %v4365_v54 = vpop.eup %4364  ;;  %v2454_v46 = vadd.f32 1.0, %v4363_v50  ;;  %4366 = vpow2.f32 %v3861_v5  ;;  %2762 = vmatpush.bf16.msra.mxu3 %v3877_v53 }
 0x4e0   :  { %v2473_v9 = vadd.f32 1.0, %v4365_v54 }
 0x4e1   :  { %4368 = vrcp.f32 %v2454_v46  ;;  %v2466_v62 = vand.u32 2147483648, %v2454_v46  ;;  %v2464_v1 = vand.u32 2147483647, %v2454_v46  ;;  %vm2460_vm11 = vweird.f32 %v2454_v46 }
 0x4e2   :  { %4370 = vrcp.f32 %v2473_v9  ;;  %v2432_v18 = vpop.f32.mrf.mxu2  ;;  %v2445_v61 = vpop.f32.mrf.mxu3  ;;  %v2485_v0 = vand.u32 2147483648, %v2473_v9  ;;  %v2483_v63 = vand.u32 2147483647, %v2473_v9  ;;  %vm2479_vm12 = vweird.f32 %v2473_v9 }
 0x4e3   :  { %v2467_v25 = vor.u32 1.1754944e-38, %v2466_v62  ;;  %vm2465_vm15 = vcmp.eq.f32.partialorder %v2464_v1, 8.507059e+37 }
 0x4e4   :  { %v2486_v42 = vor.u32 1.1754944e-38, %v2485_v0  ;;  %vm2484_vm0 = vcmp.eq.f32.partialorder %v2483_v63, 8.507059e+37 }
 0x4e5   :  { %v4367_v22 = vpop.eup %4366 }
 0x4e6   :  { %v2493_v47 = vadd.f32 1.0, %v4367_v22 }
 0x4e7   :  { %v4369_v7 = vpop.eup %4368 }
 0x4e8   :  { %v4371_v51 = vpop.eup %4370  ;;  %v2456_v44 = vmul.f32 %v4369_v7, %v2454_v46  ;;  %4372 = vrcp.f32 %v2493_v47  ;;  %vm2461_vm9 = vweird.f32 %v4369_v7  ;;  %v2505_v19 = vand.u32 2147483648, %v2493_v47 }
 0x4e9   :  { %v2475_v56 = vmul.f32 %v4371_v51, %v2473_v9  ;;  %4374 = vtanh.f32 %v2449_v55  ;;  %vm2480_vm10 = vweird.f32 %v4371_v51  ;;  %vm2462_vm13 = vmor %vm2460_vm11, %vm2461_vm9  ;;  %vm2499_vm2 = vweird.f32 %v2493_v47 }
 0x4ea   :  { %v2457_v58 = vsub.f32 1.0, %v2456_v44  ;;  %vm2481_vm14 = vmor %vm2479_vm12, %vm2480_vm10  ;;  %v2503_v27 = vand.u32 2147483647, %v2493_v47  ;;  %v2506_v34 = vor.u32 1.1754944e-38, %v2505_v19 }
 0x4eb   :  { %v2476_v41 = vsub.f32 1.0, %v2475_v56 }
 0x4ec   :  { %v2458_v26 = vmul.f32 %v4369_v7, %v2457_v58  ;;  %vm2504_vm4 = vcmp.eq.f32.partialorder %v2503_v27, 8.507059e+37 }
 0x4ed   :  { %v2477_v4 = vmul.f32 %v4371_v51, %v2476_v41 }
 0x4ee   :  { %v4373_v60 = vpop.eup %4372  ;;  %v2459_v11 = vadd.f32 %v4369_v7, %v2458_v26 }
 0x4ef   :  { %v2478_v13 = vadd.f32 %v4371_v51, %v2477_v4  ;;  %v2495_v6 = vmul.f32 %v4373_v60, %v2493_v47  ;;  %v4375_v8 = vpop.eup %4374  ;;  %vm2500_vm1 = vweird.f32 %v4373_v60 }
 0x4f0   :  { %v2463_v48 = vsel %vm2462_vm13, %v4369_v7, %v2459_v11  ;;  %vm2501_vm3 = vmor %vm2499_vm2, %vm2500_vm1 }
 0x4f1   :  { %v2468_v14 = vsel %vm2465_vm15, %v2467_v25, %v2463_v48  ;;  %v2482_v16 = vsel %vm2481_vm14, %v4371_v51, %v2478_v13  ;;  %v2496_v17 = vsub.f32 1.0, %v2495_v6 }
 0x4f2   :  { %v2487_v20 = vsel %vm2484_vm0, %v2486_v42, %v2482_v16  ;;  %v2510_v24 = vmul.f32 %v4375_v8, %v2468_v14 }
 0x4f3   :  { %v2509_v30 = vmul.f32 %v2487_v20, %v4746_v57  ;;  %v2497_v15 = vmul.f32 %v4373_v60, %v2496_v17 }
 0x4f5   :  { %v4754_v10 = vadd.f32 %v2510_v24, %v2509_v30  ;;  %v2498_v31 = vadd.f32 %v4373_v60, %v2497_v15 }
 0x4f7   :  { %4376 = vtanh.f32 %v4754_v10  ;;  %v2502_v29 = vsel %vm2501_vm3, %v4373_v60, %v2498_v31 }
 0x4f8   :  { %v2507_v32 = vsel %vm2504_vm4, %v2506_v34, %v2502_v29 }
 0x4fd   :  { %v4377_v21 = vpop.eup %4376 }
 0x4fe   :  { %v2513_v33 = vmul.f32 %v4377_v21, %v2507_v32 }
 0x500   :  { %v2514_v38 = vpack.c.bf16 %v2513_v33, %v2513_v33 }
 0x502   :  { %2516 = vst [vmem:[#allocation6 + $0x18] sm:$0xf] %v2514_v38  ;;  %2724 = vmatmul.bf16.vlgmr.msra.gmra.mxu0 %v2514_v38  ;;  %2737 = vmatmul.bf16.vlgmr.msra.gmra.mxu1 %v2514_v38 }
 0x503   :  { %2750 = vmatmul.bf16.vlgmr.msra.gmra.mxu2 %v2514_v38  ;;  %2763 = vmatmul.bf16.vlgmr.msra.gmra.mxu3 %v2514_v38 }
 0x57f   :  { %v2725_v57 = vpop.f32.mrf.mxu0  ;;  %v2738_v2 = vpop.f32.mrf.mxu1 }
 0x580   :  { %v2768_v23 = vadd.f32 %v2725_v57, %v4687_v37  ;;  %v2769_v52 = vadd.f32 %v2738_v2, %v4690_v45 }
 0x582   :  { %v3990_v39 = vmul.f32 -1.442695, %v2768_v23  ;;  %v3991_v43 = vmul.f32 -1.442695, %v2769_v52 }
 0x584   :  { %4378 = vpow2.f32 %v3990_v39 }
 0x585   :  { %4380 = vpow2.f32 %v3991_v43 }
 0x586   :  { %v2751_v40 = vpop.f32.mrf.mxu2  ;;  %v2764_v3 = vpop.f32.mrf.mxu3 }
 0x587   :  { %v2771_v5 = vadd.f32 %v2764_v3, %v4700_v49  ;;  %v2727_v59 = vpop.f32.mrf.mxu0  ;;  %v2740_v12 = vpop.f32.mrf.mxu1  ;;  %v2770_v61 = vadd.f32 %v2751_v40, %v4697_v28 }
 0x589   :  { %v3992_v35 = vmul.f32 -1.442695, %v2771_v5 }
 0x58a   :  { %v4379_v50 = vpop.eup %4378 }
 0x58b   :  { %v4381_v36 = vpop.eup %4380  ;;  %v2775_v54 = vadd.f32 1.0, %v4379_v50  ;;  %4382 = vpow2.f32 %v3992_v35 }
 0x58c   :  { %v2794_v46 = vadd.f32 1.0, %v4381_v36 }
 0x58d   :  { %4384 = vrcp.f32 %v2775_v54  ;;  %v2787_v51 = vand.u32 2147483648, %v2775_v54  ;;  %v2785_v58 = vand.u32 2147483647, %v2775_v54  ;;  %vm2781_vm7 = vweird.f32 %v2775_v54 }
 0x58e   :  { %4386 = vrcp.f32 %v2794_v46  ;;  %v2753_v37 = vpop.f32.mrf.mxu2  ;;  %v2766_v45 = vpop.f32.mrf.mxu3  ;;  %v2806_v44 = vand.u32 2147483648, %v2794_v46  ;;  %v2804_v62 = vand.u32 2147483647, %v2794_v46  ;;  %vm2800_vm8 = vweird.f32 %v2794_v46 }
 0x58f   :  { %v2788_v28 = vor.u32 1.1754944e-38, %v2787_v51  ;;  %vm2786_vm11 = vcmp.eq.f32.partialorder %v2785_v58, 8.507059e+37 }
 0x590   :  { %v2807_v63 = vor.u32 1.1754944e-38, %v2806_v44  ;;  %vm2805_vm12 = vcmp.eq.f32.partialorder %v2804_v62, 8.507059e+37 }
 0x591   :  { %v4383_v53 = vpop.eup %4382 }
 0x592   :  { %v2814_v9 = vadd.f32 1.0, %v4383_v53 }
 0x593   :  { %v4385_v18 = vpop.eup %4384 }
 0x594   :  { %v4387_v22 = vpop.eup %4386  ;;  %v2777_v47 = vmul.f32 %v4385_v18, %v2775_v54  ;;  %4388 = vrcp.f32 %v2814_v9  ;;  %vm2782_vm5 = vweird.f32 %v4385_v18  ;;  %v2826_v20 = vand.u32 2147483648, %v2814_v9 }
 0x595   :  { %v2796_v49 = vmul.f32 %v4387_v22, %v2794_v46  ;;  %4390 = vtanh.f32 %v2770_v61  ;;  %vm2801_vm6 = vweird.f32 %v4387_v22  ;;  %vm2783_vm9 = vmor %vm2781_vm7, %vm2782_vm5  ;;  %vm2820_vm14 = vweird.f32 %v2814_v9 }
 0x596   :  { %v2778_v7 = vsub.f32 1.0, %v2777_v47  ;;  %vm2802_vm10 = vmor %vm2800_vm8, %vm2801_vm6  ;;  %v2824_v24 = vand.u32 2147483647, %v2814_v9  ;;  %v2827_v15 = vor.u32 1.1754944e-38, %v2826_v20 }
 0x597   :  { %v2797_v55 = vsub.f32 1.0, %v2796_v49 }
 0x598   :  { %v2779_v56 = vmul.f32 %v4385_v18, %v2778_v7  ;;  %vm2825_vm0 = vcmp.eq.f32.partialorder %v2824_v24, 8.507059e+37 }
 0x599   :  { %v2798_v41 = vmul.f32 %v4387_v22, %v2797_v55 }
 0x59a   :  { %v4389_v0 = vpop.eup %4388  ;;  %v2780_v26 = vadd.f32 %v4385_v18, %v2779_v56 }
 0x59b   :  { %v2799_v1 = vadd.f32 %v4387_v22, %v2798_v41  ;;  %v2816_v4 = vmul.f32 %v4389_v0, %v2814_v9  ;;  %v4391_v11 = vpop.eup %4390  ;;  %vm2821_vm13 = vweird.f32 %v4389_v0 }
 0x59c   :  { %v2784_v60 = vsel %vm2783_vm9, %v4385_v18, %v2780_v26  ;;  %vm2822_vm15 = vmor %vm2820_vm14, %vm2821_vm13 }
 0x59d   :  { %v2789_v25 = vsel %vm2786_vm11, %v2788_v28, %v2784_v60  ;;  %v2803_v13 = vsel %vm2802_vm10, %v4387_v22, %v2799_v1  ;;  %v2817_v6 = vsub.f32 1.0, %v2816_v4 }
 0x59e   :  { %v2808_v42 = vsel %vm2805_vm12, %v2807_v63, %v2803_v13  ;;  %v2831_v48 = vmul.f32 %v4391_v11, %v2789_v25 }
 0x59f   :  { %v2830_v8 = vmul.f32 %v2808_v42, %v4754_v10  ;;  %v2818_v14 = vmul.f32 %v4389_v0, %v2817_v6 }
 0x5a1   :  { %v2832_v16 = vadd.f32 %v2831_v48, %v2830_v8  ;;  %v2819_v17 = vadd.f32 %v4389_v0, %v2818_v14 }
 0x5a3   :  { %4392 = vtanh.f32 %v2832_v16  ;;  %2839 = vst [vmem:[#allocation9] sm:$0xff] %v2832_v16  ;;  %v2823_v30 = vsel %vm2822_vm15, %v4389_v0, %v2819_v17 }
 0x5a4   :  { %v2828_v31 = vsel %vm2825_vm0, %v2827_v15, %v2823_v30 }
 0x5a9   :  { %v4393_v10 = vpop.eup %4392 }
 0x5aa   :  { %v2834_v19 = vmul.f32 %v4393_v10, %v2828_v31 }
 0x5ac   :  { %v2835_v27 = vpack.c.bf16 %v2834_v19, %v2834_v19  ;;  %2838 = vst [vmem:[#allocation7] sm:$0xff] %v2834_v19 }
 0x5ad   :  { %2863 = dma.vmem_to_hbm [thread:$0]  %s2859_s3, 128, %s2861_s30, [#allocation8]  }
 0x5ae   :  { %2837 = vst [vmem:[#allocation6 + $0x1c] sm:$0xf] %v2835_v27  ;;  %2874 = dma.vmem_to_hbm [thread:$0]  %s2870_s12, 128, %s2872_s15, [#allocation8]  }
 0x5af   :  { %2852 = dma.vmem_to_hbm [thread:$0]  %s2845_s8, 512, %s2847_s10, [#allocation5], %s4503_s4, %s4503_s4, %s4504_s5  }
 0x5b0   :  { %4492 = dma.done.wait [#allocation5], 512  }
 0x5b1   :  { %4493 = vsyncadd [#allocation5], 4294966784 }
 0x5b2   :  { %4494 = dma.done.wait [#allocation8], 256  }
 0x5b3   :  { %4495 = vsyncadd [#allocation8], 4294967040 }
 0x5b4   :  { %2887 = vsyncpa [#allocation4], 1 }
 0x5b5   :  { %2888 = vsyncpa [#allocation5], 1 }
 0x5b6   :  { %2889 = vsyncpa [#allocation8], 1 }

</bundles_post_ra>
